<compile_context>
chip_gen: v5e
topology: v5e:2x2
jax: 0.10.0
libtpu: 0.0.40
codegen_flags: <defaults>
</compile_context>

<pallas_src>
import functools

import jax
import jax.numpy as jnp
from jax import lax
from jax.experimental import pallas as pl
from jax.experimental.pallas import tpu as pltpu


def _round_up(x, m):
    return (x + m - 1) // m * m


def mdnrnn_kernel(act_ref, lat_ref, wa_ref, wl_ref, whh_ref, b_ref,
                  wg_ref, bg_ref, out_ref,
                  xw_ref, hall_ref, h_ref, c_ref,
                  *, hp, ps, pg, gaussians):
    """One T-tile of the LSTM recurrence + batched, lane-dense GMM head.

    act_ref : (tT, A)        lat_ref : (tT, L)
    wa_ref  : (A, 4Hp)       wl_ref  : (L, 4Hp)      whh_ref : (Hp, 4Hp)
    b_ref   : (1, 4Hp)       wg_ref  : (Hp, Gpad)    bg_ref  : (1, Gpad)
    out_ref : (tT, Gpad)  -- lane-dense slab: mus|sigmas|logpi|rs,ds sections,
                             each starting on a 128-lane boundary.
    xw_ref  : (tT, 4Hp) VMEM scratch (pre-projected inputs for this tile)
    hall_ref: (tT, Hp)  VMEM scratch (hidden states for this tile)
    h_ref/c_ref : (1, Hp) VMEM scratch carrying the LSTM state across tiles.
    """
    tile_t = act_ref.shape[0]

    # Initialize the carried state on the first grid step only.
    @pl.when(pl.program_id(0) == 0)
    def _init():
        h_ref[...] = jnp.zeros_like(h_ref)
        c_ref[...] = jnp.zeros_like(c_ref)

    # --- Batched input projection for this tile: two well-shaped MXU matmuls
    #     (actions / latents split avoids the wrapper-side concatenate), off
    #     the recurrent critical path.
    xw_ref[...] = (
        jnp.dot(act_ref[...], wa_ref[...], preferred_element_type=jnp.float32)
        + jnp.dot(lat_ref[...], wl_ref[...], preferred_element_type=jnp.float32)
        + b_ref[...])

    whh = whh_ref[...]          # keep recurrent weights resident in vregs

    def block(blk, carry):
        # Processes 8 consecutive timesteps; h_t rows are accumulated and
        # written back as one unmasked (8, Hp) store.
        h, c = carry            # (1, Hp) each, live in vregs
        t0 = pl.multiple_of(blk * 8, 8)
        rows = []
        for j in range(8):
            gates = (xw_ref[pl.ds(t0 + j, 1), :]
                     + jnp.dot(h, whh, preferred_element_type=jnp.float32))
            # Each gate occupies its own 128-lane-aligned block -> whole-vreg
            # slices; per-gate nonlinearity (no sigmoid on the g block).
            i_g = jax.nn.sigmoid(gates[:, 0 * hp:1 * hp])
            f_g = jax.nn.sigmoid(gates[:, 1 * hp:2 * hp])
            g_g = jnp.tanh(gates[:, 2 * hp:3 * hp])
            o_g = jax.nn.sigmoid(gates[:, 3 * hp:4 * hp])
            c = f_g * c + i_g * g_g
            h = o_g * jnp.tanh(c)
            rows.append(h)
        hall_ref[pl.ds(t0, 8), :] = jnp.concatenate(rows, axis=0)
        return h, c

    n_blocks = tile_t // 8
    h_fin, c_fin = lax.fori_loop(
        0, n_blocks, block, (h_ref[...], c_ref[...]),
        unroll=True if n_blocks <= 4 else 2)   # cap unroll for long tiles
    h_ref[...] = h_fin
    c_ref[...] = c_fin

    # --- GMM head: one matmul over the whole tile into a lane-dense slab.
    gmm = (jnp.dot(hall_ref[...], wg_ref[...],
                   preferred_element_type=jnp.float32)
           + bg_ref[...])                                   # (tT, Gpad)

    # mus section (identity)
    out_ref[:, 0:ps] = gmm[:, 0:ps]
    # sigmas section: exp over the whole 128-aligned block
    out_ref[:, ps:2 * ps] = jnp.exp(gmm[:, ps:2 * ps])
    # pi section: masked log_softmax over the valid first `gaussians` lanes
    pi = gmm[:, 2 * ps:2 * ps + pg]
    lane = lax.broadcasted_iota(jnp.int32, pi.shape, 1)
    valid = lane < gaussians
    m = jnp.max(jnp.where(valid, pi, jnp.float32(-1e30)), axis=-1,
                keepdims=True)
    e = jnp.where(valid, jnp.exp(pi - m), jnp.float32(0.0))
    lse = m + jnp.log(jnp.sum(e, axis=-1, keepdims=True))
    out_ref[:, 2 * ps:2 * ps + pg] = pi - lse
    # rs/ds section (identity)
    out_ref[:, 2 * ps + pg:2 * ps + pg + 128] = \
        gmm[:, 2 * ps + pg:2 * ps + pg + 128]


def mdnrnn_forward(actions, latents, params, *, latent_size, gaussian_size,
                   hidden_size):
    """JAX wrapper reproducing MDNRNN.forward (unbatched LSTM over T rows)."""
    T, A = actions.shape
    L = latent_size
    H = hidden_size
    G = gaussian_size

    Hp = _round_up(H, 128)           # per-gate padded width
    stride = G * L
    ps = _round_up(stride, 128)      # padded mus/sigma section width
    pg = _round_up(G, 128)           # padded pi section width
    g_pad = 2 * ps + pg + 128        # total lane-dense slab width

    actions = actions.astype(jnp.float32)
    latents = latents.astype(jnp.float32)

    # ---- Gate-block padded LSTM weights: gate g lives in lanes
    #      [g*Hp, g*Hp+H); padded lanes/rows are zero so the padded h/c carry
    #      stays exactly zero on the padded lanes.
    def pad_gate_cols(w_t):                       # (rows, 4H) -> (rows, 4Hp)
        rows = w_t.shape[0]
        out = jnp.zeros((rows, 4 * Hp), jnp.float32)
        for g in range(4):
            out = out.at[:, g * Hp:g * Hp + H].set(w_t[:, g * H:(g + 1) * H])
        return out

    w_ih_t = params["w_ih"].T.astype(jnp.float32)            # (A+L, 4H)
    wa_pad = pad_gate_cols(w_ih_t[:A])                        # (A, 4Hp)
    wl_pad = pad_gate_cols(w_ih_t[A:])                        # (L, 4Hp)
    whh_pad = jnp.zeros((Hp, 4 * Hp), jnp.float32).at[:H].set(
        pad_gate_cols(params["w_hh"].T.astype(jnp.float32)))  # (Hp, 4Hp)
    b_pad = pad_gate_cols(
        (params["b_ih"] + params["b_hh"]).astype(jnp.float32)[None, :])

    # ---- Lane-dense GMM head layout: mus | sigmas | pi | (rs, ds), each
    #      section starting on a 128-lane boundary.
    def pad_head(w):                              # (rows, Gout) -> (rows, Gpad)
        rows = w.shape[0]
        out = jnp.zeros((rows, g_pad), jnp.float32)
        out = out.at[:, 0:stride].set(w[:, 0:stride])
        out = out.at[:, ps:ps + stride].set(w[:, stride:2 * stride])
        out = out.at[:, 2 * ps:2 * ps + G].set(w[:, 2 * stride:2 * stride + G])
        out = out.at[:, 2 * ps + pg:2 * ps + pg + 2].set(w[:, 2 * stride + G:])
        return out

    wg_t = params["w_gmm"].T.astype(jnp.float32)              # (H, Gout)
    wg_pad = jnp.zeros((Hp, g_pad), jnp.float32).at[:H].set(pad_head(wg_t))
    bg_pad = pad_head(params["b_gmm"].astype(jnp.float32)[None, :])

    # ---- T tiling (grid axis is "arbitrary": the recurrence is serial).
    if T % 8 != 0:
        # TODO(synk): support ragged T by padding the sequence to a multiple
        # of 8 and masking the tail.
        raise ValueError("T must be a multiple of 8")
    tile_t = next(c for c in (128, 64, 32, 16, 8) if T % c == 0)
    nt = T // tile_t

    kernel = functools.partial(mdnrnn_kernel, hp=Hp, ps=ps, pg=pg,
                               gaussians=G)

    def full(shape):
        return pl.BlockSpec(shape, lambda t, _n=len(shape): (0,) * _n)

    gmm_pad = pl.pallas_call(
        kernel,
        out_shape=jax.ShapeDtypeStruct((T, g_pad), jnp.float32),
        grid=(nt,),
        in_specs=[
            pl.BlockSpec((tile_t, A), lambda t: (t, 0)),      # actions tile
            pl.BlockSpec((tile_t, L), lambda t: (t, 0)),      # latents tile
            full(wa_pad.shape), full(wl_pad.shape), full(whh_pad.shape),
            full(b_pad.shape), full(wg_pad.shape), full(bg_pad.shape),
        ],
        out_specs=pl.BlockSpec((tile_t, g_pad), lambda t: (t, 0)),
        scratch_shapes=[
            pltpu.VMEM((tile_t, 4 * Hp), jnp.float32),   # pre-projected inputs
            pltpu.VMEM((tile_t, Hp), jnp.float32),       # tile hidden states
            pltpu.VMEM((1, Hp), jnp.float32),            # carried h
            pltpu.VMEM((1, Hp), jnp.float32),            # carried c
        ],
        compiler_params=pltpu.CompilerParams(
            dimension_semantics=("arbitrary",),
            vmem_limit_bytes=32 * 1024 * 1024),
    )(actions, latents, wa_pad, wl_pad, whh_pad, b_pad, wg_pad, bg_pad)

    # Split the lane-dense slab in the wrapper.
    mus = gmm_pad[:, 0:stride].reshape(T, G, L)
    sigmas = gmm_pad[:, ps:ps + stride].reshape(T, G, L)
    logpi = gmm_pad[:, 2 * ps:2 * ps + G]
    rs = gmm_pad[:, 2 * ps + pg]
    ds = gmm_pad[:, 2 * ps + pg + 1]
    return mus, sigmas, logpi, rs, ds


def mdnrnn_reference(actions, latents, params, *, latent_size, gaussian_size,
                     hidden_size):
    """Pure-JAX reference mirroring PyTorch nn.LSTM (unbatched) + Linear."""
    H = hidden_size
    ins = jnp.concatenate([actions, latents], axis=1).astype(jnp.float32)
    w_ih, w_hh = params["w_ih"], params["w_hh"]
    b = params["b_ih"] + params["b_hh"]

    def cell(carry, x):
        h, c = carry
        gates = x @ w_ih.T + h @ w_hh.T + b
        i = jax.nn.sigmoid(gates[0:H])
        f = jax.nn.sigmoid(gates[H:2 * H])
        g = jnp.tanh(gates[2 * H:3 * H])
        o = jax.nn.sigmoid(gates[3 * H:4 * H])
        c_new = f * c + i * g
        h_new = o * jnp.tanh(c_new)
        return (h_new, c_new), h_new

    h0 = jnp.zeros((H,), jnp.float32)
    _, outs = lax.scan(cell, (h0, h0), ins)
    gmm = outs @ params["w_gmm"].T + params["b_gmm"]
    T = ins.shape[0]
    stride = gaussian_size * latent_size
    mus = gmm[:, :stride].reshape(T, gaussian_size, latent_size)
    sigmas = jnp.exp(gmm[:, stride:2 * stride]).reshape(T, gaussian_size,
                                                        latent_size)
    pi = gmm[:, 2 * stride:2 * stride + gaussian_size]
    logpi = jax.nn.log_softmax(pi, axis=-1)
    return mus, sigmas, logpi, gmm[:, -2], gmm[:, -1]


def init_params(key, *, latent_size, action_size, hidden_size, gaussian_size):
    """Deterministic synthetic init (PyTorch-style uniform(-k, k) ranges)."""
    d_in = latent_size + action_size
    g_out = (2 * latent_size + 1) * gaussian_size + 2
    ks = jax.random.split(key, 6)
    k_lstm = 1.0 / jnp.sqrt(hidden_size)
    k_lin = 1.0 / jnp.sqrt(hidden_size)
    u = lambda k, shape, s: jax.random.uniform(k, shape, jnp.float32, -s, s)
    return {
        "w_ih": u(ks[0], (4 * hidden_size, d_in), k_lstm),
        "w_hh": u(ks[1], (4 * hidden_size, hidden_size), k_lstm),
        "b_ih": u(ks[2], (4 * hidden_size,), k_lstm),
        "b_hh": u(ks[3], (4 * hidden_size,), k_lstm),
        "w_gmm": u(ks[4], (g_out, hidden_size), k_lin),
        "b_gmm": u(ks[5], (g_out,), k_lin),
    }


if __name__ == "__main__":
    LATENT, ACTION, HIDDEN, GAUSS, T = 16, 4, 32, 5, 8

    key = jax.random.PRNGKey(0)
    k_act, k_lat, k_par = jax.random.split(key, 3)
    actions = jax.random.normal(k_act, (T, ACTION), jnp.float32)
    latents = jax.random.normal(k_lat, (T, LATENT), jnp.float32)
    params = init_params(k_par, latent_size=LATENT, action_size=ACTION,
                         hidden_size=HIDDEN, gaussian_size=GAUSS)

    outs = mdnrnn_forward(actions, latents, params, latent_size=LATENT,
                          gaussian_size=GAUSS, hidden_size=HIDDEN)
    outs = jax.block_until_ready(outs)

    refs = mdnrnn_reference(actions, latents, params, latent_size=LATENT,
                            gaussian_size=GAUSS, hidden_size=HIDDEN)
    for o, r in zip(outs, refs):
        assert o.shape == r.shape, (o.shape, r.shape)
        assert jnp.allclose(o, r, atol=1e-4, rtol=1e-4), float(
            jnp.max(jnp.abs(o - r)))

    print("KERNEL_OK")
</pallas_src>

<mosaic_0001>
module attributes {stable_mosaic.version = 11 : i64} {
  func.func @mdnrnn_kernel(%arg0: i32, %arg1: memref<8x4xf32, #tpu.memory_space<vmem>>, %arg2: memref<8x16xf32, #tpu.memory_space<vmem>>, %arg3: memref<4x512xf32, #tpu.memory_space<vmem>>, %arg4: memref<16x512xf32, #tpu.memory_space<vmem>>, %arg5: memref<128x512xf32, #tpu.memory_space<vmem>>, %arg6: memref<1x512xf32, #tpu.memory_space<vmem>>, %arg7: memref<128x512xf32, #tpu.memory_space<vmem>>, %arg8: memref<1x512xf32, #tpu.memory_space<vmem>>, %arg9: memref<8x512xf32, #tpu.memory_space<vmem>>, %arg10: memref<8x512xf32, #tpu.memory_space<vmem>>, %arg11: memref<8x128xf32, #tpu.memory_space<vmem>>, %arg12: memref<1x128xf32, #tpu.memory_space<vmem>>, %arg13: memref<1x128xf32, #tpu.memory_space<vmem>>) attributes {dimension_semantics = [#tpu.dimension_semantics<arbitrary>], iteration_bounds = array<i64: 1>, scalar_prefetch = 0 : i64, scratch_operands = 4 : i64, tpu.core_type = #tpu.core_type<tc>, window_params = [{transform_indices = @transform_0, window_bounds = array<i64: 8, 4>}, {transform_indices = @transform_1, window_bounds = array<i64: 8, 16>}, {pipeline_mode = #tpu.pipeline_mode<synchronous>, transform_indices = @transform_2, window_bounds = array<i64: 4, 512>}, {pipeline_mode = #tpu.pipeline_mode<synchronous>, transform_indices = @transform_3, window_bounds = array<i64: 16, 512>}, {pipeline_mode = #tpu.pipeline_mode<synchronous>, transform_indices = @transform_4, window_bounds = array<i64: 128, 512>}, {pipeline_mode = #tpu.pipeline_mode<synchronous>, transform_indices = @transform_5, window_bounds = array<i64: 1, 512>}, {pipeline_mode = #tpu.pipeline_mode<synchronous>, transform_indices = @transform_6, window_bounds = array<i64: 128, 512>}, {pipeline_mode = #tpu.pipeline_mode<synchronous>, transform_indices = @transform_7, window_bounds = array<i64: 1, 512>}, {transform_indices = @transform_8, window_bounds = array<i64: 8, 512>}]} {
    %c0_i32 = arith.constant 0 : i32
    %0 = arith.cmpi eq, %arg0, %c0_i32 : i32
    %1 = arith.extui %0 : i1 to i32
    %c0_i32_0 = arith.constant 0 : i32
    %2 = arith.cmpi ne, %1, %c0_i32_0 : i32
    scf.if %2 {
      %cst_84 = arith.constant 0.000000e+00 : f32
      %297 = vector.broadcast %cst_84 : f32 to vector<1x128xf32>
      %c0_85 = arith.constant 0 : index
      %c0_86 = arith.constant 0 : index
      %298 = vector.load %arg12[%c0_85, %c0_86] : memref<1x128xf32, #tpu.memory_space<vmem>>, vector<1x128xf32>
      tpu.vector_store %arg12[%c0_85, %c0_86], %297 {strides = array<i32>} : memref<1x128xf32, #tpu.memory_space<vmem>>, vector<1x128xf32>,
      %cst_87 = arith.constant 0.000000e+00 : f32
      %299 = vector.broadcast %cst_87 : f32 to vector<1x128xf32>
      %c0_88 = arith.constant 0 : index
      %c0_89 = arith.constant 0 : index
      %300 = vector.load %arg13[%c0_88, %c0_89] : memref<1x128xf32, #tpu.memory_space<vmem>>, vector<1x128xf32>
      tpu.vector_store %arg13[%c0_88, %c0_89], %299 {strides = array<i32>} : memref<1x128xf32, #tpu.memory_space<vmem>>, vector<1x128xf32>,
    } else {
    }
    %c0 = arith.constant 0 : index
    %c0_1 = arith.constant 0 : index
    %3 = vector.load %arg1[%c0, %c0_1] : memref<8x4xf32, #tpu.memory_space<vmem>>, vector<8x4xf32>
    %c0_2 = arith.constant 0 : index
    %c0_3 = arith.constant 0 : index
    %4 = vector.load %arg3[%c0_2, %c0_3] : memref<4x512xf32, #tpu.memory_space<vmem>>, vector<4x512xf32>
    %cst = arith.constant dense<0.000000e+00> : vector<8x512xf32>
    %5 = tpu.matmul %3, %4, %cst {dimension_numbers = #tpu.dot_dimension_numbers<[1], [0], [0], [1], [0, 0, 1, 1], [], []>} : vector<8x4xf32>, vector<4x512xf32>, vector<8x512xf32> -> vector<8x512xf32>
    %c0_4 = arith.constant 0 : index
    %c0_5 = arith.constant 0 : index
    %6 = vector.load %arg2[%c0_4, %c0_5] : memref<8x16xf32, #tpu.memory_space<vmem>>, vector<8x16xf32>
    %c0_6 = arith.constant 0 : index
    %c0_7 = arith.constant 0 : index
    %7 = vector.load %arg4[%c0_6, %c0_7] : memref<16x512xf32, #tpu.memory_space<vmem>>, vector<16x512xf32>
    %cst_8 = arith.constant dense<0.000000e+00> : vector<8x512xf32>
    %8 = tpu.matmul %6, %7, %cst_8 {dimension_numbers = #tpu.dot_dimension_numbers<[1], [0], [0], [1], [0, 0, 1, 1], [], []>} : vector<8x16xf32>, vector<16x512xf32>, vector<8x512xf32> -> vector<8x512xf32>
    %9 = arith.addf %5, %8 : vector<8x512xf32>
    %c0_9 = arith.constant 0 : index
    %c0_10 = arith.constant 0 : index
    %10 = vector.load %arg6[%c0_9, %c0_10] : memref<1x512xf32, #tpu.memory_space<vmem>>, vector<1x512xf32>
    %11 = vector.broadcast %10 : vector<1x512xf32> to vector<8x512xf32>
    %12 = arith.addf %9, %11 : vector<8x512xf32>
    %c0_11 = arith.constant 0 : index
    %c0_12 = arith.constant 0 : index
    %13 = vector.load %arg10[%c0_11, %c0_12] : memref<8x512xf32, #tpu.memory_space<vmem>>, vector<8x512xf32>
    tpu.vector_store %arg10[%c0_11, %c0_12], %12 {strides = array<i32>} : memref<8x512xf32, #tpu.memory_space<vmem>>, vector<8x512xf32>,
    %c0_13 = arith.constant 0 : index
    %c0_14 = arith.constant 0 : index
    %14 = vector.load %arg5[%c0_13, %c0_14] : memref<128x512xf32, #tpu.memory_space<vmem>>, vector<128x512xf32>
    %c0_15 = arith.constant 0 : index
    %c0_16 = arith.constant 0 : index
    %15 = vector.load %arg12[%c0_15, %c0_16] : memref<1x128xf32, #tpu.memory_space<vmem>>, vector<1x128xf32>
    %c0_17 = arith.constant 0 : index
    %c0_18 = arith.constant 0 : index
    %16 = vector.load %arg13[%c0_17, %c0_18] : memref<1x128xf32, #tpu.memory_space<vmem>>, vector<1x128xf32>
    %c0_i32_19 = arith.constant 0 : i32
    %c8_i32 = arith.constant 8 : i32
    %17 = arith.muli %c0_i32_19, %c8_i32 : i32
    %18 = tpu.assume_multiple %17, 8 : i32
    %c0_i32_20 = arith.constant 0 : i32
    %19 = arith.addi %18, %c0_i32_20 : i32
    %20 = arith.index_cast %19 : i32 to index
    %c0_21 = arith.constant 0 : index
    %21 = vector.load %arg10[%20, %c0_21] : memref<8x512xf32, #tpu.memory_space<vmem>>, vector<1x512xf32>
    %cst_22 = arith.constant dense<0.000000e+00> : vector<1x512xf32>
    %22 = tpu.matmul %15, %14, %cst_22 {dimension_numbers = #tpu.dot_dimension_numbers<[1], [0], [0], [1], [0, 0, 1, 1], [], []>} : vector<1x128xf32>, vector<128x512xf32>, vector<1x512xf32> -> vector<1x512xf32>
    %23 = arith.addf %21, %22 : vector<1x512xf32>
    %24 = vector.extract_strided_slice %23 {offsets = [0, 0], sizes = [1, 128], strides = [1, 1]} : vector<1x512xf32> to vector<1x128xf32>
    %25 = arith.negf %24 : vector<1x128xf32>
    %26 = math.exp %25 : vector<1x128xf32>
    %cst_23 = arith.constant 1.000000e+00 : f32
    %27 = vector.broadcast %cst_23 : f32 to vector<1x128xf32>
    %28 = arith.addf %27, %26 : vector<1x128xf32>
    %29 = arith.divf %27, %28 : vector<1x128xf32>
    %30 = vector.extract_strided_slice %23 {offsets = [0, 128], sizes = [1, 128], strides = [1, 1]} : vector<1x512xf32> to vector<1x128xf32>
    %31 = arith.negf %30 : vector<1x128xf32>
    %32 = math.exp %31 : vector<1x128xf32>
    %cst_24 = arith.constant 1.000000e+00 : f32
    %33 = vector.broadcast %cst_24 : f32 to vector<1x128xf32>
    %34 = arith.addf %33, %32 : vector<1x128xf32>
    %35 = arith.divf %33, %34 : vector<1x128xf32>
    %36 = vector.extract_strided_slice %23 {offsets = [0, 256], sizes = [1, 128], strides = [1, 1]} : vector<1x512xf32> to vector<1x128xf32>
    %37 = math.tanh %36 : vector<1x128xf32>
    %38 = vector.extract_strided_slice %23 {offsets = [0, 384], sizes = [1, 128], strides = [1, 1]} : vector<1x512xf32> to vector<1x128xf32>
    %39 = arith.negf %38 : vector<1x128xf32>
    %40 = math.exp %39 : vector<1x128xf32>
    %cst_25 = arith.constant 1.000000e+00 : f32
    %41 = vector.broadcast %cst_25 : f32 to vector<1x128xf32>
    %42 = arith.addf %41, %40 : vector<1x128xf32>
    %43 = arith.divf %41, %42 : vector<1x128xf32>
    %44 = arith.mulf %35, %16 : vector<1x128xf32>
    %45 = arith.mulf %29, %37 : vector<1x128xf32>
    %46 = arith.addf %44, %45 : vector<1x128xf32>
    %47 = math.tanh %46 : vector<1x128xf32>
    %48 = arith.mulf %43, %47 : vector<1x128xf32>
    %c1_i32 = arith.constant 1 : i32
    %49 = arith.addi %18, %c1_i32 : i32
    %50 = arith.index_cast %49 : i32 to index
    %c0_26 = arith.constant 0 : index
    %51 = vector.load %arg10[%50, %c0_26] : memref<8x512xf32, #tpu.memory_space<vmem>>, vector<1x512xf32>
    %cst_27 = arith.constant dense<0.000000e+00> : vector<1x512xf32>
    %52 = tpu.matmul %48, %14, %cst_27 {dimension_numbers = #tpu.dot_dimension_numbers<[1], [0], [0], [1], [0, 0, 1, 1], [], []>} : vector<1x128xf32>, vector<128x512xf32>, vector<1x512xf32> -> vector<1x512xf32>
    %53 = arith.addf %51, %52 : vector<1x512xf32>
    %54 = vector.extract_strided_slice %53 {offsets = [0, 0], sizes = [1, 128], strides = [1, 1]} : vector<1x512xf32> to vector<1x128xf32>
    %55 = arith.negf %54 : vector<1x128xf32>
    %56 = math.exp %55 : vector<1x128xf32>
    %cst_28 = arith.constant 1.000000e+00 : f32
    %57 = vector.broadcast %cst_28 : f32 to vector<1x128xf32>
    %58 = arith.addf %57, %56 : vector<1x128xf32>
    %59 = arith.divf %57, %58 : vector<1x128xf32>
    %60 = vector.extract_strided_slice %53 {offsets = [0, 128], sizes = [1, 128], strides = [1, 1]} : vector<1x512xf32> to vector<1x128xf32>
    %61 = arith.negf %60 : vector<1x128xf32>
    %62 = math.exp %61 : vector<1x128xf32>
    %cst_29 = arith.constant 1.000000e+00 : f32
    %63 = vector.broadcast %cst_29 : f32 to vector<1x128xf32>
    %64 = arith.addf %63, %62 : vector<1x128xf32>
    %65 = arith.divf %63, %64 : vector<1x128xf32>
    %66 = vector.extract_strided_slice %53 {offsets = [0, 256], sizes = [1, 128], strides = [1, 1]} : vector<1x512xf32> to vector<1x128xf32>
    %67 = math.tanh %66 : vector<1x128xf32>
    %68 = vector.extract_strided_slice %53 {offsets = [0, 384], sizes = [1, 128], strides = [1, 1]} : vector<1x512xf32> to vector<1x128xf32>
    %69 = arith.negf %68 : vector<1x128xf32>
    %70 = math.exp %69 : vector<1x128xf32>
    %cst_30 = arith.constant 1.000000e+00 : f32
    %71 = vector.broadcast %cst_30 : f32 to vector<1x128xf32>
    %72 = arith.addf %71, %70 : vector<1x128xf32>
    %73 = arith.divf %71, %72 : vector<1x128xf32>
    %74 = arith.mulf %65, %46 : vector<1x128xf32>
    %75 = arith.mulf %59, %67 : vector<1x128xf32>
    %76 = arith.addf %74, %75 : vector<1x128xf32>
    %77 = math.tanh %76 : vector<1x128xf32>
    %78 = arith.mulf %73, %77 : vector<1x128xf32>
    %c2_i32 = arith.constant 2 : i32
    %79 = arith.addi %18, %c2_i32 : i32
    %80 = arith.index_cast %79 : i32 to index
    %c0_31 = arith.constant 0 : index
    %81 = vector.load %arg10[%80, %c0_31] : memref<8x512xf32, #tpu.memory_space<vmem>>, vector<1x512xf32>
    %cst_32 = arith.constant dense<0.000000e+00> : vector<1x512xf32>
    %82 = tpu.matmul %78, %14, %cst_32 {dimension_numbers = #tpu.dot_dimension_numbers<[1], [0], [0], [1], [0, 0, 1, 1], [], []>} : vector<1x128xf32>, vector<128x512xf32>, vector<1x512xf32> -> vector<1x512xf32>
    %83 = arith.addf %81, %82 : vector<1x512xf32>
    %84 = vector.extract_strided_slice %83 {offsets = [0, 0], sizes = [1, 128], strides = [1, 1]} : vector<1x512xf32> to vector<1x128xf32>
    %85 = arith.negf %84 : vector<1x128xf32>
    %86 = math.exp %85 : vector<1x128xf32>
    %cst_33 = arith.constant 1.000000e+00 : f32
    %87 = vector.broadcast %cst_33 : f32 to vector<1x128xf32>
    %88 = arith.addf %87, %86 : vector<1x128xf32>
    %89 = arith.divf %87, %88 : vector<1x128xf32>
    %90 = vector.extract_strided_slice %83 {offsets = [0, 128], sizes = [1, 128], strides = [1, 1]} : vector<1x512xf32> to vector<1x128xf32>
    %91 = arith.negf %90 : vector<1x128xf32>
    %92 = math.exp %91 : vector<1x128xf32>
    %cst_34 = arith.constant 1.000000e+00 : f32
    %93 = vector.broadcast %cst_34 : f32 to vector<1x128xf32>
    %94 = arith.addf %93, %92 : vector<1x128xf32>
    %95 = arith.divf %93, %94 : vector<1x128xf32>
    %96 = vector.extract_strided_slice %83 {offsets = [0, 256], sizes = [1, 128], strides = [1, 1]} : vector<1x512xf32> to vector<1x128xf32>
    %97 = math.tanh %96 : vector<1x128xf32>
    %98 = vector.extract_strided_slice %83 {offsets = [0, 384], sizes = [1, 128], strides = [1, 1]} : vector<1x512xf32> to vector<1x128xf32>
    %99 = arith.negf %98 : vector<1x128xf32>
    %100 = math.exp %99 : vector<1x128xf32>
    %cst_35 = arith.constant 1.000000e+00 : f32
    %101 = vector.broadcast %cst_35 : f32 to vector<1x128xf32>
    %102 = arith.addf %101, %100 : vector<1x128xf32>
    %103 = arith.divf %101, %102 : vector<1x128xf32>
    %104 = arith.mulf %95, %76 : vector<1x128xf32>
    %105 = arith.mulf %89, %97 : vector<1x128xf32>
    %106 = arith.addf %104, %105 : vector<1x128xf32>
    %107 = math.tanh %106 : vector<1x128xf32>
    %108 = arith.mulf %103, %107 : vector<1x128xf32>
    %c3_i32 = arith.constant 3 : i32
    %109 = arith.addi %18, %c3_i32 : i32
    %110 = arith.index_cast %109 : i32 to index
    %c0_36 = arith.constant 0 : index
    %111 = vector.load %arg10[%110, %c0_36] : memref<8x512xf32, #tpu.memory_space<vmem>>, vector<1x512xf32>
    %cst_37 = arith.constant dense<0.000000e+00> : vector<1x512xf32>
    %112 = tpu.matmul %108, %14, %cst_37 {dimension_numbers = #tpu.dot_dimension_numbers<[1], [0], [0], [1], [0, 0, 1, 1], [], []>} : vector<1x128xf32>, vector<128x512xf32>, vector<1x512xf32> -> vector<1x512xf32>
    %113 = arith.addf %111, %112 : vector<1x512xf32>
    %114 = vector.extract_strided_slice %113 {offsets = [0, 0], sizes = [1, 128], strides = [1, 1]} : vector<1x512xf32> to vector<1x128xf32>
    %115 = arith.negf %114 : vector<1x128xf32>
    %116 = math.exp %115 : vector<1x128xf32>
    %cst_38 = arith.constant 1.000000e+00 : f32
    %117 = vector.broadcast %cst_38 : f32 to vector<1x128xf32>
    %118 = arith.addf %117, %116 : vector<1x128xf32>
    %119 = arith.divf %117, %118 : vector<1x128xf32>
    %120 = vector.extract_strided_slice %113 {offsets = [0, 128], sizes = [1, 128], strides = [1, 1]} : vector<1x512xf32> to vector<1x128xf32>
    %121 = arith.negf %120 : vector<1x128xf32>
    %122 = math.exp %121 : vector<1x128xf32>
    %cst_39 = arith.constant 1.000000e+00 : f32
    %123 = vector.broadcast %cst_39 : f32 to vector<1x128xf32>
    %124 = arith.addf %123, %122 : vector<1x128xf32>
    %125 = arith.divf %123, %124 : vector<1x128xf32>
    %126 = vector.extract_strided_slice %113 {offsets = [0, 256], sizes = [1, 128], strides = [1, 1]} : vector<1x512xf32> to vector<1x128xf32>
    %127 = math.tanh %126 : vector<1x128xf32>
    %128 = vector.extract_strided_slice %113 {offsets = [0, 384], sizes = [1, 128], strides = [1, 1]} : vector<1x512xf32> to vector<1x128xf32>
    %129 = arith.negf %128 : vector<1x128xf32>
    %130 = math.exp %129 : vector<1x128xf32>
    %cst_40 = arith.constant 1.000000e+00 : f32
    %131 = vector.broadcast %cst_40 : f32 to vector<1x128xf32>
    %132 = arith.addf %131, %130 : vector<1x128xf32>
    %133 = arith.divf %131, %132 : vector<1x128xf32>
    %134 = arith.mulf %125, %106 : vector<1x128xf32>
    %135 = arith.mulf %119, %127 : vector<1x128xf32>
    %136 = arith.addf %134, %135 : vector<1x128xf32>
    %137 = math.tanh %136 : vector<1x128xf32>
    %138 = arith.mulf %133, %137 : vector<1x128xf32>
    %c4_i32 = arith.constant 4 : i32
    %139 = arith.addi %18, %c4_i32 : i32
    %140 = arith.index_cast %139 : i32 to index
    %c0_41 = arith.constant 0 : index
    %141 = vector.load %arg10[%140, %c0_41] : memref<8x512xf32, #tpu.memory_space<vmem>>, vector<1x512xf32>
    %cst_42 = arith.constant dense<0.000000e+00> : vector<1x512xf32>
    %142 = tpu.matmul %138, %14, %cst_42 {dimension_numbers = #tpu.dot_dimension_numbers<[1], [0], [0], [1], [0, 0, 1, 1], [], []>} : vector<1x128xf32>, vector<128x512xf32>, vector<1x512xf32> -> vector<1x512xf32>
    %143 = arith.addf %141, %142 : vector<1x512xf32>
    %144 = vector.extract_strided_slice %143 {offsets = [0, 0], sizes = [1, 128], strides = [1, 1]} : vector<1x512xf32> to vector<1x128xf32>
    %145 = arith.negf %144 : vector<1x128xf32>
    %146 = math.exp %145 : vector<1x128xf32>
    %cst_43 = arith.constant 1.000000e+00 : f32
    %147 = vector.broadcast %cst_43 : f32 to vector<1x128xf32>
    %148 = arith.addf %147, %146 : vector<1x128xf32>
    %149 = arith.divf %147, %148 : vector<1x128xf32>
    %150 = vector.extract_strided_slice %143 {offsets = [0, 128], sizes = [1, 128], strides = [1, 1]} : vector<1x512xf32> to vector<1x128xf32>
    %151 = arith.negf %150 : vector<1x128xf32>
    %152 = math.exp %151 : vector<1x128xf32>
    %cst_44 = arith.constant 1.000000e+00 : f32
    %153 = vector.broadcast %cst_44 : f32 to vector<1x128xf32>
    %154 = arith.addf %153, %152 : vector<1x128xf32>
    %155 = arith.divf %153, %154 : vector<1x128xf32>
    %156 = vector.extract_strided_slice %143 {offsets = [0, 256], sizes = [1, 128], strides = [1, 1]} : vector<1x512xf32> to vector<1x128xf32>
    %157 = math.tanh %156 : vector<1x128xf32>
    %158 = vector.extract_strided_slice %143 {offsets = [0, 384], sizes = [1, 128], strides = [1, 1]} : vector<1x512xf32> to vector<1x128xf32>
    %159 = arith.negf %158 : vector<1x128xf32>
    %160 = math.exp %159 : vector<1x128xf32>
    %cst_45 = arith.constant 1.000000e+00 : f32
    %161 = vector.broadcast %cst_45 : f32 to vector<1x128xf32>
    %162 = arith.addf %161, %160 : vector<1x128xf32>
    %163 = arith.divf %161, %162 : vector<1x128xf32>
    %164 = arith.mulf %155, %136 : vector<1x128xf32>
    %165 = arith.mulf %149, %157 : vector<1x128xf32>
    %166 = arith.addf %164, %165 : vector<1x128xf32>
    %167 = math.tanh %166 : vector<1x128xf32>
    %168 = arith.mulf %163, %167 : vector<1x128xf32>
    %c5_i32 = arith.constant 5 : i32
    %169 = arith.addi %18, %c5_i32 : i32
    %170 = arith.index_cast %169 : i32 to index
    %c0_46 = arith.constant 0 : index
    %171 = vector.load %arg10[%170, %c0_46] : memref<8x512xf32, #tpu.memory_space<vmem>>, vector<1x512xf32>
    %cst_47 = arith.constant dense<0.000000e+00> : vector<1x512xf32>
    %172 = tpu.matmul %168, %14, %cst_47 {dimension_numbers = #tpu.dot_dimension_numbers<[1], [0], [0], [1], [0, 0, 1, 1], [], []>} : vector<1x128xf32>, vector<128x512xf32>, vector<1x512xf32> -> vector<1x512xf32>
    %173 = arith.addf %171, %172 : vector<1x512xf32>
    %174 = vector.extract_strided_slice %173 {offsets = [0, 0], sizes = [1, 128], strides = [1, 1]} : vector<1x512xf32> to vector<1x128xf32>
    %175 = arith.negf %174 : vector<1x128xf32>
    %176 = math.exp %175 : vector<1x128xf32>
    %cst_48 = arith.constant 1.000000e+00 : f32
    %177 = vector.broadcast %cst_48 : f32 to vector<1x128xf32>
    %178 = arith.addf %177, %176 : vector<1x128xf32>
    %179 = arith.divf %177, %178 : vector<1x128xf32>
    %180 = vector.extract_strided_slice %173 {offsets = [0, 128], sizes = [1, 128], strides = [1, 1]} : vector<1x512xf32> to vector<1x128xf32>
    %181 = arith.negf %180 : vector<1x128xf32>
    %182 = math.exp %181 : vector<1x128xf32>
    %cst_49 = arith.constant 1.000000e+00 : f32
    %183 = vector.broadcast %cst_49 : f32 to vector<1x128xf32>
    %184 = arith.addf %183, %182 : vector<1x128xf32>
    %185 = arith.divf %183, %184 : vector<1x128xf32>
    %186 = vector.extract_strided_slice %173 {offsets = [0, 256], sizes = [1, 128], strides = [1, 1]} : vector<1x512xf32> to vector<1x128xf32>
    %187 = math.tanh %186 : vector<1x128xf32>
    %188 = vector.extract_strided_slice %173 {offsets = [0, 384], sizes = [1, 128], strides = [1, 1]} : vector<1x512xf32> to vector<1x128xf32>
    %189 = arith.negf %188 : vector<1x128xf32>
    %190 = math.exp %189 : vector<1x128xf32>
    %cst_50 = arith.constant 1.000000e+00 : f32
    %191 = vector.broadcast %cst_50 : f32 to vector<1x128xf32>
    %192 = arith.addf %191, %190 : vector<1x128xf32>
    %193 = arith.divf %191, %192 : vector<1x128xf32>
    %194 = arith.mulf %185, %166 : vector<1x128xf32>
    %195 = arith.mulf %179, %187 : vector<1x128xf32>
    %196 = arith.addf %194, %195 : vector<1x128xf32>
    %197 = math.tanh %196 : vector<1x128xf32>
    %198 = arith.mulf %193, %197 : vector<1x128xf32>
    %c6_i32 = arith.constant 6 : i32
    %199 = arith.addi %18, %c6_i32 : i32
    %200 = arith.index_cast %199 : i32 to index
    %c0_51 = arith.constant 0 : index
    %201 = vector.load %arg10[%200, %c0_51] : memref<8x512xf32, #tpu.memory_space<vmem>>, vector<1x512xf32>
    %cst_52 = arith.constant dense<0.000000e+00> : vector<1x512xf32>
    %202 = tpu.matmul %198, %14, %cst_52 {dimension_numbers = #tpu.dot_dimension_numbers<[1], [0], [0], [1], [0, 0, 1, 1], [], []>} : vector<1x128xf32>, vector<128x512xf32>, vector<1x512xf32> -> vector<1x512xf32>
    %203 = arith.addf %201, %202 : vector<1x512xf32>
    %204 = vector.extract_strided_slice %203 {offsets = [0, 0], sizes = [1, 128], strides = [1, 1]} : vector<1x512xf32> to vector<1x128xf32>
    %205 = arith.negf %204 : vector<1x128xf32>
    %206 = math.exp %205 : vector<1x128xf32>
    %cst_53 = arith.constant 1.000000e+00 : f32
    %207 = vector.broadcast %cst_53 : f32 to vector<1x128xf32>
    %208 = arith.addf %207, %206 : vector<1x128xf32>
    %209 = arith.divf %207, %208 : vector<1x128xf32>
    %210 = vector.extract_strided_slice %203 {offsets = [0, 128], sizes = [1, 128], strides = [1, 1]} : vector<1x512xf32> to vector<1x128xf32>
    %211 = arith.negf %210 : vector<1x128xf32>
    %212 = math.exp %211 : vector<1x128xf32>
    %cst_54 = arith.constant 1.000000e+00 : f32
    %213 = vector.broadcast %cst_54 : f32 to vector<1x128xf32>
    %214 = arith.addf %213, %212 : vector<1x128xf32>
    %215 = arith.divf %213, %214 : vector<1x128xf32>
    %216 = vector.extract_strided_slice %203 {offsets = [0, 256], sizes = [1, 128], strides = [1, 1]} : vector<1x512xf32> to vector<1x128xf32>
    %217 = math.tanh %216 : vector<1x128xf32>
    %218 = vector.extract_strided_slice %203 {offsets = [0, 384], sizes = [1, 128], strides = [1, 1]} : vector<1x512xf32> to vector<1x128xf32>
    %219 = arith.negf %218 : vector<1x128xf32>
    %220 = math.exp %219 : vector<1x128xf32>
    %cst_55 = arith.constant 1.000000e+00 : f32
    %221 = vector.broadcast %cst_55 : f32 to vector<1x128xf32>
    %222 = arith.addf %221, %220 : vector<1x128xf32>
    %223 = arith.divf %221, %222 : vector<1x128xf32>
    %224 = arith.mulf %215, %196 : vector<1x128xf32>
    %225 = arith.mulf %209, %217 : vector<1x128xf32>
    %226 = arith.addf %224, %225 : vector<1x128xf32>
    %227 = math.tanh %226 : vector<1x128xf32>
    %228 = arith.mulf %223, %227 : vector<1x128xf32>
    %c7_i32 = arith.constant 7 : i32
    %229 = arith.addi %18, %c7_i32 : i32
    %230 = arith.index_cast %229 : i32 to index
    %c0_56 = arith.constant 0 : index
    %231 = vector.load %arg10[%230, %c0_56] : memref<8x512xf32, #tpu.memory_space<vmem>>, vector<1x512xf32>
    %cst_57 = arith.constant dense<0.000000e+00> : vector<1x512xf32>
    %232 = tpu.matmul %228, %14, %cst_57 {dimension_numbers = #tpu.dot_dimension_numbers<[1], [0], [0], [1], [0, 0, 1, 1], [], []>} : vector<1x128xf32>, vector<128x512xf32>, vector<1x512xf32> -> vector<1x512xf32>
    %233 = arith.addf %231, %232 : vector<1x512xf32>
    %234 = vector.extract_strided_slice %233 {offsets = [0, 0], sizes = [1, 128], strides = [1, 1]} : vector<1x512xf32> to vector<1x128xf32>
    %235 = arith.negf %234 : vector<1x128xf32>
    %236 = math.exp %235 : vector<1x128xf32>
    %cst_58 = arith.constant 1.000000e+00 : f32
    %237 = vector.broadcast %cst_58 : f32 to vector<1x128xf32>
    %238 = arith.addf %237, %236 : vector<1x128xf32>
    %239 = arith.divf %237, %238 : vector<1x128xf32>
    %240 = vector.extract_strided_slice %233 {offsets = [0, 128], sizes = [1, 128], strides = [1, 1]} : vector<1x512xf32> to vector<1x128xf32>
    %241 = arith.negf %240 : vector<1x128xf32>
    %242 = math.exp %241 : vector<1x128xf32>
    %cst_59 = arith.constant 1.000000e+00 : f32
    %243 = vector.broadcast %cst_59 : f32 to vector<1x128xf32>
    %244 = arith.addf %243, %242 : vector<1x128xf32>
    %245 = arith.divf %243, %244 : vector<1x128xf32>
    %246 = vector.extract_strided_slice %233 {offsets = [0, 256], sizes = [1, 128], strides = [1, 1]} : vector<1x512xf32> to vector<1x128xf32>
    %247 = math.tanh %246 : vector<1x128xf32>
    %248 = vector.extract_strided_slice %233 {offsets = [0, 384], sizes = [1, 128], strides = [1, 1]} : vector<1x512xf32> to vector<1x128xf32>
    %249 = arith.negf %248 : vector<1x128xf32>
    %250 = math.exp %249 : vector<1x128xf32>
    %cst_60 = arith.constant 1.000000e+00 : f32
    %251 = vector.broadcast %cst_60 : f32 to vector<1x128xf32>
    %252 = arith.addf %251, %250 : vector<1x128xf32>
    %253 = arith.divf %251, %252 : vector<1x128xf32>
    %254 = arith.mulf %245, %226 : vector<1x128xf32>
    %255 = arith.mulf %239, %247 : vector<1x128xf32>
    %256 = arith.addf %254, %255 : vector<1x128xf32>
    %257 = math.tanh %256 : vector<1x128xf32>
    %258 = arith.mulf %253, %257 : vector<1x128xf32>
    %259 = tpu.concatenate %48, %78, %108, %138, %168, %198, %228, %258 in 0 : vector<1x128xf32>, vector<1x128xf32>, vector<1x128xf32>, vector<1x128xf32>, vector<1x128xf32>, vector<1x128xf32>, vector<1x128xf32>, vector<1x128xf32> -> vector<8x128xf32>
    %260 = arith.index_cast %18 : i32 to index
    %c0_61 = arith.constant 0 : index
    %261 = vector.load %arg11[%260, %c0_61] : memref<8x128xf32, #tpu.memory_space<vmem>>, vector<8x128xf32>
    tpu.vector_store %arg11[%260, %c0_61], %259 {strides = array<i32>} : memref<8x128xf32, #tpu.memory_space<vmem>>, vector<8x128xf32>,
    %c1_i32_62 = arith.constant 1 : i32
    %c0_63 = arith.constant 0 : index
    %c0_64 = arith.constant 0 : index
    %262 = vector.load %arg12[%c0_63, %c0_64] : memref<1x128xf32, #tpu.memory_space<vmem>>, vector<1x128xf32>
    tpu.vector_store %arg12[%c0_63, %c0_64], %258 {strides = array<i32>} : memref<1x128xf32, #tpu.memory_space<vmem>>, vector<1x128xf32>,
    %c0_65 = arith.constant 0 : index
    %c0_66 = arith.constant 0 : index
    %263 = vector.load %arg13[%c0_65, %c0_66] : memref<1x128xf32, #tpu.memory_space<vmem>>, vector<1x128xf32>
    tpu.vector_store %arg13[%c0_65, %c0_66], %256 {strides = array<i32>} : memref<1x128xf32, #tpu.memory_space<vmem>>, vector<1x128xf32>,
    %c0_67 = arith.constant 0 : index
    %c0_68 = arith.constant 0 : index
    %264 = vector.load %arg11[%c0_67, %c0_68] : memref<8x128xf32, #tpu.memory_space<vmem>>, vector<8x128xf32>
    %c0_69 = arith.constant 0 : index
    %c0_70 = arith.constant 0 : index
    %265 = vector.load %arg7[%c0_69, %c0_70] : memref<128x512xf32, #tpu.memory_space<vmem>>, vector<128x512xf32>
    %cst_71 = arith.constant dense<0.000000e+00> : vector<8x512xf32>
    %266 = tpu.matmul %264, %265, %cst_71 {dimension_numbers = #tpu.dot_dimension_numbers<[1], [0], [0], [1], [0, 0, 1, 1], [], []>} : vector<8x128xf32>, vector<128x512xf32>, vector<8x512xf32> -> vector<8x512xf32>
    %c0_72 = arith.constant 0 : index
    %c0_73 = arith.constant 0 : index
    %267 = vector.load %arg8[%c0_72, %c0_73] : memref<1x512xf32, #tpu.memory_space<vmem>>, vector<1x512xf32>
    %268 = vector.broadcast %267 : vector<1x512xf32> to vector<8x512xf32>
    %269 = arith.addf %266, %268 : vector<8x512xf32>
    %270 = vector.extract_strided_slice %269 {offsets = [0, 0], sizes = [8, 128], strides = [1, 1]} : vector<8x512xf32> to vector<8x128xf32>
    %c0_74 = arith.constant 0 : index
    %c0_75 = arith.constant 0 : index
    %271 = vector.load %arg9[%c0_74, %c0_75] : memref<8x512xf32, #tpu.memory_space<vmem>>, vector<8x128xf32>
    tpu.vector_store %arg9[%c0_74, %c0_75], %270 {strides = array<i32>} : memref<8x512xf32, #tpu.memory_space<vmem>>, vector<8x128xf32>,
    %272 = vector.extract_strided_slice %269 {offsets = [0, 128], sizes = [8, 128], strides = [1, 1]} : vector<8x512xf32> to vector<8x128xf32>
    %273 = math.exp %272 : vector<8x128xf32>
    %c0_76 = arith.constant 0 : index
    %c128 = arith.constant 128 : index
    %274 = vector.load %arg9[%c0_76, %c128] : memref<8x512xf32, #tpu.memory_space<vmem>>, vector<8x128xf32>
    tpu.vector_store %arg9[%c0_76, %c128], %273 {strides = array<i32>} : memref<8x512xf32, #tpu.memory_space<vmem>>, vector<8x128xf32>,
    %275 = vector.extract_strided_slice %269 {offsets = [0, 256], sizes = [8, 128], strides = [1, 1]} : vector<8x512xf32> to vector<8x128xf32>
    %276 = tpu.iota {dimensions = array<i32: 1>} : vector<8x128xi32>
    %c5_i32_77 = arith.constant 5 : i32
    %277 = vector.broadcast %c5_i32_77 : i32 to vector<8x128xi32>
    %278 = arith.cmpi slt, %276, %277 : vector<8x128xi32>
    %cst_78 = arith.constant -1.000000e+30 : f32
    %279 = vector.broadcast %cst_78 : f32 to vector<8x128xf32>
    %280 = arith.select %278, %275, %279 : vector<8x128xi1>, vector<8x128xf32>
    %cst_79 = arith.constant dense<0xFF800000> : vector<8xf32>
    %281 = vector.multi_reduction <maximumf>, %280, %cst_79 [1] : vector<8x128xf32> to vector<8xf32>
    %282 = vector.shape_cast %281 : vector<8xf32> to vector<8x1xf32>
    %283 = vector.broadcast %282 : vector<8x1xf32> to vector<8x128xf32>
    %284 = arith.subf %275, %283 : vector<8x128xf32>
    %285 = math.exp %284 : vector<8x128xf32>
    %cst_80 = arith.constant 0.000000e+00 : f32
    %286 = vector.broadcast %cst_80 : f32 to vector<8x128xf32>
    %287 = arith.select %278, %285, %286 : vector<8x128xi1>, vector<8x128xf32>
    %cst_81 = arith.constant dense<0.000000e+00> : vector<8xf32>
    %288 = vector.multi_reduction <add>, %287, %cst_81 [1] : vector<8x128xf32> to vector<8xf32>
    %289 = vector.shape_cast %288 : vector<8xf32> to vector<8x1xf32>
    %290 = math.log %289 : vector<8x1xf32>
    %291 = arith.addf %282, %290 : vector<8x1xf32>
    %292 = vector.broadcast %291 : vector<8x1xf32> to vector<8x128xf32>
    %293 = arith.subf %275, %292 : vector<8x128xf32>
    %c0_82 = arith.constant 0 : index
    %c256 = arith.constant 256 : index
    %294 = vector.load %arg9[%c0_82, %c256] : memref<8x512xf32, #tpu.memory_space<vmem>>, vector<8x128xf32>
    tpu.vector_store %arg9[%c0_82, %c256], %293 {strides = array<i32>} : memref<8x512xf32, #tpu.memory_space<vmem>>, vector<8x128xf32>,
    %295 = vector.extract_strided_slice %269 {offsets = [0, 384], sizes = [8, 128], strides = [1, 1]} : vector<8x512xf32> to vector<8x128xf32>
    %c0_83 = arith.constant 0 : index
    %c384 = arith.constant 384 : index
    %296 = vector.load %arg9[%c0_83, %c384] : memref<8x512xf32, #tpu.memory_space<vmem>>, vector<8x128xf32>
    tpu.vector_store %arg9[%c0_83, %c384], %295 {strides = array<i32>} : memref<8x512xf32, #tpu.memory_space<vmem>>, vector<8x128xf32>,
    return
  }
  func.func @transform_0(%arg0: i32) -> (i32, i32) {
    %c0_i32 = arith.constant 0 : i32
    %c0_i32_0 = arith.constant 0 : i32
    return %arg0, %c0_i32 : i32, i32
  }
  func.func @transform_1(%arg0: i32) -> (i32, i32) {
    %c0_i32 = arith.constant 0 : i32
    %c0_i32_0 = arith.constant 0 : i32
    return %arg0, %c0_i32 : i32, i32
  }
  func.func @transform_2(%arg0: i32) -> (i32, i32) {
    %c0_i32 = arith.constant 0 : i32
    %c0_i32_0 = arith.constant 0 : i32
    %c0_i32_1 = arith.constant 0 : i32
    return %c0_i32, %c0_i32_0 : i32, i32
  }
  func.func @transform_3(%arg0: i32) -> (i32, i32) {
    %c0_i32 = arith.constant 0 : i32
    %c0_i32_0 = arith.constant 0 : i32
    %c0_i32_1 = arith.constant 0 : i32
    return %c0_i32, %c0_i32_0 : i32, i32
  }
  func.func @transform_4(%arg0: i32) -> (i32, i32) {
    %c0_i32 = arith.constant 0 : i32
    %c0_i32_0 = arith.constant 0 : i32
    %c0_i32_1 = arith.constant 0 : i32
    return %c0_i32, %c0_i32_0 : i32, i32
  }
  func.func @transform_5(%arg0: i32) -> (i32, i32) {
    %c0_i32 = arith.constant 0 : i32
    %c0_i32_0 = arith.constant 0 : i32
    %c0_i32_1 = arith.constant 0 : i32
    return %c0_i32, %c0_i32_0 : i32, i32
  }
  func.func @transform_6(%arg0: i32) -> (i32, i32) {
    %c0_i32 = arith.constant 0 : i32
    %c0_i32_0 = arith.constant 0 : i32
    %c0_i32_1 = arith.constant 0 : i32
    return %c0_i32, %c0_i32_0 : i32, i32
  }
  func.func @transform_7(%arg0: i32) -> (i32, i32) {
    %c0_i32 = arith.constant 0 : i32
    %c0_i32_0 = arith.constant 0 : i32
    %c0_i32_1 = arith.constant 0 : i32
    return %c0_i32, %c0_i32_0 : i32, i32
  }
  func.func @transform_8(%arg0: i32) -> (i32, i32) {
    %c0_i32 = arith.constant 0 : i32
    %c0_i32_0 = arith.constant 0 : i32
    return %arg0, %c0_i32 : i32, i32
  }
}

</mosaic_0001>

<bundles_post_ra>
// kernel: tpu_custom_call.1
= control target key start
LH: loop header
LB: loop body
LE: loop exit
PB: predicated region body
PF: predicated region fallthrough
CT: control target
= control target key end

     0   :  { %13 = vsyncpa [#allocation7], 0  ;;  %s3324_s0 = inlined_call_operand.vmem [shape: f32[8,4], index: 0, kind: input, shape index: {}]   ;;  %s3325_s1 = inlined_call_operand.vmem [shape: f32[8,16], index: 1, kind: input, shape index: {}]   ;;  %s3326_s2 = inlined_call_operand.hbm [shape: f32[4,512], index: 2, kind: input, shape index: {}]   ;;  %s3327_s3 = inlined_call_operand.hbm [shape: f32[16,512], index: 3, kind: input, shape index: {}]   ;;  %s3328_s4 = inlined_call_operand.hbm [shape: f32[128,512], index: 4, kind: input, shape index: {}]   ;;  %s3329_s5 = inlined_call_operand.vmem [shape: f32[1,512], index: 5, kind: input, shape index: {}]   ;;  %s3330_s6 = inlined_call_operand.hbm [shape: f32[128,512], index: 6, kind: input, shape index: {}]   ;;  %s3331_s7 = inlined_call_operand.vmem [shape: f32[1,512], index: 7, kind: input, shape index: {}]   ;;  %s3332_s8 = inlined_call_operand.hbm [shape: f32[8,512], index: 8, kind: output, shape index: {}]  }
   0x1   :  { %14 = vsyncpa [#allocation10], 0 }
   0x2   :  { %15 = vsyncpa [#allocation13], 0  ;;  %s36_s29 = sshll.u32 %s3327_s3, 4  ;;  %s37_s29 = int_to_ptr.hbm [resolvable:$true] %s36_s29 }
   0x3   :  { %16 = vsyncpa [#allocation8], 0  ;;  %s2374_s30 = smov [#allocation9]   ;;  %s26_s12 = sshll.u32 %s3326_s2, 4  ;;  %s27_s12 = int_to_ptr.hbm [resolvable:$true] %s26_s12 }
   0x4   :  { %s38_s9 = sshll.u32 %s2374_s30, 4  ;;  %s2375_s13 = smov 512   ;;  %s39_s9 = int_to_ptr.vmem [resolvable:$true] %s38_s9 }
   0x5   :  { %s2376_s14 = smov 32   ;;  %s2377_s15 = smov [#allocation6]  }
   0x6   :  { %44 = dma.hbm_to_vmem [thread:$0]  %s37_s29, 1024, %s39_s9, [#allocation10], %s2375_s13, %s2375_s13, %s2376_s14  }
   0x7   :  { %s28_s16 = sshll.u32 %s2377_s15, 4  ;;  %s49_s19 = sshll.u32 %s3328_s4, 4  ;;  %s29_s16 = int_to_ptr.vmem [resolvable:$true] %s28_s16  ;;  %s50_s19 = int_to_ptr.hbm [resolvable:$true] %s49_s19 }
   0x8   :  { %31 = dma.hbm_to_vmem [thread:$0]  %s27_s12, 256, %s29_s16, [#allocation7]  }
   0x9   :  { %s64_s21 = sshll.u32 %s3330_s6, 4  ;;  %s2378_s22 = smov [#allocation11]   ;;  %s65_s21 = int_to_ptr.hbm [resolvable:$true] %s64_s21 }
   0xa   :  { %s51_s23 = sshll.u32 %s2378_s22, 4  ;;  %s2379_s2 = smov [#allocation12]   ;;  %s52_s23 = int_to_ptr.vmem [resolvable:$true] %s51_s23 }
   0xb   :  { %57 = dma.hbm_to_vmem [thread:$0]  %s50_s19, 8192, %s52_s23, [#allocation10], %s2375_s13, %s2375_s13, %s2376_s14  }
   0xc   :  { %s66_s24 = sshll.u32 %s2379_s2, 4  ;;  %s67_s24 = int_to_ptr.vmem [resolvable:$true] %s66_s24 }
   0xd   :  { %72 = dma.hbm_to_vmem [thread:$0]  %s65_s21, 8192, %s67_s24, [#allocation13], %s2375_s13, %s2375_s13, %s2376_s14  }
   0xe   :  { %2366 = dma.done.wait [#allocation7], 256  }
   0xf   :  { %2367 = vsyncadd [#allocation7], 4294967040 }
  0x10   :  { %2368 = dma.done.wait [#allocation10], 9216  }
  0x11   :  { %2369 = vsyncadd [#allocation10], 4294958080 }
  0x12   :  { %2370 = dma.done.wait [#allocation13], 8192  }
  0x13   :  { %2371 = vsyncadd [#allocation13], 4294959104  ;;  %v107_v0 = vld [vmem:[#allocation9 + $0x30] sm:$0xff]  ;;  %v108_v1 = vld [vmem:[#allocation9 + $0x38] sm:$0xff]  ;;  %vm109_vm0 = vcmask 130048   ;;  %v2380_v11 = vmov 0.0  }
  0x14   :  { %v103_v2 = vld [vmem:[#allocation9 + $0x10] sm:$0xff]  ;;  %167 = vmatpush.msra.mxu2 %v107_v0  ;;  %187 = vmatpush.msra.mxu3 %v108_v1  ;;  %v104_v3 = vld [vmem:[#allocation9 + $0x18] sm:$0xff]  ;;  %v100_v4 = vld [vmem:[%s3325_s1] sm:$0xff]  ;;  %95 = vst [vmem:[#allocation4] sm:$0x1] %v2380_v11  ;;  %vm206_vm1 = vcmask 1043456  }
  0x15   :  { %v106_v5 = vld [vmem:[#allocation9 + $0x28] sm:$0xff]  ;;  %v105_v6 = vld [vmem:[#allocation9 + $0x20] sm:$0xff]  ;;  %v99_v8 = vld [vmem:[#allocation6 + $0x8] sm:$0xff]  ;;  %96 = vst [vmem:[#allocation5] sm:$0x1] %v2380_v11  ;;  %vm202_vm2 = vcmask 31744  }
  0x16   :  { %147 = vmatpush.msra.mxu1 %v106_v5  ;;  %v102_v7 = vld [vmem:[#allocation9 + $0x8] sm:$0xff]  ;;  %168 = vmatpush.msra.mxu2 %v103_v2  ;;  %v101_v9 = vld [vmem:[#allocation9] sm:$0xff]  ;;  %197 = vst [vmem:[#allocation1 + $0x10] ss:$2 sm:$0xff] %v99_v8  ;;  %v98_v10 = vld [vmem:[#allocation6] sm:$0xff]  ;;  %vm472_vm3 = vcmask 1042434  }
  0x17   :  { %188 = vmatpush.msra.mxu3 %v104_v3  ;;  %2006 = vmatmul.msk.f32.vlgmr.msra.gmra.mxu2 %vm109_vm0, %v100_v4  ;;  %195 = vst [vmem:[#allocation1] ss:$2 sm:$0xff] %v98_v10  ;;  %v2446_v12 = vld [vmem:[#allocation11 + $0x1f0] sm:$0xff]  ;;  %v2448_v13 = vld [vmem:[#allocation11 + $0x1f8] sm:$0xff]  ;;  %v97_v14 = vld [vmem:[%s3324_s0] sm:$0xff]  ;;  %vm470_vm4 = vcmask 1040384  }
  0x18   :  { %2007 = vmatmul.msk.f32.vlgmr.msra.gmra.mxu3 %vm109_vm0, %v100_v4  ;;  %127 = vmatpush.msra.mxu0 %v105_v6  ;;  %v2455_v17 = vld [vmem:[#allocation11 + $0x1d0] sm:$0xff]  ;;  %v2457_v18 = vld [vmem:[#allocation11 + $0x1d8] sm:$0xff]  ;;  %v2470_v23 = vld [vmem:[#allocation11 + $0x1e8] sm:$0xff]  ;;  %vm474_vm5 = vcmask 1041408   ;;  %s1971_s9 = sshll.u32 %s3332_s8, 4  ;;  %s1972_s9 = int_to_ptr.hbm [resolvable:$true] %s1971_s9 }
  0x19   :  { %148 = vmatpush.msra.mxu1 %v102_v7  ;;  %v2463_v21 = vld [vmem:[#allocation11 + $0x1b0] sm:$0xff]  ;;  %v2465_v22 = vld [vmem:[#allocation11 + $0x1b8] sm:$0xff]  ;;  %v2479_v26 = vld [vmem:[#allocation11 + $0x1e0] sm:$0xff] }
  0x1a   :  { %2005 = vmatmul.msk.f32.vlgmr.msra.gmra.mxu1 %vm109_vm0, %v100_v4  ;;  %128 = vmatpush.msra.mxu0 %v101_v9  ;;  %v2472_v24 = vld [vmem:[#allocation11 + $0x190] sm:$0xff]  ;;  %v2477_v25 = vld [vmem:[#allocation11 + $0x198] sm:$0xff]  ;;  %v2483_v27 = vld [vmem:[#allocation11 + $0x1c8] sm:$0xff] }
  0x1b   :  { %2004 = vmatmul.msk.f32.vlgmr.msra.gmra.mxu0 %vm109_vm0, %v100_v4  ;;  %v2485_v28 = vld [vmem:[#allocation11 + $0x170] sm:$0xff]  ;;  %v2489_v29 = vld [vmem:[#allocation11 + $0x178] sm:$0xff]  ;;  %v2491_v30 = vld [vmem:[#allocation11 + $0x1c0] sm:$0xff] }
  0x1c   :  { %v2495_v31 = vld [vmem:[#allocation11 + $0x1a8] sm:$0xff]  ;;  %v2497_v32 = vld [vmem:[#allocation11 + $0x150] sm:$0xff]  ;;  %v2501_v33 = vld [vmem:[#allocation11 + $0x158] sm:$0xff] }
  0x1d   :  { %v200_v15 = vld.sshfl [vmem:[#allocation1 + $0x10] sm:$0xff pattern:$0x75316420]  ;;  %v201_v16 = vld.sshfl [vmem:[#allocation1 + $0x18] sm:$0xff pattern:$0x75316420] }
  0x1e   :  { %2012 = vmatpush.msk.msrb.mxu2 %vm206_vm1, %v200_v15  ;;  %2014 = vmatpush.msk.msrb.mxu3 %vm206_vm1, %v201_v16  ;;  %v199_v19 = vld.sshfl [vmem:[#allocation1 + $0x8] sm:$0xff pattern:$0x75316420]  ;;  %v198_v20 = vld.sshfl [vmem:[#allocation1] sm:$0xff pattern:$0x75316420] }
  0x1f   :  { %2013 = vmatmul.msk.f32.vlgmr.msrb.gmra.mxu2 %vm202_vm2, %v97_v14  ;;  %2010 = vmatpush.msk.msrb.mxu1 %vm206_vm1, %v199_v19  ;;  %v2503_v34 = vld [vmem:[#allocation11 + $0x1a0] sm:$0xff]  ;;  %v2507_v35 = vld [vmem:[#allocation11 + $0x188] sm:$0xff]  ;;  %v2509_v36 = vld [vmem:[#allocation11 + $0x130] sm:$0xff] }
  0x20   :  { %423 = vmatpush.msra.mxu2 %v2446_v12  ;;  %443 = vmatpush.msra.mxu3 %v2448_v13  ;;  %v2513_v37 = vld [vmem:[#allocation11 + $0x138] sm:$0xff]  ;;  %v2515_v38 = vld [vmem:[#allocation11 + $0x180] sm:$0xff]  ;;  %v2519_v39 = vld [vmem:[#allocation11 + $0x168] sm:$0xff] }
  0x21   :  { %2015 = vmatmul.msk.f32.vlgmr.msrb.gmra.mxu3 %vm202_vm2, %v97_v14  ;;  %2008 = vmatpush.msk.msrb.mxu0 %vm206_vm1, %v198_v20  ;;  %v2521_v40 = vld [vmem:[#allocation11 + $0x110] sm:$0xff]  ;;  %v2525_v41 = vld [vmem:[#allocation11 + $0x118] sm:$0xff]  ;;  %v2527_v42 = vld [vmem:[#allocation11 + $0x160] sm:$0xff] }
  0x22   :  { %424 = vmatpush.msra.mxu2 %v2455_v17  ;;  %444 = vmatpush.msra.mxu3 %v2457_v18  ;;  %v2531_v43 = vld [vmem:[#allocation11 + $0x148] sm:$0xff]  ;;  %v2533_v44 = vld [vmem:[#allocation11 + $0xf0] sm:$0xff]  ;;  %v2537_v45 = vld [vmem:[#allocation11 + $0xf8] sm:$0xff] }
  0x23   :  { %2011 = vmatmul.msk.f32.vlgmr.msrb.gmra.mxu1 %vm202_vm2, %v97_v14  ;;  %2009 = vmatmul.msk.f32.vlgmr.msrb.gmra.mxu0 %vm202_vm2, %v97_v14  ;;  %v2539_v46 = vld [vmem:[#allocation11 + $0x140] sm:$0xff]  ;;  %v2543_v47 = vld [vmem:[#allocation11 + $0x128] sm:$0xff]  ;;  %v2545_v48 = vld [vmem:[#allocation11 + $0xd0] sm:$0xff] }
  0x24   :  { %425 = vmatpush.msra.mxu2 %v2463_v21  ;;  %445 = vmatpush.msra.mxu3 %v2465_v22  ;;  %3445 = vst [vmem:[#allocation19_spill] sm:$0xff] %v2545_v48  ;;  %v2549_v49 = vld [vmem:[#allocation11 + $0xd8] sm:$0xff]  ;;  %v2551_v50 = vld [vmem:[#allocation11 + $0x120] sm:$0xff]  ;;  %v2555_v51 = vld [vmem:[#allocation11 + $0x108] sm:$0xff] }
  0x25   :  { %403 = vmatpush.msra.mxu1 %v2470_v23  ;;  %383 = vmatpush.msra.mxu0 %v2479_v26  ;;  %3446 = vst [vmem:[#allocation20_spill] sm:$0xff] %v2549_v49  ;;  %v2557_v52 = vld [vmem:[#allocation11 + $0xb0] sm:$0xff]  ;;  %v2561_v53 = vld [vmem:[#allocation11 + $0xb8] sm:$0xff]  ;;  %v2563_v54 = vld [vmem:[#allocation11 + $0x100] sm:$0xff] }
  0x26   :  { %426 = vmatpush.msra.mxu2 %v2472_v24  ;;  %446 = vmatpush.msra.mxu3 %v2477_v25  ;;  %3447 = vst [vmem:[#allocation21_spill] sm:$0xff] %v2557_v52  ;;  %v2567_v55 = vld [vmem:[#allocation11 + $0xe8] sm:$0xff]  ;;  %v2569_v56 = vld [vmem:[#allocation11 + $0x90] sm:$0xff]  ;;  %v2573_v57 = vld [vmem:[#allocation11 + $0x98] sm:$0xff] }
  0x27   :  { %404 = vmatpush.msra.mxu1 %v2483_v27  ;;  %384 = vmatpush.msra.mxu0 %v2491_v30  ;;  %3448 = vst [vmem:[#allocation22_spill] sm:$0xff] %v2561_v53  ;;  %v2575_v58 = vld [vmem:[#allocation11 + $0xe0] sm:$0xff]  ;;  %v2579_v59 = vld [vmem:[#allocation11 + $0xc8] sm:$0xff]  ;;  %v2581_v60 = vld [vmem:[#allocation11 + $0x70] sm:$0xff] }
  0x28   :  { %427 = vmatpush.msra.mxu2 %v2485_v28  ;;  %447 = vmatpush.msra.mxu3 %v2489_v29  ;;  %3449 = vst [vmem:[#allocation23_spill] sm:$0xff] %v2569_v56  ;;  %v2585_v61 = vld [vmem:[#allocation11 + $0x78] sm:$0xff]  ;;  %v2587_v62 = vld [vmem:[#allocation11 + $0xc0] sm:$0xff]  ;;  %v2591_v63 = vld [vmem:[#allocation11 + $0xa8] sm:$0xff] }
  0x29   :  { %405 = vmatpush.msra.mxu1 %v2495_v31  ;;  %385 = vmatpush.msra.mxu0 %v2503_v34  ;;  %3450 = vst [vmem:[#allocation24_spill] sm:$0xff] %v2573_v57  ;;  %v2593_v0 = vld [vmem:[#allocation11 + $0x50] sm:$0xff]  ;;  %v2597_v1 = vld [vmem:[#allocation11 + $0x58] sm:$0xff]  ;;  %v2599_v2 = vld [vmem:[#allocation11 + $0xa0] sm:$0xff] }
  0x2a   :  { %428 = vmatpush.msra.mxu2 %v2497_v32  ;;  %448 = vmatpush.msra.mxu3 %v2501_v33  ;;  %3451 = vst [vmem:[#allocation25_spill] sm:$0xff] %v2579_v59  ;;  %v2603_v3 = vld [vmem:[#allocation11 + $0x88] sm:$0xff]  ;;  %v2605_v4 = vld [vmem:[#allocation11 + $0x30] sm:$0xff]  ;;  %v2609_v5 = vld [vmem:[#allocation11 + $0x38] sm:$0xff] }
  0x2b   :  { %406 = vmatpush.msra.mxu1 %v2507_v35  ;;  %386 = vmatpush.msra.mxu0 %v2515_v38  ;;  %3452 = vst [vmem:[#allocation26_spill] sm:$0xff] %v2581_v60  ;;  %v2611_v6 = vld [vmem:[#allocation11 + $0x80] sm:$0xff]  ;;  %v2615_v7 = vld [vmem:[#allocation11 + $0x68] sm:$0xff]  ;;  %v2617_v8 = vld [vmem:[#allocation11 + $0x10] sm:$0xff] }
  0x2c   :  { %429 = vmatpush.msra.mxu2 %v2509_v36  ;;  %449 = vmatpush.msra.mxu3 %v2513_v37  ;;  %3453 = vst [vmem:[#allocation27_spill] sm:$0xff] %v2585_v61  ;;  %v2621_v9 = vld [vmem:[#allocation11 + $0x18] sm:$0xff]  ;;  %v377_v10 = vld [vmem:[#allocation4] sm:$0x1]  ;;  %v2625_v11 = vld [vmem:[#allocation11 + $0x60] sm:$0xff] }
  0x2d   :  { %407 = vmatpush.msra.mxu1 %v2519_v39  ;;  %387 = vmatpush.msra.mxu0 %v2527_v42  ;;  %3454 = vst [vmem:[#allocation28_spill] sm:$0xff] %v2591_v63  ;;  %v2629_v14 = vld [vmem:[#allocation11 + $0x48] sm:$0xff]  ;;  %v2632_v15 = vld [vmem:[#allocation11 + $0x40] sm:$0xff] }
  0x2e   :  { %430 = vmatpush.msra.mxu2 %v2521_v40  ;;  %450 = vmatpush.msra.mxu3 %v2525_v41  ;;  %3455 = vst [vmem:[#allocation29_spill] sm:$0xff] %v2593_v0  ;;  %v2635_v16 = vld [vmem:[#allocation11 + $0x28] sm:$0xff]  ;;  %v2638_v19 = vld [vmem:[#allocation11 + $0x20] sm:$0xff] }
  0x2f   :  { %408 = vmatpush.msra.mxu1 %v2531_v43  ;;  %388 = vmatpush.msra.mxu0 %v2539_v46  ;;  %3456 = vst [vmem:[#allocation30_spill] sm:$0xff] %v2597_v1  ;;  %v2642_v20 = vld [vmem:[#allocation11 + $0x8] sm:$0xff] }
  0x30   :  { %431 = vmatpush.msra.mxu2 %v2533_v44  ;;  %451 = vmatpush.msra.mxu3 %v2537_v45  ;;  %3457 = vst [vmem:[#allocation31_spill] sm:$0xff] %v2599_v2 }
  0x31   :  { %409 = vmatpush.msra.mxu1 %v2543_v47  ;;  %389 = vmatpush.msra.mxu0 %v2551_v50  ;;  %3458 = vst [vmem:[#allocation32_spill] sm:$0xff] %v2603_v3 }
  0x32   :  { %432 = vmatpush.msra.mxu2 %v2545_v48  ;;  %452 = vmatpush.msra.mxu3 %v2549_v49  ;;  %3459 = vst [vmem:[#allocation33_spill] sm:$0xff] %v2605_v4 }
  0x33   :  { %410 = vmatpush.msra.mxu1 %v2555_v51  ;;  %390 = vmatpush.msra.mxu0 %v2563_v54  ;;  %3460 = vst [vmem:[#allocation34_spill] sm:$0xff] %v2609_v5 }
  0x34   :  { %433 = vmatpush.msra.mxu2 %v2557_v52  ;;  %453 = vmatpush.msra.mxu3 %v2561_v53  ;;  %3461 = vst [vmem:[#allocation35_spill] sm:$0xff] %v2611_v6 }
  0x35   :  { %411 = vmatpush.msra.mxu1 %v2567_v55  ;;  %391 = vmatpush.msra.mxu0 %v2575_v58  ;;  %3462 = vst [vmem:[#allocation36_spill] sm:$0xff] %v2615_v7 }
  0x36   :  { %434 = vmatpush.msra.mxu2 %v2569_v56  ;;  %454 = vmatpush.msra.mxu3 %v2573_v57  ;;  %3463 = vst [vmem:[#allocation37_spill] sm:$0xff] %v2617_v8 }
  0x37   :  { %412 = vmatpush.msra.mxu1 %v2579_v59  ;;  %392 = vmatpush.msra.mxu0 %v2587_v62  ;;  %3464 = vst [vmem:[#allocation38_spill] sm:$0xff] %v2621_v9 }
  0x38   :  { %435 = vmatpush.msra.mxu2 %v2581_v60  ;;  %455 = vmatpush.msra.mxu3 %v2585_v61  ;;  %3465 = vst [vmem:[#allocation39_spill] sm:$0xff] %v2625_v11 }
  0x39   :  { %413 = vmatpush.msra.mxu1 %v2591_v63  ;;  %393 = vmatpush.msra.mxu0 %v2599_v2  ;;  %3466 = vst [vmem:[#allocation40_spill] sm:$0xff] %v2629_v14 }
  0x3a   :  { %436 = vmatpush.msra.mxu2 %v2593_v0  ;;  %456 = vmatpush.msra.mxu3 %v2597_v1  ;;  %3467 = vst [vmem:[#allocation41_spill] sm:$0xff] %v2632_v15 }
  0x3b   :  { %414 = vmatpush.msra.mxu1 %v2603_v3  ;;  %394 = vmatpush.msra.mxu0 %v2611_v6  ;;  %3468 = vst [vmem:[#allocation42_spill] sm:$0xff] %v2635_v16 }
  0x3c   :  { %437 = vmatpush.msra.mxu2 %v2605_v4  ;;  %457 = vmatpush.msra.mxu3 %v2609_v5  ;;  %3469 = vst [vmem:[#allocation43_spill] sm:$0xff] %v2638_v19 }
  0x3d   :  { %415 = vmatpush.msra.mxu1 %v2615_v7  ;;  %395 = vmatpush.msra.mxu0 %v2625_v11  ;;  %3470 = vst [vmem:[#allocation44_spill] sm:$0xff] %v2642_v20 }
  0x3e   :  { %438 = vmatpush.msra.mxu2 %v2617_v8  ;;  %458 = vmatpush.msra.mxu3 %v2621_v9  ;;  %v2646_v9 = vld [vmem:[#allocation11] sm:$0xff] }
  0x3f   :  { %439 = vmatmul.f32.vlgmr.msra.gmra.mxu2 %v377_v10  ;;  %459 = vmatmul.f32.vlgmr.msra.gmra.mxu3 %v377_v10  ;;  %3471 = vst [vmem:[#allocation45_spill] sm:$0xff] %v2646_v9 }
  0x40   :  { %416 = vmatpush.msra.mxu1 %v2629_v14  ;;  %598 = vmatpush.msrb.mxu2 %v2446_v12 }
  0x41   :  { %396 = vmatpush.msra.mxu0 %v2632_v15  ;;  %618 = vmatpush.msrb.mxu3 %v2448_v13 }
  0x42   :  { %417 = vmatpush.msra.mxu1 %v2635_v16  ;;  %599 = vmatpush.msrb.mxu2 %v2455_v17 }
  0x43   :  { %397 = vmatpush.msra.mxu0 %v2638_v19  ;;  %619 = vmatpush.msrb.mxu3 %v2457_v18 }
  0x44   :  { %418 = vmatpush.msra.mxu1 %v2642_v20  ;;  %600 = vmatpush.msrb.mxu2 %v2463_v21 }
  0x45   :  { %419 = vmatmul.f32.vlgmr.msra.gmra.mxu1 %v377_v10  ;;  %398 = vmatpush.msra.mxu0 %v2646_v9 }
  0x46   :  { %399 = vmatmul.f32.vlgmr.msra.gmra.mxu0 %v377_v10  ;;  %578 = vmatpush.msrb.mxu1 %v2470_v23  ;;  %v3472_v10 = vld [vmem:[#allocation38_spill] sm:$0xff] }
  0x47   :  { %558 = vmatpush.msrb.mxu0 %v2479_v26  ;;  %620 = vmatpush.msrb.mxu3 %v2465_v22 }
  0x48   :  { %579 = vmatpush.msrb.mxu1 %v2483_v27  ;;  %601 = vmatpush.msrb.mxu2 %v2472_v24 }
  0x49   :  { %559 = vmatpush.msrb.mxu0 %v2491_v30  ;;  %621 = vmatpush.msrb.mxu3 %v2477_v25 }
  0x4a   :  { %580 = vmatpush.msrb.mxu1 %v2495_v31  ;;  %602 = vmatpush.msrb.mxu2 %v2485_v28 }
  0x4b   :  { %560 = vmatpush.msrb.mxu0 %v2503_v34  ;;  %622 = vmatpush.msrb.mxu3 %v2489_v29 }
  0x4c   :  { %581 = vmatpush.msrb.mxu1 %v2507_v35  ;;  %603 = vmatpush.msrb.mxu2 %v2497_v32 }
  0x4d   :  { %561 = vmatpush.msrb.mxu0 %v2515_v38  ;;  %623 = vmatpush.msrb.mxu3 %v2501_v33 }
  0x4e   :  { %582 = vmatpush.msrb.mxu1 %v2519_v39  ;;  %604 = vmatpush.msrb.mxu2 %v2509_v36 }
  0x4f   :  { %562 = vmatpush.msrb.mxu0 %v2527_v42  ;;  %624 = vmatpush.msrb.mxu3 %v2513_v37 }
  0x50   :  { %583 = vmatpush.msrb.mxu1 %v2531_v43  ;;  %605 = vmatpush.msrb.mxu2 %v2521_v40 }
  0x51   :  { %563 = vmatpush.msrb.mxu0 %v2539_v46  ;;  %625 = vmatpush.msrb.mxu3 %v2525_v41 }
  0x52   :  { %584 = vmatpush.msrb.mxu1 %v2543_v47  ;;  %606 = vmatpush.msrb.mxu2 %v2533_v44 }
  0x53   :  { %564 = vmatpush.msrb.mxu0 %v2551_v50  ;;  %626 = vmatpush.msrb.mxu3 %v2537_v45 }
  0x54   :  { %585 = vmatpush.msrb.mxu1 %v2555_v51  ;;  %607 = vmatpush.msrb.mxu2 %v2545_v48 }
  0x55   :  { %565 = vmatpush.msrb.mxu0 %v2563_v54  ;;  %627 = vmatpush.msrb.mxu3 %v2549_v49 }
  0x56   :  { %586 = vmatpush.msrb.mxu1 %v2567_v55  ;;  %608 = vmatpush.msrb.mxu2 %v2557_v52 }
  0x57   :  { %566 = vmatpush.msrb.mxu0 %v2575_v58  ;;  %628 = vmatpush.msrb.mxu3 %v2561_v53 }
  0x58   :  { %587 = vmatpush.msrb.mxu1 %v2579_v59  ;;  %609 = vmatpush.msrb.mxu2 %v2569_v56 }
  0x59   :  { %567 = vmatpush.msrb.mxu0 %v2587_v62  ;;  %629 = vmatpush.msrb.mxu3 %v2573_v57 }
  0x5a   :  { %588 = vmatpush.msrb.mxu1 %v2591_v63  ;;  %610 = vmatpush.msrb.mxu2 %v2581_v60 }
  0x5b   :  { %568 = vmatpush.msrb.mxu0 %v2599_v2  ;;  %630 = vmatpush.msrb.mxu3 %v2585_v61 }
  0x5c   :  { %589 = vmatpush.msrb.mxu1 %v2603_v3  ;;  %611 = vmatpush.msrb.mxu2 %v2593_v0 }
  0x5d   :  { %569 = vmatpush.msrb.mxu0 %v2611_v6  ;;  %631 = vmatpush.msrb.mxu3 %v2597_v1 }
  0x5e   :  { %590 = vmatpush.msrb.mxu1 %v2615_v7  ;;  %612 = vmatpush.msrb.mxu2 %v2605_v4 }
  0x5f   :  { %570 = vmatpush.msrb.mxu0 %v2625_v11  ;;  %632 = vmatpush.msrb.mxu3 %v2609_v5 }
  0x60   :  { %591 = vmatpush.msrb.mxu1 %v2629_v14  ;;  %613 = vmatpush.msrb.mxu2 %v2617_v8 }
  0x61   :  { %571 = vmatpush.msrb.mxu0 %v2632_v15  ;;  %633 = vmatpush.msrb.mxu3 %v3472_v10 }
  0x62   :  { %592 = vmatpush.msrb.mxu1 %v2635_v16  ;;  %770 = vmatpush.msra.mxu2 %v2446_v12 }
  0x63   :  { %572 = vmatpush.msrb.mxu0 %v2638_v19  ;;  %790 = vmatpush.msra.mxu3 %v2448_v13 }
  0x64   :  { %593 = vmatpush.msrb.mxu1 %v2642_v20  ;;  %771 = vmatpush.msra.mxu2 %v2455_v17 }
  0x65   :  { %573 = vmatpush.msrb.mxu0 %v2646_v9  ;;  %791 = vmatpush.msra.mxu3 %v2457_v18 }
  0x66   :  { %750 = vmatpush.msra.mxu1 %v2470_v23  ;;  %772 = vmatpush.msra.mxu2 %v2463_v21 }
  0x67   :  { %730 = vmatpush.msra.mxu0 %v2479_v26  ;;  %792 = vmatpush.msra.mxu3 %v2465_v22 }
  0x68   :  { %751 = vmatpush.msra.mxu1 %v2483_v27  ;;  %773 = vmatpush.msra.mxu2 %v2472_v24 }
  0x69   :  { %731 = vmatpush.msra.mxu0 %v2491_v30  ;;  %793 = vmatpush.msra.mxu3 %v2477_v25 }
  0x6a   :  { %752 = vmatpush.msra.mxu1 %v2495_v31  ;;  %774 = vmatpush.msra.mxu2 %v2485_v28 }
  0x6b   :  { %732 = vmatpush.msra.mxu0 %v2503_v34  ;;  %794 = vmatpush.msra.mxu3 %v2489_v29 }
  0x6c   :  { %753 = vmatpush.msra.mxu1 %v2507_v35  ;;  %775 = vmatpush.msra.mxu2 %v2497_v32 }
  0x6d   :  { %733 = vmatpush.msra.mxu0 %v2515_v38  ;;  %795 = vmatpush.msra.mxu3 %v2501_v33 }
  0x6e   :  { %754 = vmatpush.msra.mxu1 %v2519_v39  ;;  %776 = vmatpush.msra.mxu2 %v2509_v36 }
  0x6f   :  { %734 = vmatpush.msra.mxu0 %v2527_v42  ;;  %796 = vmatpush.msra.mxu3 %v2513_v37 }
  0x70   :  { %755 = vmatpush.msra.mxu1 %v2531_v43  ;;  %777 = vmatpush.msra.mxu2 %v2521_v40 }
  0x71   :  { %735 = vmatpush.msra.mxu0 %v2539_v46  ;;  %797 = vmatpush.msra.mxu3 %v2525_v41 }
  0x72   :  { %756 = vmatpush.msra.mxu1 %v2543_v47  ;;  %778 = vmatpush.msra.mxu2 %v2533_v44 }
  0x73   :  { %736 = vmatpush.msra.mxu0 %v2551_v50  ;;  %798 = vmatpush.msra.mxu3 %v2537_v45 }
  0x74   :  { %757 = vmatpush.msra.mxu1 %v2555_v51  ;;  %779 = vmatpush.msra.mxu2 %v2545_v48 }
  0x75   :  { %737 = vmatpush.msra.mxu0 %v2563_v54  ;;  %799 = vmatpush.msra.mxu3 %v2549_v49 }
  0x76   :  { %758 = vmatpush.msra.mxu1 %v2567_v55  ;;  %780 = vmatpush.msra.mxu2 %v2557_v52 }
  0x77   :  { %738 = vmatpush.msra.mxu0 %v2575_v58  ;;  %800 = vmatpush.msra.mxu3 %v2561_v53 }
  0x78   :  { %759 = vmatpush.msra.mxu1 %v2579_v59  ;;  %781 = vmatpush.msra.mxu2 %v2569_v56 }
  0x79   :  { %739 = vmatpush.msra.mxu0 %v2587_v62  ;;  %801 = vmatpush.msra.mxu3 %v2573_v57 }
  0x7a   :  { %760 = vmatpush.msra.mxu1 %v2591_v63  ;;  %782 = vmatpush.msra.mxu2 %v2581_v60 }
  0x7b   :  { %740 = vmatpush.msra.mxu0 %v2599_v2  ;;  %802 = vmatpush.msra.mxu3 %v2585_v61 }
  0x7c   :  { %761 = vmatpush.msra.mxu1 %v2603_v3  ;;  %783 = vmatpush.msra.mxu2 %v2593_v0 }
  0x7d   :  { %741 = vmatpush.msra.mxu0 %v2611_v6  ;;  %803 = vmatpush.msra.mxu3 %v2597_v1 }
  0x7e   :  { %762 = vmatpush.msra.mxu1 %v2615_v7  ;;  %784 = vmatpush.msra.mxu2 %v2605_v4 }
  0x7f   :  { %742 = vmatpush.msra.mxu0 %v2625_v11  ;;  %804 = vmatpush.msra.mxu3 %v2609_v5  ;;  %v295_v5 = vld [vmem:[%s3329_s5] sm:$0xf] }
  0x80   :  { %763 = vmatpush.msra.mxu1 %v2629_v14  ;;  %785 = vmatpush.msra.mxu2 %v2617_v8  ;;  %v299_v7 = vperm.slane %v295_v5, 2 }
  0x81   :  { %743 = vmatpush.msra.mxu0 %v2632_v15  ;;  %805 = vmatpush.msra.mxu3 %v3472_v10  ;;  %v298_v15 = vperm.slane %v295_v5, 1  ;;  %v300_v10 = vperm.slane %v295_v5, 3 }
  0x82   :  { %764 = vmatpush.msra.mxu1 %v2635_v16  ;;  %v297_v16 = vperm.slane %v295_v5, 0 }
  0x83   :  { %744 = vmatpush.msra.mxu0 %v2638_v19 }
  0x84   :  { %765 = vmatpush.msra.mxu1 %v2642_v20 }
  0x85   :  { %745 = vmatpush.msra.mxu0 %v2646_v9 }
  0x97   :  { %v150_v1 = vpop.f32.mrf.mxu1 }
  0x98   :  { %v130_v0 = vpop.f32.mrf.mxu0 }
  0x9a   :  { %v170_v14 = vpop.f32.mrf.mxu2 }
  0x9b   :  { %v190_v4 = vpop.f32.mrf.mxu3 }
  0xa0   :  { %v252_v61 = vpop.f32.mrf.mxu1  ;;  %v232_v8 = vpop.f32.mrf.mxu0 }
  0xa1   :  { %v253_v60 = vadd.f32 %v252_v61, %v150_v1  ;;  %v233_v19 = vadd.f32 %v232_v8, %v130_v0 }
  0xa2   :  { %v272_v11 = vpop.f32.mrf.mxu2 }
  0xa3   :  { %v306_v57 = vadd.f32 %v298_v15, %v253_v60  ;;  %v305_v9 = vadd.f32 %v297_v16, %v233_v19  ;;  %v273_v56 = vadd.f32 %v272_v11, %v170_v14 }
  0xa4   :  { %v292_v20 = vpop.f32.mrf.mxu3 }
  0xa5   :  { %v293_v3 = vadd.f32 %v292_v20, %v190_v4  ;;  %310 = vst [vmem:[#allocation2 + $0x8] sm:$0xff] %v306_v57  ;;  %v307_v6 = vadd.f32 %v299_v7, %v273_v56 }
  0xa6   :  { %309 = vst [vmem:[#allocation2] sm:$0xff] %v305_v9 }
  0xa7   :  { %v308_v53 = vadd.f32 %v300_v10, %v293_v3  ;;  %311 = vst [vmem:[#allocation2 + $0x10] sm:$0xff] %v307_v6 }
  0xa9   :  { %312 = vst [vmem:[#allocation2 + $0x18] sm:$0xff] %v308_v53 }
  0xb0   :  { %v382_v57 = vld [vmem:[#allocation2] ss:$8 sm:$0xf] }
  0xc2   :  { %v440_v52 = vpop.f32.mrf.mxu2  ;;  %v420_v63 = vpop.f32.mrf.mxu1 }
  0xc3   :  { %v468_v2 = vrot.slane %v440_v52, 6  ;;  %v460_v49 = vpop.f32.mrf.mxu3  ;;  %v467_v61 = vrot.slane %v420_v63, 7  ;;  %v400_v1 = vpop.f32.mrf.mxu0 }
  0xc4   :  { %v469_v0 = vrot.slane %v460_v49, 5 }
  0xc5   :  { %v471_v4 = vsel %vm470_vm4, %v400_v1, %v467_v61 }
  0xc6   :  { %v473_v60 = vsel %vm472_vm3, %v468_v2, %v469_v0 }
  0xc7   :  { %v475_v56 = vsel %vm474_vm5, %v471_v4, %v473_v60 }
  0xc8   :  { %v477_v3 = vadd.f32 %v475_v56, %v382_v57 }
  0xca   :  { %v2016_v5 = vmul.f32 -1.442695, %v477_v3  ;;  %v498_v53 = vrot.slane %v477_v3, 1  ;;  %v522_v6 = vrot.slane %v477_v3, 3  ;;  %v519_v20 = vrot.slane %v477_v3, 2 }
  0xcc   :  { %2048 = vpow2.f32 %v2016_v5  ;;  %v2017_v52 = vmul.f32 -1.442695, %v498_v53  ;;  %v2018_v7 = vmul.f32 -1.442695, %v522_v6 }
  0xce   :  { %2050 = vpow2.f32 %v2017_v52 }
  0xcf   :  { %2052 = vpow2.f32 %v2018_v7 }
  0xd2   :  { %v2049_v63 = vpop.eup %2048 }
  0xd3   :  { %v481_v49 = vadd.f32 1.0, %v2049_v63 }
  0xd4   :  { %v2051_v8 = vpop.eup %2050 }
  0xd5   :  { %v2053_v9 = vpop.eup %2052  ;;  %2054 = vrcp.f32 %v481_v49  ;;  %v503_v2 = vadd.f32 1.0, %v2051_v8  ;;  %v493_v1 = vand.u32 2147483648, %v481_v49  ;;  %v491_v4 = vand.u32 2147483647, %v481_v49 }
  0xd6   :  { %v527_v11 = vadd.f32 1.0, %v2053_v9  ;;  %vm487_vm7 = vweird.f32 %v481_v49  ;;  %v378_v9 = vld [vmem:[#allocation5] sm:$0x1] }
  0xd7   :  { %2056 = vrcp.f32 %v503_v2  ;;  %v515_v5 = vand.u32 2147483648, %v503_v2  ;;  %v513_v6 = vand.u32 2147483647, %v503_v2  ;;  %v494_v7 = vor.u32 1.1754944e-38, %v493_v1 }
  0xd8   :  { %2058 = vrcp.f32 %v527_v11  ;;  %vm492_vm10 = vcmp.eq.f32.partialorder %v491_v4, 8.507059e+37  ;;  %vm509_vm11 = vweird.f32 %v503_v2  ;;  %vm533_vm15 = vweird.f32 %v527_v11 }
  0xd9   :  { %2060 = vtanh.f32 %v519_v20  ;;  %vm514_vm13 = vcmp.eq.f32.partialorder %v513_v6, 8.507059e+37  ;;  %v3495_v6 = vld [vmem:[#allocation33_spill] sm:$0xff] }
  0xdb   :  { %v2055_v14 = vpop.eup %2054 }
  0xdc   :  { %v483_v15 = vmul.f32 %v2055_v14, %v481_v49  ;;  %vm488_vm6 = vweird.f32 %v2055_v14 }
  0xdd   :  { %v2057_v16 = vpop.eup %2056  ;;  %vm489_vm8 = vmor %vm487_vm7, %vm488_vm6 }
  0xde   :  { %v484_v19 = vsub.f32 1.0, %v483_v15  ;;  %v2059_v10 = vpop.eup %2058  ;;  %v505_v61 = vmul.f32 %v2057_v16, %v503_v2  ;;  %vm510_vm9 = vweird.f32 %v2057_v16  ;;  %v516_v15 = vor.u32 1.1754944e-38, %v515_v5  ;;  %v3493_v5 = vld [vmem:[#allocation43_spill] sm:$0xff] }
  0xdf   :  { %v529_v60 = vmul.f32 %v2059_v10, %v527_v11  ;;  %vm511_vm12 = vmor %vm509_vm11, %vm510_vm9  ;;  %vm534_vm14 = vweird.f32 %v2059_v10  ;;  %v537_v2 = vand.u32 2147483647, %v527_v11 }
  0xe0   :  { %v485_v0 = vmul.f32 %v2055_v14, %v484_v19  ;;  %v506_v57 = vsub.f32 1.0, %v505_v61  ;;  %v2061_v61 = vpop.eup %2060  ;;  %vm535_vm0 = vmor %vm533_vm15, %vm534_vm14 }
  0xe1   :  { %v530_v63 = vsub.f32 1.0, %v529_v60  ;;  %vm538_vm2 = vcmp.eq.f32.partialorder %v537_v2, 8.507059e+37 }
  0xe2   :  { %v486_v56 = vadd.f32 %v2055_v14, %v485_v0  ;;  %v507_v53 = vmul.f32 %v2057_v16, %v506_v57 }
  0xe3   :  { %v531_v0 = vmul.f32 %v2059_v10, %v530_v63  ;;  %v3498_v63 = vld [vmem:[#allocation44_spill] sm:$0xff] }
  0xe4   :  { %v490_v52 = vsel %vm489_vm8, %v2055_v14, %v486_v56  ;;  %v508_v3 = vadd.f32 %v2057_v16, %v507_v53  ;;  %v539_v14 = vand.u32 2147483648, %v527_v11  ;;  %v3491_v11 = vld [vmem:[#allocation29_spill] sm:$0xff]  ;;  %v3494_v53 = vld [vmem:[#allocation42_spill] sm:$0xff] }
  0xe5   :  { %v495_v8 = vsel %vm492_vm10, %v494_v7, %v490_v52  ;;  %v532_v59 = vadd.f32 %v2059_v10, %v531_v0  ;;  %v3496_v52 = vld [vmem:[#allocation34_spill] sm:$0xff]  ;;  %v3497_v7 = vld [vmem:[#allocation45_spill] sm:$0xff] }
  0xe6   :  { %v512_v19 = vsel %vm511_vm12, %v2057_v16, %v508_v3  ;;  %v544_v20 = vmul.f32 %v2061_v61, %v495_v8  ;;  %v540_v60 = vor.u32 1.1754944e-38, %v539_v14  ;;  %v3499_v3 = vld [vmem:[#allocation37_spill] sm:$0xff]  ;;  %v3500_v8 = vld [vmem:[#allocation38_spill] sm:$0xff] }
  0xe7   :  { %v517_v49 = vsel %vm514_vm13, %v516_v15, %v512_v19  ;;  %v536_v1 = vsel %vm535_vm0, %v2059_v10, %v532_v59  ;;  %v3490_v59 = vld [vmem:[#allocation40_spill] sm:$0xff]  ;;  %v3492_v10 = vld [vmem:[#allocation30_spill] sm:$0xff] }
  0xe8   :  { %v543_v48 = vmul.f32 %v517_v49, %v378_v9  ;;  %v541_v4 = vsel %vm538_vm2, %v540_v60, %v536_v1  ;;  %v557_v1 = vld [vmem:[#allocation2 + $0x1] ss:$8 sm:$0xf] }
  0xea   :  { %v2783_v57 = vadd.f32 %v544_v20, %v543_v48  ;;  %v3489_v48 = vld [vmem:[#allocation41_spill] sm:$0xff] }
  0xec   :  { %2062 = vtanh.f32 %v2783_v57 }
  0xf2   :  { %v2063_v16 = vpop.eup %2062 }
  0xf3   :  { %v2786_v56 = vmul.f32 %v2063_v16, %v541_v4 }
  0xf5   :  { %3473 = vst [vmem:[#allocation46_spill] sm:$0xff] %v2786_v56  ;;  %574 = vmatmul.f32.vlgmr.msrb.gmra.mxu0 %v2786_v56  ;;  %594 = vmatmul.f32.vlgmr.msrb.gmra.mxu1 %v2786_v56 }
  0xf6   :  { %614 = vmatmul.f32.vlgmr.msrb.gmra.mxu2 %v2786_v56  ;;  %634 = vmatmul.f32.vlgmr.msrb.gmra.mxu3 %v2786_v56 }
  0xf7   :  { %902 = vmatpush.msrb.mxu0 %v2479_v26  ;;  %922 = vmatpush.msrb.mxu1 %v2470_v23  ;;  %v3480_v23 = vld [vmem:[#allocation22_spill] sm:$0xff] }
  0xf8   :  { %942 = vmatpush.msrb.mxu2 %v2446_v12  ;;  %962 = vmatpush.msrb.mxu3 %v2448_v13  ;;  %v3474_v12 = vld [vmem:[#allocation25_spill] sm:$0xff]  ;;  %v3475_v13 = vld [vmem:[#allocation19_spill] sm:$0xff] }
  0xf9   :  { %903 = vmatpush.msrb.mxu0 %v2491_v30  ;;  %923 = vmatpush.msrb.mxu1 %v2483_v27 }
  0xfa   :  { %943 = vmatpush.msrb.mxu2 %v2455_v17  ;;  %963 = vmatpush.msrb.mxu3 %v2457_v18  ;;  %v3476_v17 = vld [vmem:[#allocation20_spill] sm:$0xff]  ;;  %v3477_v18 = vld [vmem:[#allocation31_spill] sm:$0xff] }
  0xfb   :  { %904 = vmatpush.msrb.mxu0 %v2503_v34  ;;  %924 = vmatpush.msrb.mxu1 %v2495_v31 }
  0xfc   :  { %944 = vmatpush.msrb.mxu2 %v2463_v21  ;;  %964 = vmatpush.msrb.mxu3 %v2465_v22  ;;  %v3478_v21 = vld [vmem:[#allocation28_spill] sm:$0xff]  ;;  %v3479_v22 = vld [vmem:[#allocation21_spill] sm:$0xff] }
  0xfd   :  { %905 = vmatpush.msrb.mxu0 %v2515_v38  ;;  %925 = vmatpush.msrb.mxu1 %v2507_v35 }
  0xfe   :  { %945 = vmatpush.msrb.mxu2 %v2472_v24  ;;  %965 = vmatpush.msrb.mxu3 %v2477_v25  ;;  %v3481_v24 = vld [vmem:[#allocation35_spill] sm:$0xff]  ;;  %v3482_v25 = vld [vmem:[#allocation32_spill] sm:$0xff] }
  0xff   :  { %906 = vmatpush.msrb.mxu0 %v2527_v42  ;;  %926 = vmatpush.msrb.mxu1 %v2519_v39 }
 0x100   :  { %946 = vmatpush.msrb.mxu2 %v2485_v28  ;;  %966 = vmatpush.msrb.mxu3 %v2489_v29  ;;  %v3483_v28 = vld [vmem:[#allocation23_spill] sm:$0xff]  ;;  %v3484_v29 = vld [vmem:[#allocation24_spill] sm:$0xff] }
 0x101   :  { %907 = vmatpush.msrb.mxu0 %v2539_v46  ;;  %927 = vmatpush.msrb.mxu1 %v2531_v43 }
 0x102   :  { %947 = vmatpush.msrb.mxu2 %v2497_v32  ;;  %967 = vmatpush.msrb.mxu3 %v2501_v33  ;;  %v3485_v32 = vld [vmem:[#allocation39_spill] sm:$0xff]  ;;  %v3486_v33 = vld [vmem:[#allocation36_spill] sm:$0xff] }
 0x103   :  { %908 = vmatpush.msrb.mxu0 %v2551_v50  ;;  %928 = vmatpush.msrb.mxu1 %v2543_v47 }
 0x104   :  { %948 = vmatpush.msrb.mxu2 %v2509_v36  ;;  %968 = vmatpush.msrb.mxu3 %v2513_v37  ;;  %v3487_v36 = vld [vmem:[#allocation26_spill] sm:$0xff]  ;;  %v3488_v37 = vld [vmem:[#allocation27_spill] sm:$0xff] }
 0x105   :  { %909 = vmatpush.msrb.mxu0 %v2563_v54  ;;  %929 = vmatpush.msrb.mxu1 %v2555_v51 }
 0x106   :  { %949 = vmatpush.msrb.mxu2 %v2521_v40  ;;  %969 = vmatpush.msrb.mxu3 %v2525_v41 }
 0x107   :  { %910 = vmatpush.msrb.mxu0 %v2575_v58  ;;  %930 = vmatpush.msrb.mxu1 %v2567_v55 }
 0x108   :  { %950 = vmatpush.msrb.mxu2 %v2533_v44  ;;  %970 = vmatpush.msrb.mxu3 %v2537_v45 }
 0x109   :  { %911 = vmatpush.msrb.mxu0 %v2587_v62  ;;  %931 = vmatpush.msrb.mxu1 %v3474_v12 }
 0x10a   :  { %951 = vmatpush.msrb.mxu2 %v3475_v13  ;;  %971 = vmatpush.msrb.mxu3 %v3476_v17 }
 0x10b   :  { %912 = vmatpush.msrb.mxu0 %v3477_v18  ;;  %932 = vmatpush.msrb.mxu1 %v3478_v21 }
 0x10c   :  { %952 = vmatpush.msrb.mxu2 %v3479_v22  ;;  %972 = vmatpush.msrb.mxu3 %v3480_v23 }
 0x10d   :  { %913 = vmatpush.msrb.mxu0 %v3481_v24  ;;  %933 = vmatpush.msrb.mxu1 %v3482_v25 }
 0x10e   :  { %953 = vmatpush.msrb.mxu2 %v3483_v28  ;;  %973 = vmatpush.msrb.mxu3 %v3484_v29 }
 0x10f   :  { %914 = vmatpush.msrb.mxu0 %v3485_v32  ;;  %934 = vmatpush.msrb.mxu1 %v3486_v33 }
 0x110   :  { %954 = vmatpush.msrb.mxu2 %v3487_v36  ;;  %974 = vmatpush.msrb.mxu3 %v3488_v37 }
 0x111   :  { %915 = vmatpush.msrb.mxu0 %v3489_v48  ;;  %935 = vmatpush.msrb.mxu1 %v3490_v59 }
 0x112   :  { %955 = vmatpush.msrb.mxu2 %v3491_v11  ;;  %975 = vmatpush.msrb.mxu3 %v3492_v10 }
 0x113   :  { %916 = vmatpush.msrb.mxu0 %v3493_v5  ;;  %936 = vmatpush.msrb.mxu1 %v3494_v53 }
 0x114   :  { %956 = vmatpush.msrb.mxu2 %v3495_v6  ;;  %976 = vmatpush.msrb.mxu3 %v3496_v52 }
 0x115   :  { %917 = vmatpush.msrb.mxu0 %v3497_v7  ;;  %937 = vmatpush.msrb.mxu1 %v3498_v63 }
 0x116   :  { %957 = vmatpush.msrb.mxu2 %v3499_v3  ;;  %977 = vmatpush.msrb.mxu3 %v3500_v8 }
 0x172   :  { %v595_v9 = vpop.f32.mrf.mxu1  ;;  %v575_v20 = vpop.f32.mrf.mxu0 }
 0x173   :  { %v642_v15 = vrot.slane %v595_v9, 7 }
 0x175   :  { %v645_v14 = vsel %vm470_vm4, %v575_v20, %v642_v15 }
 0x179   :  { %v615_v19 = vpop.f32.mrf.mxu2  ;;  %v635_v61 = vpop.f32.mrf.mxu3 }
 0x17a   :  { %v643_v49 = vrot.slane %v615_v19, 6  ;;  %v644_v0 = vrot.slane %v635_v61, 5 }
 0x17c   :  { %v646_v2 = vsel %vm472_vm3, %v643_v49, %v644_v0 }
 0x17d   :  { %v647_v60 = vsel %vm474_vm5, %v645_v14, %v646_v2 }
 0x17e   :  { %v649_v16 = vadd.f32 %v647_v60, %v557_v1 }
 0x180   :  { %v2019_v4 = vmul.f32 -1.442695, %v649_v16  ;;  %v670_v56 = vrot.slane %v649_v16, 1  ;;  %v694_v3 = vrot.slane %v649_v16, 3  ;;  %v691_v2 = vrot.slane %v649_v16, 2 }
 0x182   :  { %2064 = vpow2.f32 %v2019_v4  ;;  %v2020_v8 = vmul.f32 -1.442695, %v670_v56  ;;  %v2021_v63 = vmul.f32 -1.442695, %v694_v3 }
 0x184   :  { %2066 = vpow2.f32 %v2020_v8 }
 0x185   :  { %2068 = vpow2.f32 %v2021_v63 }
 0x188   :  { %v2065_v9 = vpop.eup %2064 }
 0x189   :  { %v653_v19 = vadd.f32 1.0, %v2065_v9 }
 0x18a   :  { %v2067_v61 = vpop.eup %2066 }
 0x18b   :  { %v2069_v7 = vpop.eup %2068  ;;  %2070 = vrcp.f32 %v653_v19  ;;  %v675_v15 = vadd.f32 1.0, %v2067_v61  ;;  %v665_v56 = vand.u32 2147483648, %v653_v19  ;;  %v663_v9 = vand.u32 2147483647, %v653_v19 }
 0x18c   :  { %v699_v20 = vadd.f32 1.0, %v2069_v7  ;;  %vm659_vm7 = vweird.f32 %v653_v19 }
 0x18d   :  { %2072 = vrcp.f32 %v675_v15  ;;  %v687_v52 = vand.u32 2147483648, %v675_v15  ;;  %v685_v6 = vand.u32 2147483647, %v675_v15  ;;  %v666_v53 = vor.u32 1.1754944e-38, %v665_v56 }
 0x18e   :  { %2074 = vrcp.f32 %v699_v20  ;;  %vm664_vm10 = vcmp.eq.f32.partialorder %v663_v9, 8.507059e+37  ;;  %vm681_vm11 = vweird.f32 %v675_v15  ;;  %v711_v56 = vand.u32 2147483648, %v699_v20 }
 0x18f   :  { %2076 = vtanh.f32 %v691_v2  ;;  %vm686_vm13 = vcmp.eq.f32.partialorder %v685_v6, 8.507059e+37  ;;  %vm705_vm15 = vweird.f32 %v699_v20 }
 0x191   :  { %v2071_v49 = vpop.eup %2070 }
 0x192   :  { %v655_v0 = vmul.f32 %v2071_v49, %v653_v19  ;;  %vm660_vm6 = vweird.f32 %v2071_v49 }
 0x193   :  { %v2073_v14 = vpop.eup %2072  ;;  %vm661_vm9 = vmor %vm659_vm7, %vm660_vm6 }
 0x194   :  { %v2075_v1 = vpop.eup %2074  ;;  %v656_v60 = vsub.f32 1.0, %v655_v0  ;;  %v677_v4 = vmul.f32 %v2073_v14, %v675_v15  ;;  %vm682_vm8 = vweird.f32 %v2073_v14  ;;  %v709_v15 = vand.u32 2147483647, %v699_v20 }
 0x195   :  { %v701_v3 = vmul.f32 %v2075_v1, %v699_v20  ;;  %vm683_vm12 = vmor %vm681_vm11, %vm682_vm8  ;;  %v2077_v11 = vpop.eup %2076  ;;  %vm706_vm14 = vweird.f32 %v2075_v1  ;;  %v2892_v20 = vld [vmem:[#allocation11 + $0x1b8] sm:$0xff] }
 0x196   :  { %v678_v8 = vsub.f32 1.0, %v677_v4  ;;  %v657_v63 = vmul.f32 %v2071_v49, %v656_v60  ;;  %v688_v4 = vor.u32 1.1754944e-38, %v687_v52  ;;  %vm707_vm0 = vmor %vm705_vm15, %vm706_vm14  ;;  %v712_v52 = vor.u32 1.1754944e-38, %v711_v56 }
 0x197   :  { %v702_v5 = vsub.f32 1.0, %v701_v3  ;;  %vm710_vm2 = vcmp.eq.f32.partialorder %v709_v15, 8.507059e+37 }
 0x198   :  { %v658_v61 = vadd.f32 %v2071_v49, %v657_v63  ;;  %v679_v7 = vmul.f32 %v2073_v14, %v678_v8 }
 0x199   :  { %v703_v19 = vmul.f32 %v2075_v1, %v702_v5  ;;  %v2889_v5 = vld [vmem:[#allocation11 + $0x1b0] sm:$0xff] }
 0x19a   :  { %v662_v16 = vsel %vm661_vm9, %v2071_v49, %v658_v61  ;;  %v680_v0 = vadd.f32 %v2073_v14, %v679_v7 }
 0x19b   :  { %v667_v10 = vsel %vm664_vm10, %v666_v53, %v662_v16  ;;  %v704_v48 = vadd.f32 %v2075_v1, %v703_v19 }
 0x19c   :  { %v684_v60 = vsel %vm683_vm12, %v2073_v14, %v680_v0  ;;  %v716_v8 = vmul.f32 %v2077_v11, %v667_v10  ;;  %v2876_v11 = vld [vmem:[#allocation11 + $0x1f8] sm:$0xff]  ;;  %v2881_v10 = vld [vmem:[#allocation11 + $0x1d0] sm:$0xff] }
 0x19d   :  { %v689_v2 = vsel %vm686_vm13, %v688_v4, %v684_v60  ;;  %v708_v53 = vsel %vm707_vm0, %v2075_v1, %v704_v48  ;;  %v2873_v48 = vld [vmem:[#allocation11 + $0x1f0] sm:$0xff] }
 0x19e   :  { %v715_v63 = vmul.f32 %v689_v2, %v2783_v57  ;;  %v713_v49 = vsel %vm710_vm2, %v712_v52, %v708_v53  ;;  %v2870_v57 = vld [vmem:[#allocation11 + $0x1e8] sm:$0xff] }
 0x1a0   :  { %v2860_v59 = vadd.f32 %v716_v8, %v715_v63 }
 0x1a2   :  { %2078 = vtanh.f32 %v2860_v59 }
 0x1a8   :  { %v2079_v6 = vpop.eup %2078 }
 0x1a9   :  { %v2863_v14 = vmul.f32 %v2079_v6, %v713_v49 }
 0x1ab   :  { %746 = vmatmul.f32.vlgmr.msra.gmra.mxu0 %v2863_v14  ;;  %766 = vmatmul.f32.vlgmr.msra.gmra.mxu1 %v2863_v14 }
 0x1ac   :  { %786 = vmatmul.f32.vlgmr.msra.gmra.mxu2 %v2863_v14  ;;  %806 = vmatmul.f32.vlgmr.msra.gmra.mxu3 %v2863_v14 }
 0x1ad   :  { %1074 = vmatpush.msra.mxu0 %v2479_v26  ;;  %1094 = vmatpush.msra.mxu1 %v2870_v57  ;;  %v2884_v26 = vld [vmem:[#allocation11 + $0x1d8] sm:$0xff] }
 0x1ae   :  { %1114 = vmatpush.msra.mxu2 %v2873_v48  ;;  %1134 = vmatpush.msra.mxu3 %v2876_v11 }
 0x1af   :  { %1075 = vmatpush.msra.mxu0 %v2491_v30  ;;  %1095 = vmatpush.msra.mxu1 %v2483_v27  ;;  %v2897_v27 = vld [vmem:[#allocation11 + $0x190] sm:$0xff]  ;;  %v2900_v30 = vld [vmem:[#allocation11 + $0x198] sm:$0xff] }
 0x1b0   :  { %1115 = vmatpush.msra.mxu2 %v2881_v10  ;;  %1135 = vmatpush.msra.mxu3 %v2884_v26 }
 0x1b1   :  { %1076 = vmatpush.msra.mxu0 %v2503_v34  ;;  %1096 = vmatpush.msra.mxu1 %v2495_v31  ;;  %v2905_v31 = vld [vmem:[#allocation11 + $0x170] sm:$0xff]  ;;  %v2908_v34 = vld [vmem:[#allocation11 + $0x178] sm:$0xff] }
 0x1b2   :  { %1116 = vmatpush.msra.mxu2 %v2889_v5  ;;  %1136 = vmatpush.msra.mxu3 %v2892_v20 }
 0x1b3   :  { %1077 = vmatpush.msra.mxu0 %v2515_v38  ;;  %1097 = vmatpush.msra.mxu1 %v2507_v35  ;;  %v2913_v35 = vld [vmem:[#allocation11 + $0x150] sm:$0xff]  ;;  %v2916_v38 = vld [vmem:[#allocation11 + $0x158] sm:$0xff] }
 0x1b4   :  { %1117 = vmatpush.msra.mxu2 %v2897_v27  ;;  %1137 = vmatpush.msra.mxu3 %v2900_v30 }
 0x1b5   :  { %1078 = vmatpush.msra.mxu0 %v2527_v42  ;;  %1098 = vmatpush.msra.mxu1 %v2519_v39  ;;  %v2921_v39 = vld [vmem:[#allocation11 + $0x130] sm:$0xff]  ;;  %v2924_v42 = vld [vmem:[#allocation11 + $0x138] sm:$0xff] }
 0x1b6   :  { %1118 = vmatpush.msra.mxu2 %v2905_v31  ;;  %1138 = vmatpush.msra.mxu3 %v2908_v34 }
 0x1b7   :  { %1079 = vmatpush.msra.mxu0 %v2539_v46  ;;  %1099 = vmatpush.msra.mxu1 %v2531_v43  ;;  %v3503_v43 = vld [vmem:[#allocation29_spill] sm:$0xff]  ;;  %v3506_v46 = vld [vmem:[#allocation42_spill] sm:$0xff] }
 0x1b8   :  { %1119 = vmatpush.msra.mxu2 %v2913_v35  ;;  %1139 = vmatpush.msra.mxu3 %v2916_v38 }
 0x1b9   :  { %1080 = vmatpush.msra.mxu0 %v2551_v50  ;;  %1100 = vmatpush.msra.mxu1 %v2543_v47  ;;  %v3507_v47 = vld [vmem:[#allocation33_spill] sm:$0xff]  ;;  %v3508_v50 = vld [vmem:[#allocation34_spill] sm:$0xff] }
 0x1ba   :  { %1120 = vmatpush.msra.mxu2 %v2921_v39  ;;  %1140 = vmatpush.msra.mxu3 %v2924_v42 }
 0x1bb   :  { %1081 = vmatpush.msra.mxu0 %v2563_v54  ;;  %1101 = vmatpush.msra.mxu1 %v2555_v51  ;;  %v3509_v51 = vld [vmem:[#allocation45_spill] sm:$0xff]  ;;  %v3510_v54 = vld [vmem:[#allocation44_spill] sm:$0xff] }
 0x1bc   :  { %1121 = vmatpush.msra.mxu2 %v2521_v40  ;;  %1141 = vmatpush.msra.mxu3 %v2525_v41  ;;  %v3501_v40 = vld [vmem:[#allocation41_spill] sm:$0xff]  ;;  %v3502_v41 = vld [vmem:[#allocation40_spill] sm:$0xff] }
 0x1bd   :  { %1082 = vmatpush.msra.mxu0 %v2575_v58  ;;  %1102 = vmatpush.msra.mxu1 %v2567_v55  ;;  %v3511_v55 = vld [vmem:[#allocation37_spill] sm:$0xff]  ;;  %v3512_v58 = vld [vmem:[#allocation38_spill] sm:$0xff] }
 0x1be   :  { %1122 = vmatpush.msra.mxu2 %v2533_v44  ;;  %1142 = vmatpush.msra.mxu3 %v2537_v45  ;;  %v3504_v44 = vld [vmem:[#allocation30_spill] sm:$0xff]  ;;  %v3505_v45 = vld [vmem:[#allocation43_spill] sm:$0xff] }
 0x1bf   :  { %1083 = vmatpush.msra.mxu0 %v2587_v62  ;;  %1103 = vmatpush.msra.mxu1 %v3474_v12 }
 0x1c0   :  { %1123 = vmatpush.msra.mxu2 %v3475_v13  ;;  %1143 = vmatpush.msra.mxu3 %v3476_v17 }
 0x1c1   :  { %1084 = vmatpush.msra.mxu0 %v3477_v18  ;;  %1104 = vmatpush.msra.mxu1 %v3478_v21 }
 0x1c2   :  { %1124 = vmatpush.msra.mxu2 %v3479_v22  ;;  %1144 = vmatpush.msra.mxu3 %v3480_v23 }
 0x1c3   :  { %1085 = vmatpush.msra.mxu0 %v3481_v24  ;;  %1105 = vmatpush.msra.mxu1 %v3482_v25  ;;  %v729_v25 = vld [vmem:[#allocation2 + $0x2] ss:$8 sm:$0xf] }
 0x1c4   :  { %1125 = vmatpush.msra.mxu2 %v3483_v28  ;;  %1145 = vmatpush.msra.mxu3 %v3484_v29 }
 0x1c5   :  { %1086 = vmatpush.msra.mxu0 %v3485_v32  ;;  %1106 = vmatpush.msra.mxu1 %v3486_v33 }
 0x1c6   :  { %1126 = vmatpush.msra.mxu2 %v3487_v36  ;;  %1146 = vmatpush.msra.mxu3 %v3488_v37 }
 0x1c7   :  { %1087 = vmatpush.msra.mxu0 %v3501_v40  ;;  %1107 = vmatpush.msra.mxu1 %v3502_v41 }
 0x1c8   :  { %1127 = vmatpush.msra.mxu2 %v3503_v43  ;;  %1147 = vmatpush.msra.mxu3 %v3504_v44 }
 0x1c9   :  { %1088 = vmatpush.msra.mxu0 %v3505_v45  ;;  %1108 = vmatpush.msra.mxu1 %v3506_v46 }
 0x1ca   :  { %1128 = vmatpush.msra.mxu2 %v3507_v47  ;;  %1148 = vmatpush.msra.mxu3 %v3508_v50 }
 0x1cb   :  { %1089 = vmatpush.msra.mxu0 %v3509_v51  ;;  %1109 = vmatpush.msra.mxu1 %v3510_v54 }
 0x1cc   :  { %1129 = vmatpush.msra.mxu2 %v3511_v55  ;;  %1149 = vmatpush.msra.mxu3 %v3512_v58 }
 0x228   :  { %v767_v62 = vpop.f32.mrf.mxu1  ;;  %v747_v22 = vpop.f32.mrf.mxu0 }
 0x229   :  { %v814_v12 = vrot.slane %v767_v62, 7 }
 0x22b   :  { %v817_v23 = vsel %vm470_vm4, %v747_v22, %v814_v12 }
 0x22f   :  { %v787_v13 = vpop.f32.mrf.mxu2  ;;  %v807_v17 = vpop.f32.mrf.mxu3 }
 0x230   :  { %v815_v18 = vrot.slane %v787_v13, 6  ;;  %v816_v21 = vrot.slane %v807_v17, 5 }
 0x232   :  { %v818_v24 = vsel %vm472_vm3, %v815_v18, %v816_v21 }
 0x233   :  { %v819_v28 = vsel %vm474_vm5, %v817_v23, %v818_v24 }
 0x234   :  { %v821_v29 = vadd.f32 %v819_v28, %v729_v25 }
 0x236   :  { %v2022_v32 = vmul.f32 -1.442695, %v821_v29  ;;  %v842_v33 = vrot.slane %v821_v29, 1  ;;  %v866_v36 = vrot.slane %v821_v29, 3  ;;  %v863_v19 = vrot.slane %v821_v29, 2 }
 0x238   :  { %2080 = vpow2.f32 %v2022_v32  ;;  %v2023_v37 = vmul.f32 -1.442695, %v842_v33  ;;  %v2024_v1 = vmul.f32 -1.442695, %v866_v36  ;;  %v1753_v32 = vperm.slane %v2863_v14, 0  ;;  %v3513_v36 = vld [vmem:[#allocation46_spill] sm:$0xff] }
 0x239   :  { %v2982_v14 = vld [vmem:[#allocation11 + $0x1c0] sm:$0xff] }
 0x23a   :  { %2082 = vpow2.f32 %v2023_v37  ;;  %v1773_v37 = vsel %vm470_vm4, %v3513_v36, %v1753_v32  ;;  %v3117_v32 = vld [vmem:[#allocation11 + $0x28] sm:$0xff]  ;;  %v3126_v36 = vld [vmem:[#allocation11] sm:$0xff] }
 0x23b   :  { %2084 = vpow2.f32 %v2024_v1  ;;  %v2973_v1 = vld [vmem:[#allocation11 + $0x1e0] sm:$0xff]  ;;  %3535 = vst [vmem:[#allocation33_spill] sm:$0xff] %v3117_v32 }
 0x23c   :  { %3538 = vst [vmem:[#allocation44_spill] sm:$0xff] %v3126_v36 }
 0x23e   :  { %v2081_v3 = vpop.eup %2080 }
 0x23f   :  { %v825_v9 = vadd.f32 1.0, %v2081_v3 }
 0x240   :  { %v2083_v61 = vpop.eup %2082 }
 0x241   :  { %v2085_v7 = vpop.eup %2084  ;;  %2086 = vrcp.f32 %v825_v9  ;;  %v847_v16 = vadd.f32 1.0, %v2083_v61  ;;  %v837_v15 = vand.u32 2147483648, %v825_v9  ;;  %v835_v49 = vand.u32 2147483647, %v825_v9  ;;  %v2990_v61 = vld [vmem:[#allocation11 + $0x1a0] sm:$0xff] }
 0x242   :  { %v871_v0 = vadd.f32 1.0, %v2085_v7  ;;  %vm831_vm7 = vweird.f32 %v825_v9  ;;  %v2993_v7 = vld [vmem:[#allocation11 + $0x1a8] sm:$0xff] }
 0x243   :  { %2088 = vrcp.f32 %v847_v16  ;;  %v859_v40 = vand.u32 2147483648, %v847_v16  ;;  %v857_v44 = vand.u32 2147483647, %v847_v16  ;;  %v838_v45 = vor.u32 1.1754944e-38, %v837_v15  ;;  %v3033_v15 = vld [vmem:[#allocation11 + $0x108] sm:$0xff] }
 0x244   :  { %2090 = vrcp.f32 %v871_v0  ;;  %vm836_vm10 = vcmp.eq.f32.partialorder %v835_v49, 8.507059e+37  ;;  %vm853_vm11 = vweird.f32 %v847_v16  ;;  %v883_v22 = vand.u32 2147483648, %v871_v0  ;;  %v3045_v49 = vld [vmem:[#allocation11 + $0xe8] sm:$0xff] }
 0x245   :  { %2092 = vtanh.f32 %v863_v19  ;;  %v860_v54 = vor.u32 1.1754944e-38, %v859_v40  ;;  %vm858_vm13 = vcmp.eq.f32.partialorder %v857_v44, 8.507059e+37  ;;  %vm877_vm15 = vweird.f32 %v871_v0  ;;  %v3017_v19 = vld [vmem:[#allocation11 + $0x148] sm:$0xff]  ;;  %v3048_v40 = vld [vmem:[#allocation11 + $0xf0] sm:$0xff] }
 0x246   :  { %v881_v23 = vand.u32 2147483647, %v871_v0  ;;  %v884_v25 = vor.u32 1.1754944e-38, %v883_v22  ;;  %v3057_v44 = vld [vmem:[#allocation11 + $0xc8] sm:$0xff]  ;;  %v3099_v22 = vld [vmem:[#allocation11 + $0x78] sm:$0xff] }
 0x247   :  { %v2087_v4 = vpop.eup %2086  ;;  %3515 = vst [vmem:[#allocation19_spill] sm:$0xff] %v3057_v44 }
 0x248   :  { %v827_v60 = vmul.f32 %v2087_v4, %v825_v9  ;;  %vm832_vm6 = vweird.f32 %v2087_v4  ;;  %vm882_vm2 = vcmp.eq.f32.partialorder %v881_v23, 8.507059e+37  ;;  %v2985_v9 = vld [vmem:[#allocation11 + $0x1c8] sm:$0xff]  ;;  %3529 = vst [vmem:[#allocation41_spill] sm:$0xff] %v3099_v22  ;;  %v3102_v23 = vld [vmem:[#allocation11 + $0x40] sm:$0xff] }
 0x249   :  { %v2089_v2 = vpop.eup %2088  ;;  %vm833_vm9 = vmor %vm831_vm7, %vm832_vm6  ;;  %3530 = vst [vmem:[#allocation40_spill] sm:$0xff] %v3102_v23 }
 0x24a   :  { %v2091_v63 = vpop.eup %2090  ;;  %v828_v8 = vsub.f32 1.0, %v827_v60  ;;  %v849_v56 = vmul.f32 %v2089_v2, %v847_v16  ;;  %vm854_vm8 = vweird.f32 %v2089_v2  ;;  %v2998_v16 = vld [vmem:[#allocation11 + $0x180] sm:$0xff]  ;;  %v3009_v60 = vld [vmem:[#allocation11 + $0x168] sm:$0xff] }
 0x24b   :  { %v873_v53 = vmul.f32 %v2091_v63, %v871_v0  ;;  %vm855_vm12 = vmor %vm853_vm11, %vm854_vm8  ;;  %v2093_v58 = vpop.eup %2092  ;;  %vm878_vm14 = vweird.f32 %v2091_v63  ;;  %v3001_v0 = vld [vmem:[#allocation11 + $0x188] sm:$0xff] }
 0x24c   :  { %v850_v52 = vsub.f32 1.0, %v849_v56  ;;  %v829_v6 = vmul.f32 %v2087_v4, %v828_v8  ;;  %vm879_vm0 = vmor %vm877_vm15, %vm878_vm14  ;;  %v3025_v8 = vld [vmem:[#allocation11 + $0x128] sm:$0xff]  ;;  %v3030_v56 = vld [vmem:[#allocation11 + $0x100] sm:$0xff] }
 0x24d   :  { %v874_v46 = vsub.f32 1.0, %v873_v53  ;;  %v3036_v53 = vld [vmem:[#allocation11 + $0x110] sm:$0xff] }
 0x24e   :  { %v830_v41 = vadd.f32 %v2087_v4, %v829_v6  ;;  %v851_v43 = vmul.f32 %v2089_v2, %v850_v52  ;;  %v3039_v52 = vld [vmem:[#allocation11 + $0x118] sm:$0xff]  ;;  %v3042_v6 = vld [vmem:[#allocation11 + $0xe0] sm:$0xff] }
 0x24f   :  { %v875_v12 = vmul.f32 %v2091_v63, %v874_v46  ;;  %v3063_v46 = vld [vmem:[#allocation11 + $0xd8] sm:$0xff] }
 0x250   :  { %v834_v47 = vsel %vm833_vm9, %v2087_v4, %v830_v41  ;;  %v852_v50 = vadd.f32 %v2089_v2, %v851_v43  ;;  %v3006_v4 = vld [vmem:[#allocation11 + $0x160] sm:$0xff]  ;;  %v3051_v41 = vld [vmem:[#allocation11 + $0xf8] sm:$0xff]  ;;  %3517 = vst [vmem:[#allocation31_spill] sm:$0xff] %v3063_v46 }
 0x251   :  { %v839_v51 = vsel %vm836_vm10, %v838_v45, %v834_v47  ;;  %v876_v21 = vadd.f32 %v2091_v63, %v875_v12  ;;  %v3054_v43 = vld [vmem:[#allocation11 + $0xc0] sm:$0xff]  ;;  %v3060_v45 = vld [vmem:[#allocation11 + $0xd0] sm:$0xff]  ;;  %v3087_v12 = vld [vmem:[#allocation11 + $0x98] sm:$0xff] }
 0x252   :  { %v856_v55 = vsel %vm855_vm12, %v2089_v2, %v852_v50  ;;  %v888_v17 = vmul.f32 %v2093_v58, %v839_v51  ;;  %v3014_v2 = vld [vmem:[#allocation11 + $0x140] sm:$0xff]  ;;  %3514 = vst [vmem:[#allocation25_spill] sm:$0xff] %v3054_v43  ;;  %v3069_v50 = vld [vmem:[#allocation11 + $0xa8] sm:$0xff]  ;;  %v3072_v51 = vld [vmem:[#allocation11 + $0xb0] sm:$0xff] }
 0x253   :  { %v861_v62 = vsel %vm858_vm13, %v860_v54, %v856_v55  ;;  %v880_v24 = vsel %vm879_vm0, %v2091_v63, %v876_v21  ;;  %v3022_v63 = vld [vmem:[#allocation11 + $0x120] sm:$0xff]  ;;  %3516 = vst [vmem:[#allocation20_spill] sm:$0xff] %v3060_v45  ;;  %v3075_v54 = vld [vmem:[#allocation11 + $0xb8] sm:$0xff]  ;;  %v3081_v58 = vld [vmem:[#allocation11 + $0x88] sm:$0xff] }
 0x254   :  { %v887_v13 = vmul.f32 %v861_v62, %v2860_v59  ;;  %v885_v29 = vsel %vm882_vm2, %v884_v25, %v880_v24  ;;  %v3066_v47 = vld [vmem:[#allocation11 + $0xa0] sm:$0xff]  ;;  %3519 = vst [vmem:[#allocation21_spill] sm:$0xff] %v3069_v50  ;;  %v3084_v62 = vld [vmem:[#allocation11 + $0x90] sm:$0xff]  ;;  %v3105_v24 = vld [vmem:[#allocation11 + $0x48] sm:$0xff] }
 0x255   :  { %3518 = vst [vmem:[#allocation28_spill] sm:$0xff] %v3066_v47  ;;  %v3078_v55 = vld [vmem:[#allocation11 + $0x80] sm:$0xff]  ;;  %v3096_v21 = vld [vmem:[#allocation11 + $0x70] sm:$0xff] }
 0x256   :  { %v2967_v18 = vadd.f32 %v888_v17, %v887_v13  ;;  %3520 = vst [vmem:[#allocation22_spill] sm:$0xff] %v3072_v51  ;;  %v3090_v13 = vld [vmem:[#allocation11 + $0x60] sm:$0xff]  ;;  %v3093_v17 = vld [vmem:[#allocation11 + $0x68] sm:$0xff]  ;;  %v3108_v25 = vld [vmem:[#allocation11 + $0x50] sm:$0xff] }
 0x257   :  { %3521 = vst [vmem:[#allocation35_spill] sm:$0xff] %v3075_v54 }
 0x258   :  { %2094 = vtanh.f32 %v2967_v18  ;;  %3522 = vst [vmem:[#allocation32_spill] sm:$0xff] %v3078_v55 }
 0x259   :  { %3523 = vst [vmem:[#allocation23_spill] sm:$0xff] %v3081_v58 }
 0x25a   :  { %3524 = vst [vmem:[#allocation24_spill] sm:$0xff] %v3084_v62 }
 0x25b   :  { %3525 = vst [vmem:[#allocation39_spill] sm:$0xff] %v3087_v12 }
 0x25c   :  { %3526 = vst [vmem:[#allocation36_spill] sm:$0xff] %v3090_v13 }
 0x25d   :  { %3527 = vst [vmem:[#allocation26_spill] sm:$0xff] %v3093_v17 }
 0x25e   :  { %v2095_v28 = vpop.eup %2094  ;;  %3528 = vst [vmem:[#allocation27_spill] sm:$0xff] %v3096_v21 }
 0x25f   :  { %v891_v33 = vmul.f32 %v2095_v28, %v885_v29  ;;  %3531 = vst [vmem:[#allocation29_spill] sm:$0xff] %v3105_v24  ;;  %v3111_v28 = vld [vmem:[#allocation11 + $0x58] sm:$0xff]  ;;  %v3114_v29 = vld [vmem:[#allocation11 + $0x20] sm:$0xff] }
 0x260   :  { %3532 = vst [vmem:[#allocation30_spill] sm:$0xff] %v3108_v25 }
 0x261   :  { %918 = vmatmul.f32.vlgmr.msrb.gmra.mxu0 %v891_v33  ;;  %938 = vmatmul.f32.vlgmr.msrb.gmra.mxu1 %v891_v33  ;;  %v1756_v59 = vperm.slane %v891_v33, 0  ;;  %3533 = vst [vmem:[#allocation43_spill] sm:$0xff] %v3111_v28 }
 0x262   :  { %958 = vmatmul.f32.vlgmr.msrb.gmra.mxu2 %v891_v33  ;;  %978 = vmatmul.f32.vlgmr.msrb.gmra.mxu3 %v891_v33  ;;  %3534 = vst [vmem:[#allocation42_spill] sm:$0xff] %v3114_v29  ;;  %v3120_v33 = vld [vmem:[#allocation11 + $0x30] sm:$0xff] }
 0x263   :  { %1246 = vmatpush.msrb.mxu0 %v2973_v1  ;;  %1266 = vmatpush.msrb.mxu1 %v2870_v57  ;;  %v2978_v3 = vsel %vm474_vm5, %v1773_v37, %v1756_v59  ;;  %3536 = vst [vmem:[#allocation34_spill] sm:$0xff] %v3120_v33  ;;  %v3123_v59 = vld [vmem:[#allocation11 + $0x38] sm:$0xff]  ;;  %v3129_v37 = vld [vmem:[#allocation11 + $0x8] sm:$0xff] }
 0x264   :  { %1286 = vmatpush.msrb.mxu2 %v2873_v48  ;;  %1306 = vmatpush.msrb.mxu3 %v2876_v11  ;;  %3537 = vst [vmem:[#allocation45_spill] sm:$0xff] %v3123_v59 }
 0x265   :  { %1247 = vmatpush.msrb.mxu0 %v2982_v14  ;;  %1267 = vmatpush.msrb.mxu1 %v2985_v9  ;;  %3539 = vst [vmem:[#allocation37_spill] sm:$0xff] %v3129_v37 }
 0x266   :  { %1287 = vmatpush.msrb.mxu2 %v2881_v10  ;;  %1307 = vmatpush.msrb.mxu3 %v2884_v26 }
 0x267   :  { %1248 = vmatpush.msrb.mxu0 %v2990_v61  ;;  %1268 = vmatpush.msrb.mxu1 %v2993_v7 }
 0x268   :  { %1288 = vmatpush.msrb.mxu2 %v2889_v5  ;;  %1308 = vmatpush.msrb.mxu3 %v2892_v20 }
 0x269   :  { %1249 = vmatpush.msrb.mxu0 %v2998_v16  ;;  %1269 = vmatpush.msrb.mxu1 %v3001_v0 }
 0x26a   :  { %1289 = vmatpush.msrb.mxu2 %v2897_v27  ;;  %1309 = vmatpush.msrb.mxu3 %v2900_v30 }
 0x26b   :  { %1250 = vmatpush.msrb.mxu0 %v3006_v4  ;;  %1270 = vmatpush.msrb.mxu1 %v3009_v60 }
 0x26c   :  { %1290 = vmatpush.msrb.mxu2 %v2905_v31  ;;  %1310 = vmatpush.msrb.mxu3 %v2908_v34 }
 0x26d   :  { %1251 = vmatpush.msrb.mxu0 %v3014_v2  ;;  %1271 = vmatpush.msrb.mxu1 %v3017_v19 }
 0x26e   :  { %1291 = vmatpush.msrb.mxu2 %v2913_v35  ;;  %1311 = vmatpush.msrb.mxu3 %v2916_v38 }
 0x26f   :  { %1252 = vmatpush.msrb.mxu0 %v3022_v63  ;;  %1272 = vmatpush.msrb.mxu1 %v3025_v8 }
 0x270   :  { %1292 = vmatpush.msrb.mxu2 %v2921_v39  ;;  %1312 = vmatpush.msrb.mxu3 %v2924_v42 }
 0x271   :  { %1253 = vmatpush.msrb.mxu0 %v3030_v56  ;;  %1273 = vmatpush.msrb.mxu1 %v3033_v15 }
 0x272   :  { %1293 = vmatpush.msrb.mxu2 %v3036_v53  ;;  %1313 = vmatpush.msrb.mxu3 %v3039_v52 }
 0x273   :  { %1254 = vmatpush.msrb.mxu0 %v3042_v6  ;;  %1274 = vmatpush.msrb.mxu1 %v3045_v49 }
 0x274   :  { %1294 = vmatpush.msrb.mxu2 %v3048_v40  ;;  %1314 = vmatpush.msrb.mxu3 %v3051_v41 }
 0x275   :  { %1255 = vmatpush.msrb.mxu0 %v3054_v43  ;;  %1275 = vmatpush.msrb.mxu1 %v3057_v44 }
 0x276   :  { %1295 = vmatpush.msrb.mxu2 %v3060_v45  ;;  %1315 = vmatpush.msrb.mxu3 %v3063_v46 }
 0x277   :  { %1256 = vmatpush.msrb.mxu0 %v3066_v47  ;;  %1276 = vmatpush.msrb.mxu1 %v3069_v50 }
 0x278   :  { %1296 = vmatpush.msrb.mxu2 %v3072_v51  ;;  %1316 = vmatpush.msrb.mxu3 %v3075_v54 }
 0x279   :  { %1257 = vmatpush.msrb.mxu0 %v3078_v55  ;;  %1277 = vmatpush.msrb.mxu1 %v3081_v58 }
 0x27a   :  { %1297 = vmatpush.msrb.mxu2 %v3084_v62  ;;  %1317 = vmatpush.msrb.mxu3 %v3087_v12 }
 0x27b   :  { %1258 = vmatpush.msrb.mxu0 %v3090_v13  ;;  %1278 = vmatpush.msrb.mxu1 %v3093_v17 }
 0x27c   :  { %1298 = vmatpush.msrb.mxu2 %v3096_v21  ;;  %1318 = vmatpush.msrb.mxu3 %v3099_v22 }
 0x27d   :  { %1259 = vmatpush.msrb.mxu0 %v3102_v23  ;;  %1279 = vmatpush.msrb.mxu1 %v3105_v24 }
 0x27e   :  { %1299 = vmatpush.msrb.mxu2 %v3108_v25  ;;  %1319 = vmatpush.msrb.mxu3 %v3111_v28 }
 0x27f   :  { %1260 = vmatpush.msrb.mxu0 %v3114_v29  ;;  %1280 = vmatpush.msrb.mxu1 %v3117_v32  ;;  %v3132_v29 = vld [vmem:[#allocation11 + $0x10] sm:$0xff]  ;;  %v3135_v32 = vld [vmem:[#allocation11 + $0x18] sm:$0xff] }
 0x280   :  { %1300 = vmatpush.msrb.mxu2 %v3120_v33  ;;  %1320 = vmatpush.msrb.mxu3 %v3123_v59  ;;  %3540 = vst [vmem:[#allocation38_spill] sm:$0xff] %v3132_v29 }
 0x281   :  { %1261 = vmatpush.msrb.mxu0 %v3126_v36  ;;  %1281 = vmatpush.msrb.mxu1 %v3129_v37  ;;  %3541 = vst [vmem:[#allocation46_spill] sm:$0xff] %v3135_v32  ;;  %v901_v37 = vld [vmem:[#allocation2 + $0x3] ss:$8 sm:$0xf] }
 0x282   :  { %1301 = vmatpush.msrb.mxu2 %v3132_v29  ;;  %1321 = vmatpush.msrb.mxu3 %v3135_v32 }
 0x2de   :  { %v939_v33 = vpop.f32.mrf.mxu1  ;;  %v919_v22 = vpop.f32.mrf.mxu0 }
 0x2df   :  { %v986_v28 = vrot.slane %v939_v33, 7 }
 0x2e1   :  { %v989_v36 = vsel %vm470_vm4, %v919_v22, %v986_v28 }
 0x2e5   :  { %v959_v25 = vpop.f32.mrf.mxu2  ;;  %v979_v59 = vpop.f32.mrf.mxu3 }
 0x2e6   :  { %v987_v24 = vrot.slane %v959_v25, 6  ;;  %v988_v23 = vrot.slane %v979_v59, 5 }
 0x2e8   :  { %v990_v21 = vsel %vm472_vm3, %v987_v24, %v988_v23 }
 0x2e9   :  { %v991_v17 = vsel %vm474_vm5, %v989_v36, %v990_v21 }
 0x2ea   :  { %v993_v13 = vadd.f32 %v991_v17, %v901_v37 }
 0x2ec   :  { %v2025_v29 = vmul.f32 -1.442695, %v993_v13  ;;  %v1014_v12 = vrot.slane %v993_v13, 1  ;;  %v1038_v62 = vrot.slane %v993_v13, 3  ;;  %v1035_v24 = vrot.slane %v993_v13, 2 }
 0x2ee   :  { %2096 = vpow2.f32 %v2025_v29  ;;  %v2026_v32 = vmul.f32 -1.442695, %v1014_v12  ;;  %v2027_v58 = vmul.f32 -1.442695, %v1038_v62 }
 0x2f0   :  { %2098 = vpow2.f32 %v2026_v32 }
 0x2f1   :  { %2100 = vpow2.f32 %v2027_v58 }
 0x2f4   :  { %v2097_v33 = vpop.eup %2096 }
 0x2f5   :  { %v997_v25 = vadd.f32 1.0, %v2097_v33 }
 0x2f6   :  { %v2099_v59 = vpop.eup %2098 }
 0x2f7   :  { %v2101_v55 = vpop.eup %2100  ;;  %2102 = vrcp.f32 %v997_v25  ;;  %v1019_v22 = vadd.f32 1.0, %v2099_v59  ;;  %v1009_v12 = vand.u32 2147483648, %v997_v25  ;;  %v1007_v33 = vand.u32 2147483647, %v997_v25 }
 0x2f8   :  { %v1043_v28 = vadd.f32 1.0, %v2101_v55  ;;  %vm1003_vm7 = vweird.f32 %v997_v25 }
 0x2f9   :  { %2104 = vrcp.f32 %v1019_v22  ;;  %v1031_v54 = vand.u32 2147483648, %v1019_v22  ;;  %v1029_v51 = vand.u32 2147483647, %v1019_v22  ;;  %v1010_v50 = vor.u32 1.1754944e-38, %v1009_v12 }
 0x2fa   :  { %2106 = vrcp.f32 %v1043_v28  ;;  %vm1008_vm10 = vcmp.eq.f32.partialorder %v1007_v33, 8.507059e+37  ;;  %vm1025_vm11 = vweird.f32 %v1019_v22  ;;  %v1055_v12 = vand.u32 2147483648, %v1043_v28  ;;  %v3549_v33 = vld [vmem:[#allocation35_spill] sm:$0xff] }
 0x2fb   :  { %2108 = vtanh.f32 %v1035_v24  ;;  %vm1030_vm13 = vcmp.eq.f32.partialorder %v1029_v51, 8.507059e+37  ;;  %vm1049_vm15 = vweird.f32 %v1043_v28 }
 0x2fd   :  { %v2103_v23 = vpop.eup %2102 }
 0x2fe   :  { %v999_v21 = vmul.f32 %v2103_v23, %v997_v25  ;;  %vm1004_vm6 = vweird.f32 %v2103_v23 }
 0x2ff   :  { %v2105_v17 = vpop.eup %2104  ;;  %vm1005_vm9 = vmor %vm1003_vm7, %vm1004_vm6  ;;  %vm1775_vm6 = vcmask 1042432  }
 0x300   :  { %v2107_v36 = vpop.eup %2106  ;;  %v1000_v37 = vsub.f32 1.0, %v999_v21  ;;  %v1021_v29 = vmul.f32 %v2105_v17, %v1019_v22  ;;  %vm1026_vm8 = vweird.f32 %v2105_v17  ;;  %v1053_v22 = vand.u32 2147483647, %v1043_v28 }
 0x301   :  { %v1045_v62 = vmul.f32 %v2107_v36, %v1043_v28  ;;  %vm1027_vm12 = vmor %vm1025_vm11, %vm1026_vm8  ;;  %v2109_v45 = vpop.eup %2108  ;;  %vm1050_vm14 = vweird.f32 %v2107_v36  ;;  %v3546_v28 = vld [vmem:[#allocation28_spill] sm:$0xff] }
 0x302   :  { %v1022_v32 = vsub.f32 1.0, %v1021_v29  ;;  %v1001_v58 = vmul.f32 %v2103_v23, %v1000_v37  ;;  %v1032_v29 = vor.u32 1.1754944e-38, %v1031_v54  ;;  %vm1051_vm0 = vmor %vm1049_vm15, %vm1050_vm14  ;;  %v1056_v54 = vor.u32 1.1754944e-38, %v1055_v12  ;;  %v3560_v12 = vld [vmem:[#allocation30_spill] sm:$0xff] }
 0x303   :  { %v1046_v47 = vsub.f32 1.0, %v1045_v62  ;;  %vm1054_vm2 = vcmp.eq.f32.partialorder %v1053_v22, 8.507059e+37  ;;  %v3548_v62 = vld [vmem:[#allocation22_spill] sm:$0xff]  ;;  %v3561_v22 = vld [vmem:[#allocation43_spill] sm:$0xff] }
 0x304   :  { %v1002_v59 = vadd.f32 %v2103_v23, %v1001_v58  ;;  %v1023_v55 = vmul.f32 %v2105_v17, %v1022_v32 }
 0x305   :  { %v1047_v25 = vmul.f32 %v2107_v36, %v1046_v47  ;;  %v3545_v47 = vld [vmem:[#allocation31_spill] sm:$0xff] }
 0x306   :  { %v1006_v13 = vsel %vm1005_vm9, %v2103_v23, %v1002_v59  ;;  %v1024_v21 = vadd.f32 %v2105_v17, %v1023_v55  ;;  %v3550_v59 = vld [vmem:[#allocation32_spill] sm:$0xff]  ;;  %v3551_v55 = vld [vmem:[#allocation23_spill] sm:$0xff] }
 0x307   :  { %v1011_v46 = vsel %vm1008_vm10, %v1010_v50, %v1006_v13  ;;  %v1048_v43 = vadd.f32 %v2107_v36, %v1047_v25  ;;  %v3552_v13 = vld [vmem:[#allocation24_spill] sm:$0xff]  ;;  %v3557_v25 = vld [vmem:[#allocation41_spill] sm:$0xff] }
 0x308   :  { %v1028_v37 = vsel %vm1027_vm12, %v2105_v17, %v1024_v21  ;;  %v1060_v32 = vmul.f32 %v2109_v45, %v1011_v46  ;;  %v3544_v46 = vld [vmem:[#allocation20_spill] sm:$0xff]  ;;  %v3553_v21 = vld [vmem:[#allocation39_spill] sm:$0xff] }
 0x309   :  { %v1033_v24 = vsel %vm1030_vm13, %v1032_v29, %v1028_v37  ;;  %v1052_v50 = vsel %vm1051_vm0, %v2107_v36, %v1048_v43  ;;  %v3543_v43 = vld [vmem:[#allocation19_spill] sm:$0xff]  ;;  %v3547_v36 = vld [vmem:[#allocation21_spill] sm:$0xff]  ;;  %v3554_v29 = vld [vmem:[#allocation36_spill] sm:$0xff] }
 0x30a   :  { %v1059_v58 = vmul.f32 %v1033_v24, %v2967_v18  ;;  %v1057_v23 = vsel %vm1054_vm2, %v1056_v54, %v1052_v50  ;;  %v3555_v37 = vld [vmem:[#allocation26_spill] sm:$0xff]  ;;  %v3556_v24 = vld [vmem:[#allocation27_spill] sm:$0xff]  ;;  %v3563_v54 = vld [vmem:[#allocation33_spill] sm:$0xff] }
 0x30b   :  { %v3562_v50 = vld [vmem:[#allocation42_spill] sm:$0xff] }
 0x30c   :  { %v3142_v44 = vadd.f32 %v1060_v32, %v1059_v58  ;;  %v3558_v58 = vld [vmem:[#allocation40_spill] sm:$0xff]  ;;  %v3559_v32 = vld [vmem:[#allocation29_spill] sm:$0xff] }
 0x30e   :  { %2110 = vtanh.f32 %v3142_v44 }
 0x314   :  { %v2111_v51 = vpop.eup %2110 }
 0x315   :  { %v1063_v17 = vmul.f32 %v2111_v51, %v1057_v23  ;;  %v3564_v51 = vld [vmem:[#allocation34_spill] sm:$0xff]  ;;  %v3565_v23 = vld [vmem:[#allocation45_spill] sm:$0xff] }
 0x317   :  { %1090 = vmatmul.f32.vlgmr.msra.gmra.mxu0 %v1063_v17  ;;  %1110 = vmatmul.f32.vlgmr.msra.gmra.mxu1 %v1063_v17  ;;  %v1759_v18 = vperm.slane %v1063_v17, 0 }
 0x318   :  { %1130 = vmatmul.f32.vlgmr.msra.gmra.mxu2 %v1063_v17  ;;  %1150 = vmatmul.f32.vlgmr.msra.gmra.mxu3 %v1063_v17  ;;  %v3566_v17 = vld [vmem:[#allocation44_spill] sm:$0xff] }
 0x319   :  { %1418 = vmatpush.msra.mxu0 %v2973_v1  ;;  %1438 = vmatpush.msra.mxu1 %v2870_v57  ;;  %v3148_v45 = vsel %vm1775_vm6, %v2978_v3, %v1759_v18  ;;  %v3542_v3 = vld [vmem:[#allocation25_spill] sm:$0xff] }
 0x31a   :  { %1458 = vmatpush.msra.mxu2 %v2873_v48  ;;  %1478 = vmatpush.msra.mxu3 %v2876_v11  ;;  %v3567_v18 = vld [vmem:[#allocation37_spill] sm:$0xff] }
 0x31b   :  { %1419 = vmatpush.msra.mxu0 %v2982_v14  ;;  %1439 = vmatpush.msra.mxu1 %v2985_v9 }
 0x31c   :  { %1459 = vmatpush.msra.mxu2 %v2881_v10  ;;  %1479 = vmatpush.msra.mxu3 %v2884_v26 }
 0x31d   :  { %1420 = vmatpush.msra.mxu0 %v2990_v61  ;;  %1440 = vmatpush.msra.mxu1 %v2993_v7 }
 0x31e   :  { %1460 = vmatpush.msra.mxu2 %v2889_v5  ;;  %1480 = vmatpush.msra.mxu3 %v2892_v20 }
 0x31f   :  { %1421 = vmatpush.msra.mxu0 %v2998_v16  ;;  %1441 = vmatpush.msra.mxu1 %v3001_v0 }
 0x320   :  { %1461 = vmatpush.msra.mxu2 %v2897_v27  ;;  %1481 = vmatpush.msra.mxu3 %v2900_v30 }
 0x321   :  { %1422 = vmatpush.msra.mxu0 %v3006_v4  ;;  %1442 = vmatpush.msra.mxu1 %v3009_v60 }
 0x322   :  { %1462 = vmatpush.msra.mxu2 %v2905_v31  ;;  %1482 = vmatpush.msra.mxu3 %v2908_v34 }
 0x323   :  { %1423 = vmatpush.msra.mxu0 %v3014_v2  ;;  %1443 = vmatpush.msra.mxu1 %v3017_v19 }
 0x324   :  { %1463 = vmatpush.msra.mxu2 %v2913_v35  ;;  %1483 = vmatpush.msra.mxu3 %v2916_v38 }
 0x325   :  { %1424 = vmatpush.msra.mxu0 %v3022_v63  ;;  %1444 = vmatpush.msra.mxu1 %v3025_v8 }
 0x326   :  { %1464 = vmatpush.msra.mxu2 %v2921_v39  ;;  %1484 = vmatpush.msra.mxu3 %v2924_v42 }
 0x327   :  { %1425 = vmatpush.msra.mxu0 %v3030_v56  ;;  %1445 = vmatpush.msra.mxu1 %v3033_v15 }
 0x328   :  { %1465 = vmatpush.msra.mxu2 %v3036_v53  ;;  %1485 = vmatpush.msra.mxu3 %v3039_v52 }
 0x329   :  { %1426 = vmatpush.msra.mxu0 %v3042_v6  ;;  %1446 = vmatpush.msra.mxu1 %v3045_v49 }
 0x32a   :  { %1466 = vmatpush.msra.mxu2 %v3048_v40  ;;  %1486 = vmatpush.msra.mxu3 %v3051_v41 }
 0x32b   :  { %1427 = vmatpush.msra.mxu0 %v3542_v3  ;;  %1447 = vmatpush.msra.mxu1 %v3543_v43 }
 0x32c   :  { %1467 = vmatpush.msra.mxu2 %v3544_v46  ;;  %1487 = vmatpush.msra.mxu3 %v3545_v47 }
 0x32d   :  { %1428 = vmatpush.msra.mxu0 %v3546_v28  ;;  %1448 = vmatpush.msra.mxu1 %v3547_v36 }
 0x32e   :  { %1468 = vmatpush.msra.mxu2 %v3548_v62  ;;  %1488 = vmatpush.msra.mxu3 %v3549_v33 }
 0x32f   :  { %1429 = vmatpush.msra.mxu0 %v3550_v59  ;;  %1449 = vmatpush.msra.mxu1 %v3551_v55 }
 0x330   :  { %1469 = vmatpush.msra.mxu2 %v3552_v13  ;;  %1489 = vmatpush.msra.mxu3 %v3553_v21 }
 0x331   :  { %1430 = vmatpush.msra.mxu0 %v3554_v29  ;;  %1450 = vmatpush.msra.mxu1 %v3555_v37 }
 0x332   :  { %1470 = vmatpush.msra.mxu2 %v3556_v24  ;;  %1490 = vmatpush.msra.mxu3 %v3557_v25  ;;  %v3568_v25 = vld [vmem:[#allocation38_spill] sm:$0xff] }
 0x333   :  { %1431 = vmatpush.msra.mxu0 %v3558_v58  ;;  %1451 = vmatpush.msra.mxu1 %v3559_v32  ;;  %v3569_v58 = vld [vmem:[#allocation46_spill] sm:$0xff] }
 0x334   :  { %1471 = vmatpush.msra.mxu2 %v3560_v12  ;;  %1491 = vmatpush.msra.mxu3 %v3561_v22 }
 0x335   :  { %1432 = vmatpush.msra.mxu0 %v3562_v50  ;;  %1452 = vmatpush.msra.mxu1 %v3563_v54 }
 0x336   :  { %1472 = vmatpush.msra.mxu2 %v3564_v51  ;;  %1492 = vmatpush.msra.mxu3 %v3565_v23  ;;  %v1073_v23 = vld [vmem:[#allocation2 + $0x4] ss:$8 sm:$0xf] }
 0x337   :  { %1433 = vmatpush.msra.mxu0 %v3566_v17  ;;  %1453 = vmatpush.msra.mxu1 %v3567_v18 }
 0x338   :  { %1473 = vmatpush.msra.mxu2 %v3568_v25  ;;  %1493 = vmatpush.msra.mxu3 %v3569_v58 }
 0x394   :  { %v1111_v32 = vpop.f32.mrf.mxu1  ;;  %v1091_v29 = vpop.f32.mrf.mxu0 }
 0x395   :  { %v1158_v12 = vrot.slane %v1111_v32, 7 }
 0x397   :  { %v1161_v54 = vsel %vm470_vm4, %v1091_v29, %v1158_v12 }
 0x39b   :  { %v1131_v24 = vpop.f32.mrf.mxu2  ;;  %v1151_v22 = vpop.f32.mrf.mxu3 }
 0x39c   :  { %v1159_v37 = vrot.slane %v1131_v24, 6  ;;  %v1160_v50 = vrot.slane %v1151_v22, 5 }
 0x39e   :  { %v1162_v51 = vsel %vm472_vm3, %v1159_v37, %v1160_v50 }
 0x39f   :  { %v1163_v17 = vsel %vm474_vm5, %v1161_v54, %v1162_v51 }
 0x3a0   :  { %v1165_v21 = vadd.f32 %v1163_v17, %v1073_v23 }
 0x3a2   :  { %v2028_v18 = vmul.f32 -1.442695, %v1165_v21  ;;  %v1186_v13 = vrot.slane %v1165_v21, 1  ;;  %v1210_v25 = vrot.slane %v1165_v21, 3  ;;  %v1207_v51 = vrot.slane %v1165_v21, 2 }
 0x3a4   :  { %2112 = vpow2.f32 %v2028_v18  ;;  %v2029_v58 = vmul.f32 -1.442695, %v1186_v13  ;;  %v2030_v55 = vmul.f32 -1.442695, %v1210_v25 }
 0x3a6   :  { %2114 = vpow2.f32 %v2029_v58 }
 0x3a7   :  { %2116 = vpow2.f32 %v2030_v55 }
 0x3aa   :  { %v2113_v32 = vpop.eup %2112 }
 0x3ab   :  { %v1169_v24 = vadd.f32 1.0, %v2113_v32 }
 0x3ac   :  { %v2115_v22 = vpop.eup %2114 }
 0x3ad   :  { %v2117_v59 = vpop.eup %2116  ;;  %2118 = vrcp.f32 %v1169_v24  ;;  %v1191_v29 = vadd.f32 1.0, %v2115_v22  ;;  %v1181_v13 = vand.u32 2147483648, %v1169_v24  ;;  %v1179_v32 = vand.u32 2147483647, %v1169_v24 }
 0x3ae   :  { %v1215_v12 = vadd.f32 1.0, %v2117_v59  ;;  %vm1175_vm8 = vweird.f32 %v1169_v24 }
 0x3af   :  { %2120 = vrcp.f32 %v1191_v29  ;;  %v1203_v33 = vand.u32 2147483648, %v1191_v29  ;;  %v1201_v62 = vand.u32 2147483647, %v1191_v29  ;;  %v1182_v36 = vor.u32 1.1754944e-38, %v1181_v13 }
 0x3b0   :  { %2122 = vrcp.f32 %v1215_v12  ;;  %vm1180_vm11 = vcmp.eq.f32.partialorder %v1179_v32, 8.507059e+37  ;;  %vm1197_vm12 = vweird.f32 %v1191_v29  ;;  %v1227_v13 = vand.u32 2147483648, %v1215_v12 }
 0x3b1   :  { %2124 = vtanh.f32 %v1207_v51  ;;  %vm1202_vm14 = vcmp.eq.f32.partialorder %v1201_v62, 8.507059e+37  ;;  %vm1221_vm0 = vweird.f32 %v1215_v12 }
 0x3b3   :  { %v2119_v37 = vpop.eup %2118 }
 0x3b4   :  { %v1171_v50 = vmul.f32 %v2119_v37, %v1169_v24  ;;  %vm1176_vm7 = vweird.f32 %v2119_v37 }
 0x3b5   :  { %v2121_v54 = vpop.eup %2120  ;;  %vm1177_vm10 = vmor %vm1175_vm8, %vm1176_vm7 }
 0x3b6   :  { %v2123_v23 = vpop.eup %2122  ;;  %v1172_v17 = vsub.f32 1.0, %v1171_v50  ;;  %v1193_v18 = vmul.f32 %v2121_v54, %v1191_v29  ;;  %vm1198_vm9 = vweird.f32 %v2121_v54  ;;  %v1225_v29 = vand.u32 2147483647, %v1215_v12 }
 0x3b7   :  { %v1217_v25 = vmul.f32 %v2123_v23, %v1215_v12  ;;  %vm1199_vm13 = vmor %vm1197_vm12, %vm1198_vm9  ;;  %v2125_v46 = vpop.eup %2124  ;;  %vm1222_vm15 = vweird.f32 %v2123_v23 }
 0x3b8   :  { %v1194_v58 = vsub.f32 1.0, %v1193_v18  ;;  %v1173_v55 = vmul.f32 %v2119_v37, %v1172_v17  ;;  %v1204_v18 = vor.u32 1.1754944e-38, %v1203_v33  ;;  %vm1223_vm2 = vmor %vm1221_vm0, %vm1222_vm15  ;;  %v1228_v33 = vor.u32 1.1754944e-38, %v1227_v13 }
 0x3b9   :  { %v1218_v28 = vsub.f32 1.0, %v1217_v25  ;;  %vm1226_vm6 = vcmp.eq.f32.partialorder %v1225_v29, 8.507059e+37 }
 0x3ba   :  { %v1174_v22 = vadd.f32 %v2119_v37, %v1173_v55  ;;  %v1195_v59 = vmul.f32 %v2121_v54, %v1194_v58 }
 0x3bb   :  { %v1219_v24 = vmul.f32 %v2123_v23, %v1218_v28 }
 0x3bc   :  { %v1178_v21 = vsel %vm1177_vm10, %v2119_v37, %v1174_v22  ;;  %v1196_v50 = vadd.f32 %v2121_v54, %v1195_v59 }
 0x3bd   :  { %v1183_v47 = vsel %vm1180_vm11, %v1182_v36, %v1178_v21  ;;  %v1220_v3 = vadd.f32 %v2123_v23, %v1219_v24 }
 0x3be   :  { %v1200_v17 = vsel %vm1199_vm13, %v2121_v54, %v1196_v50  ;;  %v1232_v58 = vmul.f32 %v2125_v46, %v1183_v47 }
 0x3bf   :  { %v1205_v51 = vsel %vm1202_vm14, %v1204_v18, %v1200_v17  ;;  %v1224_v36 = vsel %vm1223_vm2, %v2123_v23, %v1220_v3  ;;  %v1245_v3 = vld [vmem:[#allocation2 + $0x5] ss:$8 sm:$0xf] }
 0x3c0   :  { %v1231_v55 = vmul.f32 %v1205_v51, %v3142_v44  ;;  %v1229_v37 = vsel %vm1226_vm6, %v1228_v33, %v1224_v36  ;;  %vm1778_vm6 = vcmask 1044480  }
 0x3c2   :  { %v3216_v43 = vadd.f32 %v1232_v58, %v1231_v55 }
 0x3c4   :  { %2126 = vtanh.f32 %v3216_v43 }
 0x3ca   :  { %v2127_v62 = vpop.eup %2126 }
 0x3cb   :  { %v1235_v54 = vmul.f32 %v2127_v62, %v1229_v37 }
 0x3cd   :  { %1262 = vmatmul.f32.vlgmr.msrb.gmra.mxu0 %v1235_v54  ;;  %1282 = vmatmul.f32.vlgmr.msrb.gmra.mxu1 %v1235_v54  ;;  %v1762_v44 = vperm.slane %v1235_v54, 0 }
 0x3ce   :  { %1302 = vmatmul.f32.vlgmr.msrb.gmra.mxu2 %v1235_v54  ;;  %1322 = vmatmul.f32.vlgmr.msrb.gmra.mxu3 %v1235_v54 }
 0x3cf   :  { %1590 = vmatpush.msrb.mxu0 %v2973_v1  ;;  %1610 = vmatpush.msrb.mxu1 %v2870_v57  ;;  %v3223_v46 = vsel %vm206_vm1, %v3148_v45, %v1762_v44  ;;  %v3570_v57 = vld [vmem:[#allocation25_spill] sm:$0xff] }
 0x3d0   :  { %1630 = vmatpush.msrb.mxu2 %v2873_v48  ;;  %1650 = vmatpush.msrb.mxu3 %v2876_v11  ;;  %v3571_v48 = vld [vmem:[#allocation19_spill] sm:$0xff]  ;;  %v3572_v11 = vld [vmem:[#allocation20_spill] sm:$0xff]  ;;  %v3585_v1 = vld [vmem:[#allocation41_spill] sm:$0xff] }
 0x3d1   :  { %1591 = vmatpush.msrb.mxu0 %v2982_v14  ;;  %1611 = vmatpush.msrb.mxu1 %v2985_v9  ;;  %v3586_v14 = vld [vmem:[#allocation40_spill] sm:$0xff]  ;;  %v3587_v9 = vld [vmem:[#allocation29_spill] sm:$0xff] }
 0x3d2   :  { %1631 = vmatpush.msrb.mxu2 %v2881_v10  ;;  %1651 = vmatpush.msrb.mxu3 %v2884_v26  ;;  %v3573_v10 = vld [vmem:[#allocation31_spill] sm:$0xff]  ;;  %v3574_v26 = vld [vmem:[#allocation28_spill] sm:$0xff] }
 0x3d3   :  { %1592 = vmatpush.msrb.mxu0 %v2990_v61  ;;  %1612 = vmatpush.msrb.mxu1 %v2993_v7  ;;  %v3588_v61 = vld [vmem:[#allocation30_spill] sm:$0xff]  ;;  %v3589_v7 = vld [vmem:[#allocation43_spill] sm:$0xff] }
 0x3d4   :  { %1632 = vmatpush.msrb.mxu2 %v2889_v5  ;;  %1652 = vmatpush.msrb.mxu3 %v2892_v20  ;;  %v3575_v5 = vld [vmem:[#allocation21_spill] sm:$0xff]  ;;  %v3576_v20 = vld [vmem:[#allocation22_spill] sm:$0xff] }
 0x3d5   :  { %1593 = vmatpush.msrb.mxu0 %v2998_v16  ;;  %1613 = vmatpush.msrb.mxu1 %v3001_v0  ;;  %v3590_v16 = vld [vmem:[#allocation42_spill] sm:$0xff]  ;;  %v3591_v0 = vld [vmem:[#allocation33_spill] sm:$0xff] }
 0x3d6   :  { %1633 = vmatpush.msrb.mxu2 %v2897_v27  ;;  %1653 = vmatpush.msrb.mxu3 %v2900_v30  ;;  %v3577_v27 = vld [vmem:[#allocation35_spill] sm:$0xff]  ;;  %v3578_v30 = vld [vmem:[#allocation32_spill] sm:$0xff] }
 0x3d7   :  { %1594 = vmatpush.msrb.mxu0 %v3006_v4  ;;  %1614 = vmatpush.msrb.mxu1 %v3009_v60  ;;  %v3592_v4 = vld [vmem:[#allocation34_spill] sm:$0xff]  ;;  %v3593_v60 = vld [vmem:[#allocation45_spill] sm:$0xff] }
 0x3d8   :  { %1634 = vmatpush.msrb.mxu2 %v2905_v31  ;;  %1654 = vmatpush.msrb.mxu3 %v2908_v34  ;;  %v3579_v31 = vld [vmem:[#allocation23_spill] sm:$0xff]  ;;  %v3580_v34 = vld [vmem:[#allocation24_spill] sm:$0xff] }
 0x3d9   :  { %1595 = vmatpush.msrb.mxu0 %v3014_v2  ;;  %1615 = vmatpush.msrb.mxu1 %v3017_v19  ;;  %v3594_v2 = vld [vmem:[#allocation44_spill] sm:$0xff]  ;;  %v3595_v19 = vld [vmem:[#allocation37_spill] sm:$0xff] }
 0x3da   :  { %1635 = vmatpush.msrb.mxu2 %v2913_v35  ;;  %1655 = vmatpush.msrb.mxu3 %v2916_v38  ;;  %v3581_v35 = vld [vmem:[#allocation39_spill] sm:$0xff]  ;;  %v3582_v38 = vld [vmem:[#allocation36_spill] sm:$0xff] }
 0x3db   :  { %1596 = vmatpush.msrb.mxu0 %v3022_v63  ;;  %1616 = vmatpush.msrb.mxu1 %v3025_v8  ;;  %v3596_v63 = vld [vmem:[#allocation38_spill] sm:$0xff] }
 0x3dc   :  { %1636 = vmatpush.msrb.mxu2 %v2921_v39  ;;  %1656 = vmatpush.msrb.mxu3 %v2924_v42  ;;  %v3583_v39 = vld [vmem:[#allocation26_spill] sm:$0xff]  ;;  %v3584_v42 = vld [vmem:[#allocation27_spill] sm:$0xff] }
 0x3dd   :  { %1597 = vmatpush.msrb.mxu0 %v3030_v56  ;;  %1617 = vmatpush.msrb.mxu1 %v3033_v15  ;;  %v3597_v8 = vld [vmem:[#allocation46_spill] sm:$0xff] }
 0x3de   :  { %1637 = vmatpush.msrb.mxu2 %v3036_v53  ;;  %1657 = vmatpush.msrb.mxu3 %v3039_v52 }
 0x3df   :  { %1598 = vmatpush.msrb.mxu0 %v3042_v6  ;;  %1618 = vmatpush.msrb.mxu1 %v3045_v49 }
 0x3e0   :  { %1638 = vmatpush.msrb.mxu2 %v3048_v40  ;;  %1658 = vmatpush.msrb.mxu3 %v3051_v41 }
 0x3e1   :  { %1599 = vmatpush.msrb.mxu0 %v3570_v57  ;;  %1619 = vmatpush.msrb.mxu1 %v3571_v48 }
 0x3e2   :  { %1639 = vmatpush.msrb.mxu2 %v3572_v11  ;;  %1659 = vmatpush.msrb.mxu3 %v3573_v10 }
 0x3e3   :  { %1600 = vmatpush.msrb.mxu0 %v3574_v26  ;;  %1620 = vmatpush.msrb.mxu1 %v3575_v5 }
 0x3e4   :  { %1640 = vmatpush.msrb.mxu2 %v3576_v20  ;;  %1660 = vmatpush.msrb.mxu3 %v3577_v27 }
 0x3e5   :  { %1601 = vmatpush.msrb.mxu0 %v3578_v30  ;;  %1621 = vmatpush.msrb.mxu1 %v3579_v31 }
 0x3e6   :  { %1641 = vmatpush.msrb.mxu2 %v3580_v34  ;;  %1661 = vmatpush.msrb.mxu3 %v3581_v35 }
 0x3e7   :  { %1602 = vmatpush.msrb.mxu0 %v3582_v38  ;;  %1622 = vmatpush.msrb.mxu1 %v3583_v39 }
 0x3e8   :  { %1642 = vmatpush.msrb.mxu2 %v3584_v42  ;;  %1662 = vmatpush.msrb.mxu3 %v3585_v1 }
 0x3e9   :  { %1603 = vmatpush.msrb.mxu0 %v3586_v14  ;;  %1623 = vmatpush.msrb.mxu1 %v3587_v9 }
 0x3ea   :  { %1643 = vmatpush.msrb.mxu2 %v3588_v61  ;;  %1663 = vmatpush.msrb.mxu3 %v3589_v7 }
 0x3eb   :  { %1604 = vmatpush.msrb.mxu0 %v3590_v16  ;;  %1624 = vmatpush.msrb.mxu1 %v3591_v0 }
 0x3ec   :  { %1644 = vmatpush.msrb.mxu2 %v3592_v4  ;;  %1664 = vmatpush.msrb.mxu3 %v3593_v60 }
 0x3ed   :  { %1605 = vmatpush.msrb.mxu0 %v3594_v2  ;;  %1625 = vmatpush.msrb.mxu1 %v3595_v19 }
 0x3ee   :  { %1645 = vmatpush.msrb.mxu2 %v3596_v63  ;;  %1665 = vmatpush.msrb.mxu3 %v3597_v8 }
 0x44a   :  { %v1283_v56 = vpop.f32.mrf.mxu1  ;;  %v1263_v40 = vpop.f32.mrf.mxu0 }
 0x44b   :  { %v1330_v15 = vrot.slane %v1283_v56, 7 }
 0x44d   :  { %v1333_v41 = vsel %vm470_vm4, %v1263_v40, %v1330_v15 }
 0x451   :  { %v1303_v53 = vpop.f32.mrf.mxu2  ;;  %v1323_v52 = vpop.f32.mrf.mxu3 }
 0x452   :  { %v1331_v6 = vrot.slane %v1303_v53, 6  ;;  %v1332_v49 = vrot.slane %v1323_v52, 5 }
 0x454   :  { %v1334_v45 = vsel %vm472_vm3, %v1331_v6, %v1332_v49 }
 0x455   :  { %v1335_v47 = vsel %vm474_vm5, %v1333_v41, %v1334_v45  ;;  %v1417_v45 = vld [vmem:[#allocation2 + $0x6] ss:$8 sm:$0xf] }
 0x456   :  { %v1337_v28 = vadd.f32 %v1335_v47, %v1245_v3 }
 0x458   :  { %v2031_v12 = vmul.f32 -1.442695, %v1337_v28  ;;  %v1358_v23 = vrot.slane %v1337_v28, 1  ;;  %v1382_v25 = vrot.slane %v1337_v28, 3  ;;  %v1379_v13 = vrot.slane %v1337_v28, 2 }
 0x45a   :  { %2128 = vpow2.f32 %v2031_v12  ;;  %v2032_v32 = vmul.f32 -1.442695, %v1358_v23  ;;  %v2033_v22 = vmul.f32 -1.442695, %v1382_v25 }
 0x45c   :  { %2130 = vpow2.f32 %v2032_v32 }
 0x45d   :  { %2132 = vpow2.f32 %v2033_v22 }
 0x460   :  { %v2129_v59 = vpop.eup %2128 }
 0x461   :  { %v1341_v21 = vadd.f32 1.0, %v2129_v59 }
 0x462   :  { %v2131_v50 = vpop.eup %2130 }
 0x463   :  { %v2133_v18 = vpop.eup %2132  ;;  %2134 = vrcp.f32 %v1341_v21  ;;  %v1363_v17 = vadd.f32 1.0, %v2131_v50  ;;  %v1353_v62 = vand.u32 2147483648, %v1341_v21  ;;  %v1351_v57 = vand.u32 2147483647, %v1341_v21 }
 0x464   :  { %v1387_v51 = vadd.f32 1.0, %v2133_v18  ;;  %vm1347_vm7 = vweird.f32 %v1341_v21 }
 0x465   :  { %2136 = vrcp.f32 %v1363_v17  ;;  %v1375_v48 = vand.u32 2147483648, %v1363_v17  ;;  %v1373_v26 = vand.u32 2147483647, %v1363_v17  ;;  %v1354_v5 = vor.u32 1.1754944e-38, %v1353_v62 }
 0x466   :  { %2138 = vrcp.f32 %v1387_v51  ;;  %vm1352_vm10 = vcmp.eq.f32.partialorder %v1351_v57, 8.507059e+37  ;;  %vm1369_vm11 = vweird.f32 %v1363_v17  ;;  %v1399_v7 = vand.u32 2147483648, %v1387_v51 }
 0x467   :  { %2140 = vtanh.f32 %v1379_v13  ;;  %v1376_v34 = vor.u32 1.1754944e-38, %v1375_v48  ;;  %vm1374_vm13 = vcmp.eq.f32.partialorder %v1373_v26, 8.507059e+37  ;;  %vm1393_vm15 = vweird.f32 %v1387_v51 }
 0x468   :  { %v1397_v16 = vand.u32 2147483647, %v1387_v51  ;;  %v1400_v4 = vor.u32 1.1754944e-38, %v1399_v7 }
 0x469   :  { %v2135_v24 = vpop.eup %2134 }
 0x46a   :  { %v1343_v55 = vmul.f32 %v2135_v24, %v1341_v21  ;;  %vm1348_vm1 = vweird.f32 %v2135_v24  ;;  %vm1398_vm2 = vcmp.eq.f32.partialorder %v1397_v16, 8.507059e+37 }
 0x46b   :  { %v2137_v58 = vpop.eup %2136  ;;  %vm1349_vm9 = vmor %vm1347_vm7, %vm1348_vm1 }
 0x46c   :  { %v2139_v29 = vpop.eup %2138  ;;  %v1344_v36 = vsub.f32 1.0, %v1343_v55  ;;  %v1365_v33 = vmul.f32 %v2137_v58, %v1363_v17  ;;  %vm1370_vm8 = vweird.f32 %v2137_v58 }
 0x46d   :  { %v1389_v37 = vmul.f32 %v2139_v29, %v1387_v51  ;;  %vm1371_vm12 = vmor %vm1369_vm11, %vm1370_vm8  ;;  %v2141_v38 = vpop.eup %2140  ;;  %vm1394_vm14 = vweird.f32 %v2139_v29 }
 0x46e   :  { %v1366_v54 = vsub.f32 1.0, %v1365_v33  ;;  %v1345_v44 = vmul.f32 %v2135_v24, %v1344_v36  ;;  %vm1395_vm0 = vmor %vm1393_vm15, %vm1394_vm14 }
 0x46f   :  { %v1390_v20 = vsub.f32 1.0, %v1389_v37 }
 0x470   :  { %v1346_v11 = vadd.f32 %v2135_v24, %v1345_v44  ;;  %v1367_v10 = vmul.f32 %v2137_v58, %v1366_v54 }
 0x471   :  { %v1391_v42 = vmul.f32 %v2139_v29, %v1390_v20 }
 0x472   :  { %v1350_v27 = vsel %vm1349_vm9, %v2135_v24, %v1346_v11  ;;  %v1368_v30 = vadd.f32 %v2137_v58, %v1367_v10 }
 0x473   :  { %v1355_v31 = vsel %vm1352_vm10, %v1354_v5, %v1350_v27  ;;  %v1392_v61 = vadd.f32 %v2139_v29, %v1391_v42 }
 0x474   :  { %v1372_v35 = vsel %vm1371_vm12, %v2137_v58, %v1368_v30  ;;  %v1404_v14 = vmul.f32 %v2141_v38, %v1355_v31 }
 0x475   :  { %v1377_v39 = vsel %vm1374_vm13, %v1376_v34, %v1372_v35  ;;  %v1396_v0 = vsel %vm1395_vm0, %v2139_v29, %v1392_v61 }
 0x476   :  { %v1403_v1 = vmul.f32 %v1377_v39, %v3216_v43  ;;  %v1401_v2 = vsel %vm1398_vm2, %v1400_v4, %v1396_v0 }
 0x478   :  { %v3291_v9 = vadd.f32 %v1404_v14, %v1403_v1 }
 0x47a   :  { %2142 = vtanh.f32 %v3291_v9 }
 0x480   :  { %v2143_v60 = vpop.eup %2142 }
 0x481   :  { %v1407_v19 = vmul.f32 %v2143_v60, %v1401_v2 }
 0x483   :  { %1434 = vmatmul.f32.vlgmr.msra.gmra.mxu0 %v1407_v19  ;;  %1454 = vmatmul.f32.vlgmr.msra.gmra.mxu1 %v1407_v19  ;;  %v1765_v43 = vperm.slane %v1407_v19, 0 }
 0x484   :  { %1474 = vmatmul.f32.vlgmr.msra.gmra.mxu2 %v1407_v19  ;;  %1494 = vmatmul.f32.vlgmr.msra.gmra.mxu3 %v1407_v19 }
 0x485   :  { %v3295_v63 = vsel %vm1778_vm6, %v3223_v46, %v1765_v43  ;;  %vm1780_vm6 = vcmask 1045504   ;;  %v1848_v43 = vld [vmem:[#allocation12 + $0x1e0] sm:$0xff] }
 0x486   :  { %1862 = vmatpush.msra.mxu0 %v1848_v43  ;;  %v1805_v43 = vld [vmem:[#allocation12 + $0x88] sm:$0xff] }
 0x500   :  { %v1455_v8 = vpop.f32.mrf.mxu1  ;;  %v1435_v49 = vpop.f32.mrf.mxu0 }
 0x501   :  { %v1502_v56 = vrot.slane %v1455_v8, 7  ;;  %v1849_v8 = vld [vmem:[#allocation12 + $0x1e8] sm:$0xff] }
 0x502   :  { %1882 = vmatpush.msra.mxu1 %v1849_v8  ;;  %v1806_v8 = vld [vmem:[#allocation12 + $0x90] sm:$0xff] }
 0x503   :  { %v1505_v40 = vsel %vm470_vm4, %v1435_v49, %v1502_v56  ;;  %v1850_v56 = vld [vmem:[#allocation12 + $0x1f0] sm:$0xff]  ;;  %v1847_v49 = vld [vmem:[#allocation12 + $0x1d8] sm:$0xff] }
 0x504   :  { %1902 = vmatpush.msra.mxu2 %v1850_v56  ;;  %v1807_v56 = vld [vmem:[#allocation12 + $0x98] sm:$0xff] }
 0x507   :  { %v1475_v15 = vpop.f32.mrf.mxu2  ;;  %v1495_v53 = vpop.f32.mrf.mxu3 }
 0x508   :  { %v1503_v52 = vrot.slane %v1475_v15, 6  ;;  %v1504_v6 = vrot.slane %v1495_v53, 5  ;;  %v1851_v15 = vld [vmem:[#allocation12 + $0x1f8] sm:$0xff]  ;;  %v1844_v53 = vld [vmem:[#allocation12 + $0x1c0] sm:$0xff] }
 0x509   :  { %1922 = vmatpush.msra.mxu3 %v1851_v15  ;;  %1863 = vmatpush.msra.mxu0 %v1844_v53  ;;  %v1800_v15 = vld [vmem:[#allocation12 + $0x60] sm:$0xff]  ;;  %v1801_v53 = vld [vmem:[#allocation12 + $0x68] sm:$0xff] }
 0x50a   :  { %v1506_v41 = vsel %vm472_vm3, %v1503_v52, %v1504_v6  ;;  %v1845_v52 = vld [vmem:[#allocation12 + $0x1c8] sm:$0xff]  ;;  %v1846_v6 = vld [vmem:[#allocation12 + $0x1d0] sm:$0xff] }
 0x50b   :  { %v1507_v3 = vsel %vm474_vm5, %v1505_v40, %v1506_v41  ;;  %1883 = vmatpush.msra.mxu1 %v1845_v52  ;;  %1903 = vmatpush.msra.mxu2 %v1846_v6  ;;  %v1840_v40 = vld [vmem:[#allocation12 + $0x1a0] sm:$0xff]  ;;  %v1841_v41 = vld [vmem:[#allocation12 + $0x1a8] sm:$0xff]  ;;  %v1802_v52 = vld [vmem:[#allocation12 + $0x70] sm:$0xff] }
 0x50c   :  { %v1509_v47 = vadd.f32 %v1507_v3, %v1417_v45  ;;  %1923 = vmatpush.msra.mxu3 %v1847_v49  ;;  %1864 = vmatpush.msra.mxu0 %v1840_v40  ;;  %v1843_v45 = vld [vmem:[#allocation12 + $0x1b8] sm:$0xff]  ;;  %v1796_v49 = vld [vmem:[#allocation12 + $0x40] sm:$0xff]  ;;  %v1797_v40 = vld [vmem:[#allocation12 + $0x48] sm:$0xff] }
 0x50d   :  { %1884 = vmatpush.msra.mxu1 %v1841_v41  ;;  %v1803_v6 = vld [vmem:[#allocation12 + $0x78] sm:$0xff] }
 0x50e   :  { %v2034_v28 = vmul.f32 -1.442695, %v1509_v47  ;;  %v1530_v12 = vrot.slane %v1509_v47, 1  ;;  %v1554_v23 = vrot.slane %v1509_v47, 3  ;;  %v1551_v55 = vrot.slane %v1509_v47, 2  ;;  %1924 = vmatpush.msra.mxu3 %v1843_v45  ;;  %v1836_v47 = vld [vmem:[#allocation12 + $0x180] sm:$0xff] }
 0x50f   :  { %1865 = vmatpush.msra.mxu0 %v1836_v47  ;;  %v1799_v45 = vld [vmem:[#allocation12 + $0x58] sm:$0xff]  ;;  %v1792_v47 = vld [vmem:[#allocation12 + $0x20] sm:$0xff] }
 0x510   :  { %2144 = vpow2.f32 %v2034_v28  ;;  %v2035_v46 = vmul.f32 -1.442695, %v1530_v12  ;;  %v2036_v25 = vmul.f32 -1.442695, %v1554_v23  ;;  %v1837_v28 = vld [vmem:[#allocation12 + $0x188] sm:$0xff]  ;;  %v1838_v12 = vld [vmem:[#allocation12 + $0x190] sm:$0xff] }
 0x511   :  { %1885 = vmatpush.msra.mxu1 %v1837_v28  ;;  %v1839_v23 = vld [vmem:[#allocation12 + $0x198] sm:$0xff]  ;;  %v1793_v28 = vld [vmem:[#allocation12 + $0x28] sm:$0xff] }
 0x512   :  { %2146 = vpow2.f32 %v2035_v46  ;;  %v1832_v46 = vld [vmem:[#allocation12 + $0x160] sm:$0xff]  ;;  %1925 = vmatpush.msra.mxu3 %v1839_v23  ;;  %v1794_v23 = vld [vmem:[#allocation12 + $0x30] sm:$0xff] }
 0x513   :  { %2148 = vpow2.f32 %v2036_v25  ;;  %v1833_v25 = vld [vmem:[#allocation12 + $0x168] sm:$0xff]  ;;  %1866 = vmatpush.msra.mxu0 %v1832_v46  ;;  %v1795_v46 = vld [vmem:[#allocation12 + $0x38] sm:$0xff] }
 0x514   :  { %1886 = vmatpush.msra.mxu1 %v1833_v25 }
 0x516   :  { %v2145_v32 = vpop.eup %2144 }
 0x517   :  { %v1513_v22 = vadd.f32 1.0, %v2145_v32  ;;  %v1834_v32 = vld [vmem:[#allocation12 + $0x170] sm:$0xff] }
 0x518   :  { %v2147_v59 = vpop.eup %2146 }
 0x519   :  { %v2149_v21 = vpop.eup %2148  ;;  %2150 = vrcp.f32 %v1513_v22  ;;  %v1535_v50 = vadd.f32 1.0, %v2147_v59  ;;  %v1525_v36 = vand.u32 2147483648, %v1513_v22  ;;  %v1523_v54 = vand.u32 2147483647, %v1513_v22  ;;  %v1828_v59 = vld [vmem:[#allocation12 + $0x140] sm:$0xff] }
 0x51a   :  { %v1559_v18 = vadd.f32 1.0, %v2149_v21  ;;  %vm1519_vm7 = vweird.f32 %v1513_v22  ;;  %1867 = vmatpush.msra.mxu0 %v1828_v59  ;;  %v1789_v59 = vld [vmem:[#allocation12 + $0x8] sm:$0xff] }
 0x51b   :  { %2152 = vrcp.f32 %v1535_v50  ;;  %v1547_v44 = vand.u32 2147483648, %v1535_v50  ;;  %v1545_v11 = vand.u32 2147483647, %v1535_v50  ;;  %v1526_v10 = vor.u32 1.1754944e-38, %v1525_v36  ;;  %v1826_v36 = vld [vmem:[#allocation12 + $0x130] sm:$0xff] }
 0x51c   :  { %2154 = vrcp.f32 %v1559_v18  ;;  %vm1524_vm10 = vcmp.eq.f32.partialorder %v1523_v54, 8.507059e+37  ;;  %vm1541_vm11 = vweird.f32 %v1535_v50  ;;  %v1571_v61 = vand.u32 2147483648, %v1559_v18  ;;  %v1821_v54 = vld [vmem:[#allocation12 + $0x108] sm:$0xff] }
 0x51d   :  { %2156 = vtanh.f32 %v1551_v55  ;;  %v1548_v30 = vor.u32 1.1754944e-38, %v1547_v44  ;;  %vm1546_vm13 = vcmp.eq.f32.partialorder %v1545_v11, 8.507059e+37  ;;  %vm1565_vm15 = vweird.f32 %v1559_v18  ;;  %v1824_v55 = vld [vmem:[#allocation12 + $0x120] sm:$0xff]  ;;  %v1823_v11 = vld [vmem:[#allocation12 + $0x118] sm:$0xff] }
 0x51e   :  { %v1569_v7 = vand.u32 2147483647, %v1559_v18  ;;  %v1572_v0 = vor.u32 1.1754944e-38, %v1571_v61  ;;  %1868 = vmatpush.msra.mxu0 %v1824_v55  ;;  %v1815_v61 = vld [vmem:[#allocation12 + $0xd8] sm:$0xff] }
 0x51f   :  { %v2151_v17 = vpop.eup %2150 }
 0x520   :  { %v1515_v51 = vmul.f32 %v2151_v17, %v1513_v22  ;;  %vm1520_vm1 = vweird.f32 %v2151_v17  ;;  %vm1570_vm2 = vcmp.eq.f32.partialorder %v1569_v7, 8.507059e+37  ;;  %v1835_v22 = vld [vmem:[#allocation12 + $0x178] sm:$0xff]  ;;  %v1808_v7 = vld [vmem:[#allocation12 + $0xa0] sm:$0xff] }
 0x521   :  { %v2153_v24 = vpop.eup %2152  ;;  %vm1521_vm9 = vmor %vm1519_vm7, %vm1520_vm1  ;;  %1926 = vmatpush.msra.mxu3 %v1835_v22  ;;  %v1788_v22 = vld [vmem:[#allocation12] sm:$0xff] }
 0x522   :  { %v2155_v58 = vpop.eup %2154  ;;  %v1516_v13 = vsub.f32 1.0, %v1515_v51  ;;  %v1537_v29 = vmul.f32 %v2153_v24, %v1535_v50  ;;  %vm1542_vm8 = vweird.f32 %v2153_v24  ;;  %v1829_v50 = vld [vmem:[#allocation12 + $0x148] sm:$0xff] }
 0x523   :  { %v1561_v33 = vmul.f32 %v2155_v58, %v1559_v18  ;;  %vm1543_vm12 = vmor %vm1541_vm11, %vm1542_vm8  ;;  %v2157_v34 = vpop.eup %2156  ;;  %vm1566_vm14 = vweird.f32 %v2155_v58  ;;  %v1830_v18 = vld [vmem:[#allocation12 + $0x150] sm:$0xff]  ;;  %1887 = vmatpush.msra.mxu1 %v1829_v50 }
 0x524   :  { %v1538_v62 = vsub.f32 1.0, %v1537_v29  ;;  %v1517_v37 = vmul.f32 %v2151_v17, %v1516_v13  ;;  %vm1567_vm0 = vmor %vm1565_vm15, %vm1566_vm14  ;;  %v1790_v50 = vld [vmem:[#allocation12 + $0x10] sm:$0xff]  ;;  %vm1782_vm15 = vcmask 1046528  }
 0x525   :  { %v1562_v26 = vsub.f32 1.0, %v1561_v33  ;;  %v1827_v33 = vld [vmem:[#allocation12 + $0x138] sm:$0xff] }
 0x526   :  { %v1518_v57 = vadd.f32 %v2151_v17, %v1517_v37  ;;  %v1539_v48 = vmul.f32 %v2153_v24, %v1538_v62  ;;  %v1820_v37 = vld [vmem:[#allocation12 + $0x100] sm:$0xff] }
 0x527   :  { %v1563_v38 = vmul.f32 %v2155_v58, %v1562_v26  ;;  %1869 = vmatpush.msra.mxu0 %v1820_v37 }
 0x528   :  { %v1522_v5 = vsel %vm1521_vm9, %v2151_v17, %v1518_v57  ;;  %v1540_v20 = vadd.f32 %v2153_v24, %v1539_v48  ;;  %v1831_v17 = vld [vmem:[#allocation12 + $0x158] sm:$0xff]  ;;  %v1822_v48 = vld [vmem:[#allocation12 + $0x110] sm:$0xff] }
 0x529   :  { %v1527_v27 = vsel %vm1524_vm10, %v1526_v10, %v1522_v5  ;;  %v1564_v14 = vadd.f32 %v2155_v58, %v1563_v38  ;;  %1927 = vmatpush.msra.mxu3 %v1831_v17  ;;  %v1589_v10 = vld [vmem:[#allocation2 + $0x7] ss:$8 sm:$0xf] }
 0x52a   :  { %v1544_v31 = vsel %vm1543_vm12, %v2153_v24, %v1540_v20  ;;  %v1576_v42 = vmul.f32 %v2157_v34, %v1527_v27  ;;  %v1816_v5 = vld [vmem:[#allocation12 + $0xe0] sm:$0xff]  ;;  %v1817_v20 = vld [vmem:[#allocation12 + $0xe8] sm:$0xff] }
 0x52b   :  { %v1549_v35 = vsel %vm1546_vm13, %v1548_v30, %v1544_v31  ;;  %v1568_v16 = vsel %vm1567_vm0, %v2155_v58, %v1564_v14  ;;  %v1825_v58 = vld [vmem:[#allocation12 + $0x128] sm:$0xff]  ;;  %1928 = vmatpush.msra.mxu3 %v1827_v33  ;;  %v1818_v30 = vld [vmem:[#allocation12 + $0xf0] sm:$0xff]  ;;  %v1819_v31 = vld [vmem:[#allocation12 + $0xf8] sm:$0xff]  ;;  %1870 = vmatpush.msra.mxu0 %v1816_v5 }
 0x52c   :  { %v1575_v39 = vmul.f32 %v1549_v35, %v3291_v9  ;;  %v1573_v60 = vsel %vm1570_vm2, %v1572_v0, %v1568_v16  ;;  %1888 = vmatpush.msra.mxu1 %v1825_v58  ;;  %v1812_v34 = vld [vmem:[#allocation12 + $0xc0] sm:$0xff]  ;;  %v1813_v35 = vld [vmem:[#allocation12 + $0xc8] sm:$0xff]  ;;  %v1814_v14 = vld [vmem:[#allocation12 + $0xd0] sm:$0xff] }
 0x52d   :  { %1929 = vmatpush.msra.mxu3 %v1823_v11  ;;  %v1809_v16 = vld [vmem:[#allocation12 + $0xa8] sm:$0xff]  ;;  %1871 = vmatpush.msra.mxu0 %v1812_v34 }
 0x52e   :  { %v3301_v1 = vadd.f32 %v1576_v42, %v1575_v39  ;;  %1889 = vmatpush.msra.mxu1 %v1821_v54 }
 0x52f   :  { %1930 = vmatpush.msra.mxu3 %v1819_v31  ;;  %1872 = vmatpush.msra.mxu0 %v1808_v7 }
 0x530   :  { %2158 = vtanh.f32 %v3301_v1  ;;  %1890 = vmatpush.msra.mxu1 %v1817_v20 }
 0x531   :  { %1931 = vmatpush.msra.mxu3 %v1815_v61 }
 0x532   :  { %1891 = vmatpush.msra.mxu1 %v1813_v35 }
 0x534   :  { %1892 = vmatpush.msra.mxu1 %v1809_v16 }
 0x536   :  { %v2159_v4 = vpop.eup %2158  ;;  %1893 = vmatpush.msra.mxu1 %v1805_v43 }
 0x537   :  { %v1579_v2 = vmul.f32 %v2159_v4, %v1573_v60  ;;  %v1810_v60 = vld [vmem:[#allocation12 + $0xb0] sm:$0xff] }
 0x538   :  { %1894 = vmatpush.msra.mxu1 %v1801_v53  ;;  %v1946_v53 = vlaneseq }
 0x539   :  { %1606 = vmatmul.f32.vlgmr.msrb.gmra.mxu0 %v1579_v2  ;;  %1626 = vmatmul.f32.vlgmr.msrb.gmra.mxu1 %v1579_v2  ;;  %v1768_v9 = vperm.slane %v1579_v2, 0 }
 0x53a   :  { %1646 = vmatmul.f32.vlgmr.msrb.gmra.mxu2 %v1579_v2  ;;  %1666 = vmatmul.f32.vlgmr.msrb.gmra.mxu3 %v1579_v2  ;;  %v1811_v2 = vld [vmem:[#allocation12 + $0xb8] sm:$0xff] }
 0x53b   :  { %v3305_v19 = vsel %vm1780_vm6, %v3295_v63, %v1768_v9  ;;  %v1842_v63 = vld [vmem:[#allocation12 + $0x1b0] sm:$0xff]  ;;  %v1804_v9 = vld [vmem:[#allocation12 + $0x80] sm:$0xff]  ;;  %1932 = vmatpush.msra.mxu3 %v1811_v2  ;;  %1895 = vmatpush.msra.mxu1 %v1797_v40 }
 0x53c   :  { %1904 = vmatpush.msra.mxu2 %v1842_v63  ;;  %1873 = vmatpush.msra.mxu0 %v1804_v9  ;;  %v1798_v63 = vld [vmem:[#allocation12 + $0x50] sm:$0xff] }
 0x53d   :  { %1933 = vmatpush.msra.mxu3 %v1807_v56  ;;  %1896 = vmatpush.msra.mxu1 %v1793_v28 }
 0x53e   :  { %1905 = vmatpush.msra.mxu2 %v1838_v12  ;;  %1874 = vmatpush.msra.mxu0 %v1800_v15 }
 0x53f   :  { %1934 = vmatpush.msra.mxu3 %v1803_v6  ;;  %1897 = vmatpush.msra.mxu1 %v1789_v59 }
 0x540   :  { %1906 = vmatpush.msra.mxu2 %v1834_v32  ;;  %1875 = vmatpush.msra.mxu0 %v1796_v49 }
 0x541   :  { %1935 = vmatpush.msra.mxu3 %v1799_v45 }
 0x542   :  { %1907 = vmatpush.msra.mxu2 %v1830_v18  ;;  %1876 = vmatpush.msra.mxu0 %v1792_v47  ;;  %v1791_v18 = vld [vmem:[#allocation12 + $0x18] sm:$0xff] }
 0x543   :  { %1936 = vmatpush.msra.mxu3 %v1795_v46 }
 0x544   :  { %1908 = vmatpush.msra.mxu2 %v1826_v36  ;;  %1877 = vmatpush.msra.mxu0 %v1788_v22 }
 0x545   :  { %1937 = vmatpush.msra.mxu3 %v1791_v18 }
 0x546   :  { %1909 = vmatpush.msra.mxu2 %v1822_v48 }
 0x548   :  { %1910 = vmatpush.msra.mxu2 %v1818_v30 }
 0x54a   :  { %1911 = vmatpush.msra.mxu2 %v1814_v14 }
 0x54c   :  { %1912 = vmatpush.msra.mxu2 %v1810_v60 }
 0x54e   :  { %1913 = vmatpush.msra.mxu2 %v1806_v8  ;;  %v1852_v8 = vld [vmem:[%s3331_s7] sm:$0xf]  ;;  %s2381_s7 = smov [#allocation14]  }
 0x54f   :  { %v1854_v56 = vperm.slane %v1852_v8, 0  ;;  %v1855_v15 = vperm.slane %v1852_v8, 1  ;;  %v1856_v45 = vperm.slane %v1852_v8, 2  ;;  %s1969_s28 = sshll.u32 %s2381_s7, 4  ;;  %s1970_s28 = int_to_ptr.vmem [resolvable:$true] %s1969_s28 }
 0x550   :  { %1914 = vmatpush.msra.mxu2 %v1802_v52 }
 0x552   :  { %1915 = vmatpush.msra.mxu2 %v1798_v63  ;;  %v1947_v63 = vand.u32 127, %v1946_v53 }
 0x554   :  { %1916 = vmatpush.msra.mxu2 %v1794_v23  ;;  %vm1948_vm0 = vcmp.lt.s32.totalorder %v1947_v63, 5 }
 0x556   :  { %1917 = vmatpush.msra.mxu2 %v1790_v50 }
 0x5b6   :  { %v1627_v3 = vpop.f32.mrf.mxu1  ;;  %v1607_v62 = vpop.f32.mrf.mxu0 }
 0x5b7   :  { %v1674_v21 = vrot.slane %v1627_v3, 7 }
 0x5b9   :  { %v1677_v44 = vsel %vm470_vm4, %v1607_v62, %v1674_v21 }
 0x5bd   :  { %v1647_v51 = vpop.f32.mrf.mxu2  ;;  %v1667_v24 = vpop.f32.mrf.mxu3 }
 0x5be   :  { %v1675_v13 = vrot.slane %v1647_v51, 6  ;;  %v1676_v29 = vrot.slane %v1667_v24, 5 }
 0x5c0   :  { %v1678_v57 = vsel %vm472_vm3, %v1675_v13, %v1676_v29 }
 0x5c1   :  { %v1679_v26 = vsel %vm474_vm5, %v1677_v44, %v1678_v57 }
 0x5c2   :  { %v3310_v27 = vadd.f32 %v1679_v26, %v1589_v10 }
 0x5c4   :  { %v2037_v38 = vmul.f32 -1.442695, %v3310_v27  ;;  %v1702_v39 = vrot.slane %v3310_v27, 1  ;;  %v1726_v42 = vrot.slane %v3310_v27, 3  ;;  %v1723_v55 = vrot.slane %v3310_v27, 2 }
 0x5c6   :  { %2160 = vpow2.f32 %v2037_v38  ;;  %v2038_v0 = vmul.f32 -1.442695, %v1702_v39  ;;  %v2039_v4 = vmul.f32 -1.442695, %v1726_v42 }
 0x5c8   :  { %2162 = vpow2.f32 %v2038_v0 }
 0x5c9   :  { %2164 = vpow2.f32 %v2039_v4 }
 0x5cc   :  { %v2161_v41 = vpop.eup %2160 }
 0x5cd   :  { %v1685_v3 = vadd.f32 1.0, %v2161_v41 }
 0x5ce   :  { %v2163_v12 = vpop.eup %2162 }
 0x5cf   :  { %v2165_v25 = vpop.eup %2164  ;;  %2166 = vrcp.f32 %v1685_v3  ;;  %v1707_v32 = vadd.f32 1.0, %v2163_v12  ;;  %v1697_v36 = vand.u32 2147483648, %v1685_v3  ;;  %v1695_v54 = vand.u32 2147483647, %v1685_v3 }
 0x5d0   :  { %v1731_v21 = vadd.f32 1.0, %v2165_v25  ;;  %vm1691_vm4 = vweird.f32 %v1685_v3 }
 0x5d1   :  { %2168 = vrcp.f32 %v1707_v32  ;;  %v1719_v44 = vand.u32 2147483648, %v1707_v32  ;;  %v1717_v11 = vand.u32 2147483647, %v1707_v32  ;;  %v1698_v10 = vor.u32 1.1754944e-38, %v1697_v36 }
 0x5d2   :  { %2170 = vrcp.f32 %v1731_v21  ;;  %vm1696_vm7 = vcmp.eq.f32.partialorder %v1695_v54, 8.507059e+37  ;;  %vm1713_vm8 = vweird.f32 %v1707_v32  ;;  %v1743_v7 = vand.u32 2147483648, %v1731_v21 }
 0x5d3   :  { %2172 = vtanh.f32 %v1723_v55  ;;  %v1720_v30 = vor.u32 1.1754944e-38, %v1719_v44  ;;  %vm1718_vm10 = vcmp.eq.f32.partialorder %v1717_v11, 8.507059e+37  ;;  %vm1737_vm12 = vweird.f32 %v1731_v21 }
 0x5d4   :  { %v1741_v16 = vand.u32 2147483647, %v1731_v21  ;;  %v1744_v4 = vor.u32 1.1754944e-38, %v1743_v7 }
 0x5d5   :  { %v2167_v17 = vpop.eup %2166 }
 0x5d6   :  { %v1687_v51 = vmul.f32 %v2167_v17, %v1685_v3  ;;  %vm1692_vm3 = vweird.f32 %v2167_v17  ;;  %vm1742_vm14 = vcmp.eq.f32.partialorder %v1741_v16, 8.507059e+37 }
 0x5d7   :  { %v2169_v24 = vpop.eup %2168  ;;  %vm1693_vm1 = vmor %vm1691_vm4, %vm1692_vm3 }
 0x5d8   :  { %v2171_v58 = vpop.eup %2170  ;;  %v1688_v13 = vsub.f32 1.0, %v1687_v51  ;;  %v1709_v29 = vmul.f32 %v2169_v24, %v1707_v32  ;;  %vm1714_vm5 = vweird.f32 %v2169_v24 }
 0x5d9   :  { %v1733_v33 = vmul.f32 %v2171_v58, %v1731_v21  ;;  %vm1715_vm9 = vmor %vm1713_vm8, %vm1714_vm5  ;;  %v2173_v34 = vpop.eup %2172  ;;  %vm1738_vm11 = vweird.f32 %v2171_v58 }
 0x5da   :  { %v1710_v62 = vsub.f32 1.0, %v1709_v29  ;;  %v1689_v37 = vmul.f32 %v2167_v17, %v1688_v13  ;;  %vm1739_vm13 = vmor %vm1737_vm12, %vm1738_vm11 }
 0x5db   :  { %v1734_v26 = vsub.f32 1.0, %v1733_v33 }
 0x5dc   :  { %v1690_v57 = vadd.f32 %v2167_v17, %v1689_v37  ;;  %v1711_v48 = vmul.f32 %v2169_v24, %v1710_v62 }
 0x5dd   :  { %v1735_v38 = vmul.f32 %v2171_v58, %v1734_v26 }
 0x5de   :  { %v1694_v5 = vsel %vm1693_vm1, %v2167_v17, %v1690_v57  ;;  %v1712_v20 = vadd.f32 %v2169_v24, %v1711_v48 }
 0x5df   :  { %v1699_v27 = vsel %vm1696_vm7, %v1698_v10, %v1694_v5  ;;  %v1736_v61 = vadd.f32 %v2171_v58, %v1735_v38 }
 0x5e0   :  { %v1716_v31 = vsel %vm1715_vm9, %v2169_v24, %v1712_v20  ;;  %v1748_v42 = vmul.f32 %v2173_v34, %v1699_v27 }
 0x5e1   :  { %v1721_v35 = vsel %vm1718_vm10, %v1720_v30, %v1716_v31  ;;  %v1740_v0 = vsel %vm1739_vm13, %v2171_v58, %v1736_v61 }
 0x5e2   :  { %v1747_v39 = vmul.f32 %v1721_v35, %v3301_v1  ;;  %v1745_v2 = vsel %vm1742_vm14, %v1744_v4, %v1740_v0 }
 0x5e4   :  { %v1749_v14 = vadd.f32 %v1748_v42, %v1747_v39 }
 0x5e6   :  { %2174 = vtanh.f32 %v1749_v14  ;;  %1786 = vst [vmem:[#allocation5] sm:$0x1] %v1749_v14 }
 0x5ec   :  { %v2175_v60 = vpop.eup %2174 }
 0x5ed   :  { %v1751_v9 = vmul.f32 %v2175_v60, %v1745_v2 }
 0x5ef   :  { %v1771_v43 = vperm.slane %v1751_v9, 0  ;;  %1785 = vst [vmem:[#allocation4] sm:$0x1] %v1751_v9 }
 0x5f1   :  { %v1783_v1 = vsel %vm1782_vm15, %v3305_v19, %v1771_v43  ;;  %v1857_v19 = vperm.slane %v1852_v8, 3 }
 0x5f2   :  { %1878 = vmatmul.f32.vlgmr.msra.gmra.mxu0 %v1783_v1  ;;  %1898 = vmatmul.f32.vlgmr.msra.gmra.mxu1 %v1783_v1 }
 0x5f3   :  { %1918 = vmatmul.f32.vlgmr.msra.gmra.mxu2 %v1783_v1  ;;  %1938 = vmatmul.f32.vlgmr.msra.gmra.mxu3 %v1783_v1 }
 0x66f   :  { %v1879_v52 = vpop.f32.mrf.mxu0  ;;  %v1899_v6 = vpop.f32.mrf.mxu1 }
 0x670   :  { %v1880_v49 = vadd.f32 %v1879_v52, %v1854_v56  ;;  %v1900_v40 = vadd.f32 %v1899_v6, %v1855_v15 }
 0x672   :  { %1942 = vst [vmem:[#allocation14] sm:$0xff] %v1880_v49  ;;  %v1943_v41 = vmul.f32 1.442695, %v1900_v40 }
 0x674   :  { %2176 = vpow2.f32 %v1943_v41 }
 0x676   :  { %v1919_v3 = vpop.f32.mrf.mxu2  ;;  %v1939_v47 = vpop.f32.mrf.mxu3 }
 0x677   :  { %v1920_v28 = vadd.f32 %v1919_v3, %v1856_v45  ;;  %v1940_v12 = vadd.f32 %v1939_v47, %v1857_v19 }
 0x679   :  { %1963 = vst [vmem:[#allocation14 + $0x18] sm:$0xff] %v1940_v12  ;;  %v1949_v23 = vsel %vm1948_vm0, %v1920_v28, -1e+30 }
 0x67a   :  { %v2177_v46 = vpop.eup %2176  ;;  %1950 = vmax.xlane.f32.xlu0 %v1949_v23 }
 0x67b   :  { %1945 = vst [vmem:[#allocation14 + $0x8] sm:$0xff] %v2177_v46 }
 0x6ed   :  { %v1951_v25 = vpop.xlane.xlu0 %1950 }
 0x6ee   :  { %v1952_v32 = vsub.f32 %v1920_v28, %v1951_v25 }
 0x6f0   :  { %v1953_v22 = vmul.f32 1.442695, %v1952_v32 }
 0x6f2   :  { %2178 = vpow2.f32 %v1953_v22 }
 0x6f8   :  { %v2179_v59 = vpop.eup %2178 }
 0x6f9   :  { %v1955_v21 = vsel %vm1948_vm0, %v2179_v59, 0.0 }
 0x6fa   :  { %1956 = vadd.xlane.f32.xlu0 %v1955_v21 }
 0x76d   :  { %v1957_v50 = vpop.xlane.xlu0 %1956 }
 0x76e   :  { %2180 = vlog2.f32 %v1957_v50 }
 0x774   :  { %v2181_v18 = vpop.eup %2180 }
 0x775   :  { %v1959_v17 = vmul.f32 0.6931472, %v2181_v18 }
 0x777   :  { %v1960_v51 = vadd.f32 %v1959_v17, %v1951_v25 }
 0x779   :  { %v1961_v24 = vsub.f32 %v1920_v28, %v1960_v51 }
 0x77b   :  { %1962 = vst [vmem:[#allocation14 + $0x10] sm:$0xff] %v1961_v24 }
 0x77c   :  { %1974 = dma.vmem_to_hbm [thread:$0]  %s1970_s28, 512, %s1972_s9, [#allocation8]  }
 0x77d   :  { %2372 = dma.done.wait [#allocation8], 512  }
 0x77e   :  { %2373 = vsyncadd [#allocation8], 4294966784 }
 0x77f   :  { %1979 = vsyncpa [#allocation7], 1 }
 0x780   :  { %1980 = vsyncpa [#allocation10], 1 }
 0x781   :  { %1981 = vsyncpa [#allocation13], 1 }
 0x782   :  { %1982 = vsyncpa [#allocation8], 1 }

</bundles_post_ra>
